<compile_context>
chip_gen: v7x
topology: tpu7x:2x2x1
jax: 0.10.0
libtpu: 0.0.40
codegen_flags: <defaults>
</compile_context>

<pallas_src>
import functools
import math

import jax
import jax.numpy as jnp
from jax import lax
from jax.experimental import pallas as pl
from jax.experimental.pallas import tpu as pltpu

LN_EPS = 1e-5  # torch.nn.LayerNorm default


# ----------------------------- in-kernel helpers -----------------------------
def _layer_norm(x, gamma, beta):
    mu = jnp.mean(x, axis=-1, keepdims=True)
    xc = x - mu
    var = jnp.mean(xc * xc, axis=-1, keepdims=True)
    return xc * lax.rsqrt(var + LN_EPS) * gamma + beta


def _attn_qexp(qp, kp, vp, hmask, fold_m, wo_ref, bo_ref, num_heads):
    """Multi-head attention with the (small) Q side block-diagonal expanded.

    qp: (Nq, Di) f32, kp/vp: (Nk, Di) f32.  Softmax is lane-dense per
    (head, query) row -> per-head max/sum for free; nothing quadratic in Nk.
    """
    f32, bf16 = jnp.float32, jnp.bfloat16
    nq, di = qp.shape
    dh = di // num_heads
    scale = 1.0 / math.sqrt(dh)

    # Replicate only the SMALL q operand (H copies of (Nq, Di)) and mask each
    # head's row-group to its feature block.
    qexp = jnp.concatenate([qp] * num_heads, axis=0).astype(bf16) * hmask
    logits = lax.dot_general(qexp, kp.astype(bf16), (((1,), (1,)), ((), ())),
                             preferred_element_type=f32) * scale      # (H*Nq, Nk)

    m = jnp.max(logits, axis=-1, keepdims=True)        # per-(head,query) max
    e = jnp.exp(logits - m)
    denom = jnp.sum(e, axis=-1, keepdims=True)
    probs = e * pl.reciprocal(denom, approx=True)       # EUP, not VALU divide

    ctx = jnp.dot(probs.astype(bf16), vp.astype(bf16),
                  preferred_element_type=f32)            # (H*Nq, Di)
    ctx = ctx * hmask.astype(f32)                        # keep only head-h block
    out = jnp.dot(fold_m, ctx, preferred_element_type=f32)   # (Nq, Di) head concat
    return jnp.dot(out.astype(bf16), wo_ref[...], preferred_element_type=f32) + bo_ref[...]


def _attn_kexp(qp, kp, vp, hmask, wo_ref, bo_ref, num_heads):
    """Multi-head attention with the (small) K/V side block-diagonal expanded.

    Used for image->token cross-attn: qp is the large image side (Nimg, Di),
    kp/vp are the small token side (Nt, Di).  Softmax segments of width Nt lie
    along lanes; each head gets its own max/sum (numerically safe).
    """
    f32, bf16 = jnp.float32, jnp.bfloat16
    nt, di = kp.shape
    dh = di // num_heads
    scale = 1.0 / math.sqrt(dh)

    kexp = jnp.concatenate([kp] * num_heads, axis=0).astype(bf16) * hmask  # (H*Nt, Di)
    vexp = jnp.concatenate([vp] * num_heads, axis=0).astype(bf16) * hmask  # (H*Nt, Di)

    logits = lax.dot_general(qp.astype(bf16), kexp, (((1,), (1,)), ((), ())),
                             preferred_element_type=f32) * scale      # (Nimg, H*Nt)

    # Per-head softmax along lane segments of width Nt (static slices; H small).
    segs = []
    for h in range(num_heads):
        seg = logits[:, h * nt:(h + 1) * nt]
        m = jnp.max(seg, axis=-1, keepdims=True)
        e = jnp.exp(seg - m)
        d = jnp.sum(e, axis=-1, keepdims=True)
        segs.append(e * pl.reciprocal(d, approx=True))
    probs = jnp.concatenate(segs, axis=-1)                              # (Nimg, H*Nt)

    # vexp's feature masking recombines heads into the concat layout directly.
    ctx = jnp.dot(probs.astype(bf16), vexp, preferred_element_type=f32)  # (Nimg, Di)
    return jnp.dot(ctx.astype(bf16), wo_ref[...], preferred_element_type=f32) + bo_ref[...]


# ------------------------------ fused block kernel ---------------------------
def _twoway_block_kernel(
        q_ref, k_ref, qpe_ref, kpe_ref,
        # self attention (downsample_rate=1), packed
        sa_wqkv, sa_bqkv, sa_wo, sa_bo,
        # cross attention token -> image (downsample_rate=2), packed
        ti_wqkv, ti_bqkv, ti_wo, ti_bo,
        # MLP block
        mlp_w1, mlp_b1, mlp_w2, mlp_b2,
        # cross attention image -> token (downsample_rate=2), packed
        it_wqkv, it_bqkv, it_wo, it_bo,
        # LayerNorms 1..4 stacked as (4, D)
        ln_g, ln_b,
        # precomputed constants (hoisted out of the kernel per review)
        hmask_self, hmask_cross, fold,
        # outputs
        q_out_ref, k_out_ref,
        *, num_heads, skip_first_layer_pe):
    f32, bf16 = jnp.float32, jnp.bfloat16
    D = q_ref.shape[-1]
    Di = ti_wqkv.shape[-1] // 3
    nb = q_ref.shape[0]

    # Load the small constants once per kernel invocation.
    mask_self = hmask_self[...]       # (H*Nq, D)  bf16
    mask_cross = hmask_cross[...]     # (H*Nq, Di) bf16
    fold_m = fold[...]                # (Nq, H*Nq) f32
    gamma = ln_g[...]                 # (4, D) f32
    beta = ln_b[...]                  # (4, D) f32

    # Static unrolled batch loop: one grid step total on single-TC chips, and
    # independent batch chains interleave in the LLO schedule.
    for b in range(nb):
        queries = q_ref[b].astype(f32)      # (Nq, D)
        keys = k_ref[b].astype(f32)         # (Nk, D)
        qpe = qpe_ref[b].astype(f32)
        kpe = kpe_ref[b].astype(f32)

        # ---- 1) self attention on tokens -----------------------------------
        if skip_first_layer_pe:
            # q == k == v: single fused QKV projection.
            x16 = queries.astype(bf16)
            qkv = jnp.dot(x16, sa_wqkv[...], preferred_element_type=f32) + sa_bqkv[...]
            qp, kp, vp = qkv[:, :D], qkv[:, D:2 * D], qkv[:, 2 * D:]
            queries = _attn_qexp(qp, kp, vp, mask_self, fold_m, sa_wo, sa_bo, num_heads)
        else:
            # q == k (= queries + pe): fuse the q/k projections into one dot.
            x16 = (queries + qpe).astype(bf16)
            qk = jnp.dot(x16, sa_wqkv[:, :2 * D],
                         preferred_element_type=f32) + sa_bqkv[:, :2 * D]
            qp, kp = qk[:, :D], qk[:, D:]
            vp = jnp.dot(queries.astype(bf16), sa_wqkv[:, 2 * D:],
                         preferred_element_type=f32) + sa_bqkv[:, 2 * D:]
            queries = queries + _attn_qexp(qp, kp, vp, mask_self, fold_m,
                                           sa_wo, sa_bo, num_heads)
        queries = _layer_norm(queries, gamma[0:1], beta[0:1])

        # ---- 2) cross attention: tokens attend to image ---------------------
        q16 = (queries + qpe).astype(bf16)
        k16 = (keys + kpe).astype(bf16)
        v16 = keys.astype(bf16)
        qp = jnp.dot(q16, ti_wqkv[:, :Di], preferred_element_type=f32) + ti_bqkv[:, :Di]
        kp = jnp.dot(k16, ti_wqkv[:, Di:2 * Di],
                     preferred_element_type=f32) + ti_bqkv[:, Di:2 * Di]
        vp = jnp.dot(v16, ti_wqkv[:, 2 * Di:],
                     preferred_element_type=f32) + ti_bqkv[:, 2 * Di:]
        queries = queries + _attn_qexp(qp, kp, vp, mask_cross, fold_m,
                                       ti_wo, ti_bo, num_heads)
        queries = _layer_norm(queries, gamma[1:2], beta[1:2])

        # ---- 3) MLP block: lin2(ReLU(lin1(x))) -------------------------------
        h = jnp.dot(queries.astype(bf16), mlp_w1[...],
                    preferred_element_type=f32) + mlp_b1[...]
        h = jnp.maximum(h, 0.0)
        mlp_out = jnp.dot(h.astype(bf16), mlp_w2[...],
                          preferred_element_type=f32) + mlp_b2[...]
        queries = _layer_norm(queries + mlp_out, gamma[2:3], beta[2:3])

        # ---- 4) cross attention: image attends to tokens ---------------------
        q16 = (keys + kpe).astype(bf16)        # attention query = image tokens
        k16 = (queries + qpe).astype(bf16)     # attention key   = prompt tokens
        v16 = queries.astype(bf16)
        qp = jnp.dot(q16, it_wqkv[:, :Di], preferred_element_type=f32) + it_bqkv[:, :Di]
        kp = jnp.dot(k16, it_wqkv[:, Di:2 * Di],
                     preferred_element_type=f32) + it_bqkv[:, Di:2 * Di]
        vp = jnp.dot(v16, it_wqkv[:, 2 * Di:],
                     preferred_element_type=f32) + it_bqkv[:, 2 * Di:]
        keys = keys + _attn_kexp(qp, kp, vp, mask_cross, it_wo, it_bo, num_heads)
        keys = _layer_norm(keys, gamma[3:4], beta[3:4])

        q_out_ref[b] = queries.astype(q_out_ref.dtype)
        k_out_ref[b] = keys.astype(k_out_ref.dtype)


# --------------------------- host-side weight packing -------------------------
def _make_hmask(num_heads, n_rows, dim):
    dh = dim // num_heads
    r = jnp.arange(num_heads * n_rows)[:, None] // n_rows
    c = jnp.arange(dim)[None, :] // dh
    return (r == c).astype(jnp.bfloat16)          # exact 0/1 in bf16


def _make_fold(num_heads, n_rows):
    i = jnp.arange(n_rows)[:, None]
    r = jnp.arange(num_heads * n_rows)[None, :] % n_rows
    return (i == r).astype(jnp.float32)


def _pack_params(params, *, num_heads, n_tokens, D, Di):
    bf16, f32 = jnp.bfloat16, jnp.float32

    def pack_attn(p):
        wq, bq, wk, bk, wv, bv, wo, bo = p
        w_qkv = jnp.concatenate([wq, wk, wv], axis=1).astype(bf16)   # (D, 3*Di)
        b_qkv = jnp.concatenate([bq, bk, bv], axis=1).astype(f32)    # (1, 3*Di)
        return (w_qkv, b_qkv, wo.astype(bf16), bo.astype(f32))

    sa = pack_attn(params["self_attn"])
    ti = pack_attn(params["cross_t2i"])
    it = pack_attn(params["cross_i2t"])
    w1, b1, w2, b2 = params["mlp"]
    mlp = (w1.astype(bf16), b1.astype(f32), w2.astype(bf16), b2.astype(f32))
    ln_g = jnp.concatenate([params["norm1"][0], params["norm2"][0],
                            params["norm3"][0], params["norm4"][0]], axis=0)
    ln_b = jnp.concatenate([params["norm1"][1], params["norm2"][1],
                            params["norm3"][1], params["norm4"][1]], axis=0)
    consts = (_make_hmask(num_heads, n_tokens, D),
              _make_hmask(num_heads, n_tokens, Di),
              _make_fold(num_heads, n_tokens))
    return sa + ti + mlp + it + (ln_g.astype(f32), ln_b.astype(f32)) + consts


# ---------------------------------- wrapper ----------------------------------
def two_way_attention_block(queries, keys, query_pe, key_pe, params, *,
                            num_heads, skip_first_layer_pe=False,
                            parallel_batch_grid=False):
    B, Nq, D = queries.shape
    Nk = keys.shape[1]
    Di = params["cross_t2i"][0].shape[1]

    packed = _pack_params(params, num_heads=num_heads, n_tokens=Nq, D=D, Di=Di)

    kern = functools.partial(_twoway_block_kernel, num_heads=num_heads,
                             skip_first_layer_pe=skip_first_layer_pe)
    out_shape = (jax.ShapeDtypeStruct((B, Nq, D), queries.dtype),
                 jax.ShapeDtypeStruct((B, Nk, D), keys.dtype))

    if parallel_batch_grid:
        # Batch grid ("parallel") — useful on v7x (2 TCs) when B >= 2.
        def tok_spec(n):
            return pl.BlockSpec((1, n, D), lambda b: (b, 0, 0))

        def full_spec(arr):
            nd = arr.ndim
            return pl.BlockSpec(arr.shape, lambda b: (0,) * nd)

        in_specs = ([tok_spec(Nq), tok_spec(Nk), tok_spec(Nq), tok_spec(Nk)]
                    + [full_spec(w) for w in packed])
        call = pl.pallas_call(
            kern, out_shape=out_shape, grid=(B,),
            in_specs=in_specs, out_specs=(tok_spec(Nq), tok_spec(Nk)),
            compiler_params=pltpu.CompilerParams(
                dimension_semantics=("parallel",)))
    else:
        # Default: single grid step, everything VMEM-resident, batch loop
        # unrolled inside the kernel (best for single-TC v5e/v6e).
        vmem = pl.BlockSpec(memory_space=pltpu.MemorySpace.VMEM)
        call = pl.pallas_call(
            kern, out_shape=out_shape,
            in_specs=[vmem] * (4 + len(packed)),
            out_specs=(vmem, vmem))

    return call(queries, keys, query_pe, key_pe, *packed)


# ------------------------------- parameter init -------------------------------
def init_params(key, D, num_heads, mlp_dim, attention_downsample_rate=2):
    Di = D // attention_downsample_rate
    assert D % num_heads == 0 and Di % num_heads == 0
    keys = iter(jax.random.split(key, 48))

    def linear(din, dout, scale=0.05):
        w = scale * jax.random.normal(next(keys), (din, dout), jnp.float32)
        b = scale * jax.random.normal(next(keys), (1, dout), jnp.float32)
        return w, b

    def attn_params(internal_dim):
        wq, bq = linear(D, internal_dim)
        wk, bk = linear(D, internal_dim)
        wv, bv = linear(D, internal_dim)
        wo, bo = linear(internal_dim, D)
        return (wq, bq, wk, bk, wv, bv, wo, bo)

    def ln_params():
        return (jnp.ones((1, D), jnp.float32), jnp.zeros((1, D), jnp.float32))

    w1, b1 = linear(D, mlp_dim)
    w2, b2 = linear(mlp_dim, D)

    return dict(
        self_attn=attn_params(D),          # downsample_rate = 1
        cross_t2i=attn_params(Di),         # downsample_rate = 2
        mlp=(w1, b1, w2, b2),
        cross_i2t=attn_params(Di),         # downsample_rate = 2
        norm1=ln_params(), norm2=ln_params(),
        norm3=ln_params(), norm4=ln_params(),
    )


# --------------------------- pure-JAX reference model -------------------------
def _ref_attention(q, k, v, p, num_heads):
    wq, bq, wk, bk, wv, bv, wo, bo = p
    qp = q @ wq + bq
    kp = k @ wk + bk
    vp = v @ wv + bv
    B, Nq, Di = qp.shape
    dh = Di // num_heads

    def split(x):
        return x.reshape(B, -1, num_heads, dh).transpose(0, 2, 1, 3)

    qh, kh, vh = split(qp), split(kp), split(vp)
    attn = jnp.einsum("bhqd,bhkd->bhqk", qh, kh) / math.sqrt(dh)
    attn = jax.nn.softmax(attn, axis=-1)
    oh = jnp.einsum("bhqk,bhkd->bhqd", attn, vh)
    o = oh.transpose(0, 2, 1, 3).reshape(B, Nq, Di)
    return o @ wo + bo


def _ref_ln(x, p):
    g, b = p
    mu = x.mean(-1, keepdims=True)
    var = ((x - mu) ** 2).mean(-1, keepdims=True)
    return (x - mu) * lax.rsqrt(var + LN_EPS) * g + b


def _ref_forward(queries, keys, qpe, kpe, params, num_heads,
                 skip_first_layer_pe=False):
    if skip_first_layer_pe:
        queries = _ref_attention(queries, queries, queries,
                                 params["self_attn"], num_heads)
    else:
        q = queries + qpe
        queries = queries + _ref_attention(q, q, queries,
                                           params["self_attn"], num_heads)
    queries = _ref_ln(queries, params["norm1"])
    q = queries + qpe
    k = keys + kpe
    queries = queries + _ref_attention(q, k, keys, params["cross_t2i"], num_heads)
    queries = _ref_ln(queries, params["norm2"])
    w1, b1, w2, b2 = params["mlp"]
    mlp_out = jnp.maximum(queries @ w1 + b1, 0.0) @ w2 + b2
    queries = _ref_ln(queries + mlp_out, params["norm3"])
    q = queries + qpe
    k = keys + kpe
    keys = keys + _ref_attention(k, q, queries, params["cross_i2t"], num_heads)
    keys = _ref_ln(keys, params["norm4"])
    return queries, keys


# ------------------------------------ main ------------------------------------
if __name__ == "__main__":
    B, Nq, Nk, D = 2, 8, 16, 32
    num_heads, mlp_dim = 4, 64

    key = jax.random.PRNGKey(0)
    kq, kk, kqp, kkp, kpar = jax.random.split(key, 5)
    queries = jax.random.normal(kq, (B, Nq, D), jnp.float32)
    keys_in = jax.random.normal(kk, (B, Nk, D), jnp.float32)
    query_pe = jax.random.normal(kqp, (B, Nq, D), jnp.float32)
    key_pe = jax.random.normal(kkp, (B, Nk, D), jnp.float32)

    params = init_params(kpar, D, num_heads, mlp_dim)

    # Pure-JAX reference (f32) for numerical validation.
    q_ref, k_ref = _ref_forward(queries, keys_in, query_pe, key_pe, params,
                                num_heads, skip_first_layer_pe=False)

    # Test both launch modes: single-step unrolled-batch (v5e/v6e default) and
    # the parallel batch grid (v7x).  Tolerance covers bf16 MXU operands.
    for parallel in (False, True):
        fwd = jax.jit(functools.partial(two_way_attention_block,
                                        num_heads=num_heads,
                                        skip_first_layer_pe=False,
                                        parallel_batch_grid=parallel))
        q_out, k_out = fwd(queries, keys_in, query_pe, key_pe, params)
        q_out = jax.block_until_ready(q_out)
        k_out = jax.block_until_ready(k_out)

        assert q_out.shape == (B, Nq, D) and k_out.shape == (B, Nk, D)
        assert bool(jnp.all(jnp.isfinite(q_out))) and bool(jnp.all(jnp.isfinite(k_out)))

        err_q = float(jnp.max(jnp.abs(q_out - q_ref)))
        err_k = float(jnp.max(jnp.abs(k_out - k_ref)))
        assert err_q < 5e-2 and err_k < 5e-2, (parallel, err_q, err_k)

    print("KERNEL_OK")
</pallas_src>

<mosaic_0001>
module attributes {stable_mosaic.version = 11 : i64} {
  func.func @_twoway_block_kernel(%arg0: memref<2x8x32xf32, #tpu.memory_space<vmem>>, %arg1: memref<2x16x32xf32, #tpu.memory_space<vmem>>, %arg2: memref<2x8x32xf32, #tpu.memory_space<vmem>>, %arg3: memref<2x16x32xf32, #tpu.memory_space<vmem>>, %arg4: memref<32x96xbf16, #tpu.memory_space<vmem>>, %arg5: memref<1x96xf32, #tpu.memory_space<vmem>>, %arg6: memref<32x32xbf16, #tpu.memory_space<vmem>>, %arg7: memref<1x32xf32, #tpu.memory_space<vmem>>, %arg8: memref<32x48xbf16, #tpu.memory_space<vmem>>, %arg9: memref<1x48xf32, #tpu.memory_space<vmem>>, %arg10: memref<16x32xbf16, #tpu.memory_space<vmem>>, %arg11: memref<1x32xf32, #tpu.memory_space<vmem>>, %arg12: memref<32x64xbf16, #tpu.memory_space<vmem>>, %arg13: memref<1x64xf32, #tpu.memory_space<vmem>>, %arg14: memref<64x32xbf16, #tpu.memory_space<vmem>>, %arg15: memref<1x32xf32, #tpu.memory_space<vmem>>, %arg16: memref<32x48xbf16, #tpu.memory_space<vmem>>, %arg17: memref<1x48xf32, #tpu.memory_space<vmem>>, %arg18: memref<16x32xbf16, #tpu.memory_space<vmem>>, %arg19: memref<1x32xf32, #tpu.memory_space<vmem>>, %arg20: memref<4x32xf32, #tpu.memory_space<vmem>>, %arg21: memref<4x32xf32, #tpu.memory_space<vmem>>, %arg22: memref<32x32xbf16, #tpu.memory_space<vmem>>, %arg23: memref<32x16xbf16, #tpu.memory_space<vmem>>, %arg24: memref<8x32xf32, #tpu.memory_space<vmem>>, %arg25: memref<2x8x32xf32, #tpu.memory_space<vmem>>, %arg26: memref<2x16x32xf32, #tpu.memory_space<vmem>>) attributes {dimension_semantics = [], scalar_prefetch = 0 : i64, scratch_operands = 0 : i64, tpu.core_type = #tpu.core_type<tc>} {
    %c0 = arith.constant 0 : index
    %c0_0 = arith.constant 0 : index
    %0 = vector.load %arg22[%c0, %c0_0] : memref<32x32xbf16, #tpu.memory_space<vmem>>, vector<32x32xbf16>
    %c0_1 = arith.constant 0 : index
    %c0_2 = arith.constant 0 : index
    %1 = vector.load %arg23[%c0_1, %c0_2] : memref<32x16xbf16, #tpu.memory_space<vmem>>, vector<32x16xbf16>
    %c0_3 = arith.constant 0 : index
    %c0_4 = arith.constant 0 : index
    %2 = vector.load %arg24[%c0_3, %c0_4] : memref<8x32xf32, #tpu.memory_space<vmem>>, vector<8x32xf32>
    %c0_5 = arith.constant 0 : index
    %c0_6 = arith.constant 0 : index
    %3 = vector.load %arg20[%c0_5, %c0_6] : memref<4x32xf32, #tpu.memory_space<vmem>>, vector<4x32xf32>
    %c0_7 = arith.constant 0 : index
    %c0_8 = arith.constant 0 : index
    %4 = vector.load %arg21[%c0_7, %c0_8] : memref<4x32xf32, #tpu.memory_space<vmem>>, vector<4x32xf32>
    %c0_9 = arith.constant 0 : index
    %c0_10 = arith.constant 0 : index
    %c0_11 = arith.constant 0 : index
    %5 = vector.load %arg0[%c0_9, %c0_10, %c0_11] : memref<2x8x32xf32, #tpu.memory_space<vmem>>, vector<1x8x32xf32>
    %6 = vector.shape_cast %5 : vector<1x8x32xf32> to vector<8x32xf32>
    %c0_12 = arith.constant 0 : index
    %c0_13 = arith.constant 0 : index
    %c0_14 = arith.constant 0 : index
    %7 = vector.load %arg1[%c0_12, %c0_13, %c0_14] : memref<2x16x32xf32, #tpu.memory_space<vmem>>, vector<1x16x32xf32>
    %8 = vector.shape_cast %7 : vector<1x16x32xf32> to vector<16x32xf32>
    %c0_15 = arith.constant 0 : index
    %c0_16 = arith.constant 0 : index
    %c0_17 = arith.constant 0 : index
    %9 = vector.load %arg2[%c0_15, %c0_16, %c0_17] : memref<2x8x32xf32, #tpu.memory_space<vmem>>, vector<1x8x32xf32>
    %10 = vector.shape_cast %9 : vector<1x8x32xf32> to vector<8x32xf32>
    %c0_18 = arith.constant 0 : index
    %c0_19 = arith.constant 0 : index
    %c0_20 = arith.constant 0 : index
    %11 = vector.load %arg3[%c0_18, %c0_19, %c0_20] : memref<2x16x32xf32, #tpu.memory_space<vmem>>, vector<1x16x32xf32>
    %12 = vector.shape_cast %11 : vector<1x16x32xf32> to vector<16x32xf32>
    %13 = arith.addf %6, %10 : vector<8x32xf32>
    %14 = arith.truncf %13 : vector<8x32xf32> to vector<8x32xbf16>
    %c0_21 = arith.constant 0 : index
    %c0_22 = arith.constant 0 : index
    %15 = vector.load %arg4[%c0_21, %c0_22] : memref<32x96xbf16, #tpu.memory_space<vmem>>, vector<32x64xbf16>
    %cst = arith.constant dense<0.000000e+00> : vector<8x64xf32>
    %16 = tpu.matmul %14, %15, %cst {dimension_numbers = #tpu.dot_dimension_numbers<[1], [0], [0], [1], [0, 0, 1, 1], [], []>} : vector<8x32xbf16>, vector<32x64xbf16>, vector<8x64xf32> -> vector<8x64xf32>
    %c0_23 = arith.constant 0 : index
    %c0_24 = arith.constant 0 : index
    %17 = vector.load %arg5[%c0_23, %c0_24] : memref<1x96xf32, #tpu.memory_space<vmem>>, vector<1x64xf32>
    %18 = vector.broadcast %17 : vector<1x64xf32> to vector<8x64xf32>
    %19 = arith.addf %16, %18 : vector<8x64xf32>
    %20 = vector.extract_strided_slice %19 {offsets = [0, 0], sizes = [8, 32], strides = [1, 1]} : vector<8x64xf32> to vector<8x32xf32>
    %21 = vector.extract_strided_slice %19 {offsets = [0, 32], sizes = [8, 32], strides = [1, 1]} : vector<8x64xf32> to vector<8x32xf32>
    %22 = arith.truncf %6 : vector<8x32xf32> to vector<8x32xbf16>
    %c0_25 = arith.constant 0 : index
    %c64 = arith.constant 64 : index
    %23 = vector.load %arg4[%c0_25, %c64] : memref<32x96xbf16, #tpu.memory_space<vmem>>, vector<32x32xbf16>
    %cst_26 = arith.constant dense<0.000000e+00> : vector<8x32xf32>
    %24 = tpu.matmul %22, %23, %cst_26 {dimension_numbers = #tpu.dot_dimension_numbers<[1], [0], [0], [1], [0, 0, 1, 1], [], []>} : vector<8x32xbf16>, vector<32x32xbf16>, vector<8x32xf32> -> vector<8x32xf32>
    %c0_27 = arith.constant 0 : index
    %c64_28 = arith.constant 64 : index
    %25 = vector.load %arg5[%c0_27, %c64_28] : memref<1x96xf32, #tpu.memory_space<vmem>>, vector<1x32xf32>
    %26 = vector.broadcast %25 : vector<1x32xf32> to vector<8x32xf32>
    %27 = arith.addf %24, %26 : vector<8x32xf32>
    %28 = tpu.concatenate %20, %20, %20, %20 in 0 : vector<8x32xf32>, vector<8x32xf32>, vector<8x32xf32>, vector<8x32xf32> -> vector<32x32xf32>
    %29 = arith.truncf %28 : vector<32x32xf32> to vector<32x32xbf16>
    %30 = arith.mulf %29, %0 : vector<32x32xbf16>
    %31 = arith.truncf %21 : vector<8x32xf32> to vector<8x32xbf16>
    %cst_29 = arith.constant dense<0.000000e+00> : vector<32x8xf32>
    %32 = tpu.matmul %30, %31, %cst_29 {dimension_numbers = #tpu.dot_dimension_numbers<[1], [1], [0], [0], [0, 0, 1, 0], [], []>} : vector<32x32xbf16>, vector<8x32xbf16>, vector<32x8xf32> -> vector<32x8xf32>
    %cst_30 = arith.constant 0.353553385 : f32
    %33 = vector.broadcast %cst_30 : f32 to vector<32x8xf32>
    %34 = arith.mulf %32, %33 : vector<32x8xf32>
    %cst_31 = arith.constant dense<0xFF800000> : vector<32xf32>
    %35 = vector.multi_reduction <maximumf>, %34, %cst_31 [1] : vector<32x8xf32> to vector<32xf32>
    %36 = vector.shape_cast %35 : vector<32xf32> to vector<32x1xf32>
    %37 = vector.broadcast %36 : vector<32x1xf32> to vector<32x8xf32>
    %38 = arith.subf %34, %37 : vector<32x8xf32>
    %39 = math.exp %38 : vector<32x8xf32>
    %cst_32 = arith.constant dense<0.000000e+00> : vector<32xf32>
    %40 = vector.multi_reduction <add>, %39, %cst_32 [1] : vector<32x8xf32> to vector<32xf32>
    %41 = vector.shape_cast %40 : vector<32xf32> to vector<32x1xf32>
    %42 = tpu.reciprocal %41 {approx = true} : vector<32x1xf32> -> vector<32x1xf32>
    %43 = vector.broadcast %42 : vector<32x1xf32> to vector<32x8xf32>
    %44 = arith.mulf %39, %43 : vector<32x8xf32>
    %45 = arith.truncf %44 : vector<32x8xf32> to vector<32x8xbf16>
    %46 = arith.truncf %27 : vector<8x32xf32> to vector<8x32xbf16>
    %cst_33 = arith.constant dense<0.000000e+00> : vector<32x32xf32>
    %47 = tpu.matmul %45, %46, %cst_33 {dimension_numbers = #tpu.dot_dimension_numbers<[1], [0], [0], [1], [0, 0, 1, 1], [], []>} : vector<32x8xbf16>, vector<8x32xbf16>, vector<32x32xf32> -> vector<32x32xf32>
    %48 = arith.extf %0 : vector<32x32xbf16> to vector<32x32xf32>
    %49 = arith.mulf %47, %48 : vector<32x32xf32>
    %cst_34 = arith.constant dense<0.000000e+00> : vector<8x32xf32>
    %50 = tpu.matmul %2, %49, %cst_34 {dimension_numbers = #tpu.dot_dimension_numbers<[1], [0], [0], [1], [0, 0, 1, 1], [], []>} : vector<8x32xf32>, vector<32x32xf32>, vector<8x32xf32> -> vector<8x32xf32>
    %51 = arith.truncf %50 : vector<8x32xf32> to vector<8x32xbf16>
    %c0_35 = arith.constant 0 : index
    %c0_36 = arith.constant 0 : index
    %52 = vector.load %arg6[%c0_35, %c0_36] : memref<32x32xbf16, #tpu.memory_space<vmem>>, vector<32x32xbf16>
    %cst_37 = arith.constant dense<0.000000e+00> : vector<8x32xf32>
    %53 = tpu.matmul %51, %52, %cst_37 {dimension_numbers = #tpu.dot_dimension_numbers<[1], [0], [0], [1], [0, 0, 1, 1], [], []>} : vector<8x32xbf16>, vector<32x32xbf16>, vector<8x32xf32> -> vector<8x32xf32>
    %c0_38 = arith.constant 0 : index
    %c0_39 = arith.constant 0 : index
    %54 = vector.load %arg7[%c0_38, %c0_39] : memref<1x32xf32, #tpu.memory_space<vmem>>, vector<1x32xf32>
    %55 = vector.broadcast %54 : vector<1x32xf32> to vector<8x32xf32>
    %56 = arith.addf %53, %55 : vector<8x32xf32>
    %57 = arith.addf %6, %56 : vector<8x32xf32>
    %58 = vector.extract_strided_slice %3 {offsets = [0, 0], sizes = [1, 32], strides = [1, 1]} : vector<4x32xf32> to vector<1x32xf32>
    %59 = vector.extract_strided_slice %4 {offsets = [0, 0], sizes = [1, 32], strides = [1, 1]} : vector<4x32xf32> to vector<1x32xf32>
    %cst_40 = arith.constant dense<0.000000e+00> : vector<8xf32>
    %60 = vector.multi_reduction <add>, %57, %cst_40 [1] : vector<8x32xf32> to vector<8xf32>
    %61 = vector.shape_cast %60 : vector<8xf32> to vector<8x1xf32>
    %cst_41 = arith.constant 3.200000e+01 : f32
    %62 = vector.broadcast %cst_41 : f32 to vector<8x1xf32>
    %63 = arith.divf %61, %62 : vector<8x1xf32>
    %64 = vector.broadcast %63 : vector<8x1xf32> to vector<8x32xf32>
    %65 = arith.subf %57, %64 : vector<8x32xf32>
    %66 = arith.mulf %65, %65 : vector<8x32xf32>
    %cst_42 = arith.constant dense<0.000000e+00> : vector<8xf32>
    %67 = vector.multi_reduction <add>, %66, %cst_42 [1] : vector<8x32xf32> to vector<8xf32>
    %68 = vector.shape_cast %67 : vector<8xf32> to vector<8x1xf32>
    %cst_43 = arith.constant 3.200000e+01 : f32
    %69 = vector.broadcast %cst_43 : f32 to vector<8x1xf32>
    %70 = arith.divf %68, %69 : vector<8x1xf32>
    %cst_44 = arith.constant 9.99999974E-6 : f32
    %71 = vector.broadcast %cst_44 : f32 to vector<8x1xf32>
    %72 = arith.addf %70, %71 : vector<8x1xf32>
    %73 = math.rsqrt %72 : vector<8x1xf32>
    %74 = vector.broadcast %73 : vector<8x1xf32> to vector<8x32xf32>
    %75 = arith.mulf %65, %74 : vector<8x32xf32>
    %76 = vector.broadcast %58 : vector<1x32xf32> to vector<8x32xf32>
    %77 = arith.mulf %75, %76 : vector<8x32xf32>
    %78 = vector.broadcast %59 : vector<1x32xf32> to vector<8x32xf32>
    %79 = arith.addf %77, %78 : vector<8x32xf32>
    %80 = arith.addf %79, %10 : vector<8x32xf32>
    %81 = arith.truncf %80 : vector<8x32xf32> to vector<8x32xbf16>
    %82 = arith.addf %8, %12 : vector<16x32xf32>
    %83 = arith.truncf %82 : vector<16x32xf32> to vector<16x32xbf16>
    %84 = arith.truncf %8 : vector<16x32xf32> to vector<16x32xbf16>
    %c0_45 = arith.constant 0 : index
    %c0_46 = arith.constant 0 : index
    %85 = vector.load %arg8[%c0_45, %c0_46] : memref<32x48xbf16, #tpu.memory_space<vmem>>, vector<32x16xbf16>
    %cst_47 = arith.constant dense<0.000000e+00> : vector<8x16xf32>
    %86 = tpu.matmul %81, %85, %cst_47 {dimension_numbers = #tpu.dot_dimension_numbers<[1], [0], [0], [1], [0, 0, 1, 1], [], []>} : vector<8x32xbf16>, vector<32x16xbf16>, vector<8x16xf32> -> vector<8x16xf32>
    %c0_48 = arith.constant 0 : index
    %c0_49 = arith.constant 0 : index
    %87 = vector.load %arg9[%c0_48, %c0_49] : memref<1x48xf32, #tpu.memory_space<vmem>>, vector<1x16xf32>
    %88 = vector.broadcast %87 : vector<1x16xf32> to vector<8x16xf32>
    %89 = arith.addf %86, %88 : vector<8x16xf32>
    %c0_50 = arith.constant 0 : index
    %c16 = arith.constant 16 : index
    %90 = vector.load %arg8[%c0_50, %c16] : memref<32x48xbf16, #tpu.memory_space<vmem>>, vector<32x16xbf16>
    %cst_51 = arith.constant dense<0.000000e+00> : vector<16x16xf32>
    %91 = tpu.matmul %83, %90, %cst_51 {dimension_numbers = #tpu.dot_dimension_numbers<[1], [0], [0], [1], [0, 0, 1, 1], [], []>} : vector<16x32xbf16>, vector<32x16xbf16>, vector<16x16xf32> -> vector<16x16xf32>
    %c0_52 = arith.constant 0 : index
    %c16_53 = arith.constant 16 : index
    %92 = vector.load %arg9[%c0_52, %c16_53] : memref<1x48xf32, #tpu.memory_space<vmem>>, vector<1x16xf32>
    %93 = vector.broadcast %92 : vector<1x16xf32> to vector<16x16xf32>
    %94 = arith.addf %91, %93 : vector<16x16xf32>
    %c0_54 = arith.constant 0 : index
    %c32 = arith.constant 32 : index
    %95 = vector.load %arg8[%c0_54, %c32] : memref<32x48xbf16, #tpu.memory_space<vmem>>, vector<32x16xbf16>
    %cst_55 = arith.constant dense<0.000000e+00> : vector<16x16xf32>
    %96 = tpu.matmul %84, %95, %cst_55 {dimension_numbers = #tpu.dot_dimension_numbers<[1], [0], [0], [1], [0, 0, 1, 1], [], []>} : vector<16x32xbf16>, vector<32x16xbf16>, vector<16x16xf32> -> vector<16x16xf32>
    %c0_56 = arith.constant 0 : index
    %c32_57 = arith.constant 32 : index
    %97 = vector.load %arg9[%c0_56, %c32_57] : memref<1x48xf32, #tpu.memory_space<vmem>>, vector<1x16xf32>
    %98 = vector.broadcast %97 : vector<1x16xf32> to vector<16x16xf32>
    %99 = arith.addf %96, %98 : vector<16x16xf32>
    %100 = tpu.concatenate %89, %89, %89, %89 in 0 : vector<8x16xf32>, vector<8x16xf32>, vector<8x16xf32>, vector<8x16xf32> -> vector<32x16xf32>
    %101 = arith.truncf %100 : vector<32x16xf32> to vector<32x16xbf16>
    %102 = arith.mulf %101, %1 : vector<32x16xbf16>
    %103 = arith.truncf %94 : vector<16x16xf32> to vector<16x16xbf16>
    %cst_58 = arith.constant dense<0.000000e+00> : vector<32x16xf32>
    %104 = tpu.matmul %102, %103, %cst_58 {dimension_numbers = #tpu.dot_dimension_numbers<[1], [1], [0], [0], [0, 0, 1, 0], [], []>} : vector<32x16xbf16>, vector<16x16xbf16>, vector<32x16xf32> -> vector<32x16xf32>
    %cst_59 = arith.constant 5.000000e-01 : f32
    %105 = vector.broadcast %cst_59 : f32 to vector<32x16xf32>
    %106 = arith.mulf %104, %105 : vector<32x16xf32>
    %cst_60 = arith.constant dense<0xFF800000> : vector<32xf32>
    %107 = vector.multi_reduction <maximumf>, %106, %cst_60 [1] : vector<32x16xf32> to vector<32xf32>
    %108 = vector.shape_cast %107 : vector<32xf32> to vector<32x1xf32>
    %109 = vector.broadcast %108 : vector<32x1xf32> to vector<32x16xf32>
    %110 = arith.subf %106, %109 : vector<32x16xf32>
    %111 = math.exp %110 : vector<32x16xf32>
    %cst_61 = arith.constant dense<0.000000e+00> : vector<32xf32>
    %112 = vector.multi_reduction <add>, %111, %cst_61 [1] : vector<32x16xf32> to vector<32xf32>
    %113 = vector.shape_cast %112 : vector<32xf32> to vector<32x1xf32>
    %114 = tpu.reciprocal %113 {approx = true} : vector<32x1xf32> -> vector<32x1xf32>
    %115 = vector.broadcast %114 : vector<32x1xf32> to vector<32x16xf32>
    %116 = arith.mulf %111, %115 : vector<32x16xf32>
    %117 = arith.truncf %116 : vector<32x16xf32> to vector<32x16xbf16>
    %118 = arith.truncf %99 : vector<16x16xf32> to vector<16x16xbf16>
    %cst_62 = arith.constant dense<0.000000e+00> : vector<32x16xf32>
    %119 = tpu.matmul %117, %118, %cst_62 {dimension_numbers = #tpu.dot_dimension_numbers<[1], [0], [0], [1], [0, 0, 1, 1], [], []>} : vector<32x16xbf16>, vector<16x16xbf16>, vector<32x16xf32> -> vector<32x16xf32>
    %120 = arith.extf %1 : vector<32x16xbf16> to vector<32x16xf32>
    %121 = arith.mulf %119, %120 : vector<32x16xf32>
    %cst_63 = arith.constant dense<0.000000e+00> : vector<8x16xf32>
    %122 = tpu.matmul %2, %121, %cst_63 {dimension_numbers = #tpu.dot_dimension_numbers<[1], [0], [0], [1], [0, 0, 1, 1], [], []>} : vector<8x32xf32>, vector<32x16xf32>, vector<8x16xf32> -> vector<8x16xf32>
    %123 = arith.truncf %122 : vector<8x16xf32> to vector<8x16xbf16>
    %c0_64 = arith.constant 0 : index
    %c0_65 = arith.constant 0 : index
    %124 = vector.load %arg10[%c0_64, %c0_65] : memref<16x32xbf16, #tpu.memory_space<vmem>>, vector<16x32xbf16>
    %cst_66 = arith.constant dense<0.000000e+00> : vector<8x32xf32>
    %125 = tpu.matmul %123, %124, %cst_66 {dimension_numbers = #tpu.dot_dimension_numbers<[1], [0], [0], [1], [0, 0, 1, 1], [], []>} : vector<8x16xbf16>, vector<16x32xbf16>, vector<8x32xf32> -> vector<8x32xf32>
    %c0_67 = arith.constant 0 : index
    %c0_68 = arith.constant 0 : index
    %126 = vector.load %arg11[%c0_67, %c0_68] : memref<1x32xf32, #tpu.memory_space<vmem>>, vector<1x32xf32>
    %127 = vector.broadcast %126 : vector<1x32xf32> to vector<8x32xf32>
    %128 = arith.addf %125, %127 : vector<8x32xf32>
    %129 = arith.addf %79, %128 : vector<8x32xf32>
    %130 = vector.extract_strided_slice %3 {offsets = [1, 0], sizes = [1, 32], strides = [1, 1]} : vector<4x32xf32> to vector<1x32xf32>
    %131 = vector.extract_strided_slice %4 {offsets = [1, 0], sizes = [1, 32], strides = [1, 1]} : vector<4x32xf32> to vector<1x32xf32>
    %cst_69 = arith.constant dense<0.000000e+00> : vector<8xf32>
    %132 = vector.multi_reduction <add>, %129, %cst_69 [1] : vector<8x32xf32> to vector<8xf32>
    %133 = vector.shape_cast %132 : vector<8xf32> to vector<8x1xf32>
    %cst_70 = arith.constant 3.200000e+01 : f32
    %134 = vector.broadcast %cst_70 : f32 to vector<8x1xf32>
    %135 = arith.divf %133, %134 : vector<8x1xf32>
    %136 = vector.broadcast %135 : vector<8x1xf32> to vector<8x32xf32>
    %137 = arith.subf %129, %136 : vector<8x32xf32>
    %138 = arith.mulf %137, %137 : vector<8x32xf32>
    %cst_71 = arith.constant dense<0.000000e+00> : vector<8xf32>
    %139 = vector.multi_reduction <add>, %138, %cst_71 [1] : vector<8x32xf32> to vector<8xf32>
    %140 = vector.shape_cast %139 : vector<8xf32> to vector<8x1xf32>
    %cst_72 = arith.constant 3.200000e+01 : f32
    %141 = vector.broadcast %cst_72 : f32 to vector<8x1xf32>
    %142 = arith.divf %140, %141 : vector<8x1xf32>
    %cst_73 = arith.constant 9.99999974E-6 : f32
    %143 = vector.broadcast %cst_73 : f32 to vector<8x1xf32>
    %144 = arith.addf %142, %143 : vector<8x1xf32>
    %145 = math.rsqrt %144 : vector<8x1xf32>
    %146 = vector.broadcast %145 : vector<8x1xf32> to vector<8x32xf32>
    %147 = arith.mulf %137, %146 : vector<8x32xf32>
    %148 = vector.broadcast %130 : vector<1x32xf32> to vector<8x32xf32>
    %149 = arith.mulf %147, %148 : vector<8x32xf32>
    %150 = vector.broadcast %131 : vector<1x32xf32> to vector<8x32xf32>
    %151 = arith.addf %149, %150 : vector<8x32xf32>
    %152 = arith.truncf %151 : vector<8x32xf32> to vector<8x32xbf16>
    %c0_74 = arith.constant 0 : index
    %c0_75 = arith.constant 0 : index
    %153 = vector.load %arg12[%c0_74, %c0_75] : memref<32x64xbf16, #tpu.memory_space<vmem>>, vector<32x64xbf16>
    %cst_76 = arith.constant dense<0.000000e+00> : vector<8x64xf32>
    %154 = tpu.matmul %152, %153, %cst_76 {dimension_numbers = #tpu.dot_dimension_numbers<[1], [0], [0], [1], [0, 0, 1, 1], [], []>} : vector<8x32xbf16>, vector<32x64xbf16>, vector<8x64xf32> -> vector<8x64xf32>
    %c0_77 = arith.constant 0 : index
    %c0_78 = arith.constant 0 : index
    %155 = vector.load %arg13[%c0_77, %c0_78] : memref<1x64xf32, #tpu.memory_space<vmem>>, vector<1x64xf32>
    %156 = vector.broadcast %155 : vector<1x64xf32> to vector<8x64xf32>
    %157 = arith.addf %154, %156 : vector<8x64xf32>
    %cst_79 = arith.constant 0.000000e+00 : f32
    %158 = vector.broadcast %cst_79 : f32 to vector<8x64xf32>
    %159 = arith.maximumf %157, %158 : vector<8x64xf32>
    %160 = arith.truncf %159 : vector<8x64xf32> to vector<8x64xbf16>
    %c0_80 = arith.constant 0 : index
    %c0_81 = arith.constant 0 : index
    %161 = vector.load %arg14[%c0_80, %c0_81] : memref<64x32xbf16, #tpu.memory_space<vmem>>, vector<64x32xbf16>
    %cst_82 = arith.constant dense<0.000000e+00> : vector<8x32xf32>
    %162 = tpu.matmul %160, %161, %cst_82 {dimension_numbers = #tpu.dot_dimension_numbers<[1], [0], [0], [1], [0, 0, 1, 1], [], []>} : vector<8x64xbf16>, vector<64x32xbf16>, vector<8x32xf32> -> vector<8x32xf32>
    %c0_83 = arith.constant 0 : index
    %c0_84 = arith.constant 0 : index
    %163 = vector.load %arg15[%c0_83, %c0_84] : memref<1x32xf32, #tpu.memory_space<vmem>>, vector<1x32xf32>
    %164 = vector.broadcast %163 : vector<1x32xf32> to vector<8x32xf32>
    %165 = arith.addf %162, %164 : vector<8x32xf32>
    %166 = arith.addf %151, %165 : vector<8x32xf32>
    %167 = vector.extract_strided_slice %3 {offsets = [2, 0], sizes = [1, 32], strides = [1, 1]} : vector<4x32xf32> to vector<1x32xf32>
    %168 = vector.extract_strided_slice %4 {offsets = [2, 0], sizes = [1, 32], strides = [1, 1]} : vector<4x32xf32> to vector<1x32xf32>
    %cst_85 = arith.constant dense<0.000000e+00> : vector<8xf32>
    %169 = vector.multi_reduction <add>, %166, %cst_85 [1] : vector<8x32xf32> to vector<8xf32>
    %170 = vector.shape_cast %169 : vector<8xf32> to vector<8x1xf32>
    %cst_86 = arith.constant 3.200000e+01 : f32
    %171 = vector.broadcast %cst_86 : f32 to vector<8x1xf32>
    %172 = arith.divf %170, %171 : vector<8x1xf32>
    %173 = vector.broadcast %172 : vector<8x1xf32> to vector<8x32xf32>
    %174 = arith.subf %166, %173 : vector<8x32xf32>
    %175 = arith.mulf %174, %174 : vector<8x32xf32>
    %cst_87 = arith.constant dense<0.000000e+00> : vector<8xf32>
    %176 = vector.multi_reduction <add>, %175, %cst_87 [1] : vector<8x32xf32> to vector<8xf32>
    %177 = vector.shape_cast %176 : vector<8xf32> to vector<8x1xf32>
    %cst_88 = arith.constant 3.200000e+01 : f32
    %178 = vector.broadcast %cst_88 : f32 to vector<8x1xf32>
    %179 = arith.divf %177, %178 : vector<8x1xf32>
    %cst_89 = arith.constant 9.99999974E-6 : f32
    %180 = vector.broadcast %cst_89 : f32 to vector<8x1xf32>
    %181 = arith.addf %179, %180 : vector<8x1xf32>
    %182 = math.rsqrt %181 : vector<8x1xf32>
    %183 = vector.broadcast %182 : vector<8x1xf32> to vector<8x32xf32>
    %184 = arith.mulf %174, %183 : vector<8x32xf32>
    %185 = vector.broadcast %167 : vector<1x32xf32> to vector<8x32xf32>
    %186 = arith.mulf %184, %185 : vector<8x32xf32>
    %187 = vector.broadcast %168 : vector<1x32xf32> to vector<8x32xf32>
    %188 = arith.addf %186, %187 : vector<8x32xf32>
    %189 = arith.addf %8, %12 : vector<16x32xf32>
    %190 = arith.truncf %189 : vector<16x32xf32> to vector<16x32xbf16>
    %191 = arith.addf %188, %10 : vector<8x32xf32>
    %192 = arith.truncf %191 : vector<8x32xf32> to vector<8x32xbf16>
    %193 = arith.truncf %188 : vector<8x32xf32> to vector<8x32xbf16>
    %c0_90 = arith.constant 0 : index
    %c0_91 = arith.constant 0 : index
    %194 = vector.load %arg16[%c0_90, %c0_91] : memref<32x48xbf16, #tpu.memory_space<vmem>>, vector<32x16xbf16>
    %cst_92 = arith.constant dense<0.000000e+00> : vector<16x16xf32>
    %195 = tpu.matmul %190, %194, %cst_92 {dimension_numbers = #tpu.dot_dimension_numbers<[1], [0], [0], [1], [0, 0, 1, 1], [], []>} : vector<16x32xbf16>, vector<32x16xbf16>, vector<16x16xf32> -> vector<16x16xf32>
    %c0_93 = arith.constant 0 : index
    %c0_94 = arith.constant 0 : index
    %196 = vector.load %arg17[%c0_93, %c0_94] : memref<1x48xf32, #tpu.memory_space<vmem>>, vector<1x16xf32>
    %197 = vector.broadcast %196 : vector<1x16xf32> to vector<16x16xf32>
    %198 = arith.addf %195, %197 : vector<16x16xf32>
    %c0_95 = arith.constant 0 : index
    %c16_96 = arith.constant 16 : index
    %199 = vector.load %arg16[%c0_95, %c16_96] : memref<32x48xbf16, #tpu.memory_space<vmem>>, vector<32x16xbf16>
    %cst_97 = arith.constant dense<0.000000e+00> : vector<8x16xf32>
    %200 = tpu.matmul %192, %199, %cst_97 {dimension_numbers = #tpu.dot_dimension_numbers<[1], [0], [0], [1], [0, 0, 1, 1], [], []>} : vector<8x32xbf16>, vector<32x16xbf16>, vector<8x16xf32> -> vector<8x16xf32>
    %c0_98 = arith.constant 0 : index
    %c16_99 = arith.constant 16 : index
    %201 = vector.load %arg17[%c0_98, %c16_99] : memref<1x48xf32, #tpu.memory_space<vmem>>, vector<1x16xf32>
    %202 = vector.broadcast %201 : vector<1x16xf32> to vector<8x16xf32>
    %203 = arith.addf %200, %202 : vector<8x16xf32>
    %c0_100 = arith.constant 0 : index
    %c32_101 = arith.constant 32 : index
    %204 = vector.load %arg16[%c0_100, %c32_101] : memref<32x48xbf16, #tpu.memory_space<vmem>>, vector<32x16xbf16>
    %cst_102 = arith.constant dense<0.000000e+00> : vector<8x16xf32>
    %205 = tpu.matmul %193, %204, %cst_102 {dimension_numbers = #tpu.dot_dimension_numbers<[1], [0], [0], [1], [0, 0, 1, 1], [], []>} : vector<8x32xbf16>, vector<32x16xbf16>, vector<8x16xf32> -> vector<8x16xf32>
    %c0_103 = arith.constant 0 : index
    %c32_104 = arith.constant 32 : index
    %206 = vector.load %arg17[%c0_103, %c32_104] : memref<1x48xf32, #tpu.memory_space<vmem>>, vector<1x16xf32>
    %207 = vector.broadcast %206 : vector<1x16xf32> to vector<8x16xf32>
    %208 = arith.addf %205, %207 : vector<8x16xf32>
    %209 = tpu.concatenate %203, %203, %203, %203 in 0 : vector<8x16xf32>, vector<8x16xf32>, vector<8x16xf32>, vector<8x16xf32> -> vector<32x16xf32>
    %210 = arith.truncf %209 : vector<32x16xf32> to vector<32x16xbf16>
    %211 = arith.mulf %210, %1 : vector<32x16xbf16>
    %212 = tpu.concatenate %208, %208, %208, %208 in 0 : vector<8x16xf32>, vector<8x16xf32>, vector<8x16xf32>, vector<8x16xf32> -> vector<32x16xf32>
    %213 = arith.truncf %212 : vector<32x16xf32> to vector<32x16xbf16>
    %214 = arith.mulf %213, %1 : vector<32x16xbf16>
    %215 = arith.truncf %198 : vector<16x16xf32> to vector<16x16xbf16>
    %cst_105 = arith.constant dense<0.000000e+00> : vector<16x32xf32>
    %216 = tpu.matmul %215, %211, %cst_105 {dimension_numbers = #tpu.dot_dimension_numbers<[1], [1], [0], [0], [0, 0, 1, 0], [], []>} : vector<16x16xbf16>, vector<32x16xbf16>, vector<16x32xf32> -> vector<16x32xf32>
    %cst_106 = arith.constant 5.000000e-01 : f32
    %217 = vector.broadcast %cst_106 : f32 to vector<16x32xf32>
    %218 = arith.mulf %216, %217 : vector<16x32xf32>
    %219 = vector.extract_strided_slice %218 {offsets = [0, 0], sizes = [16, 8], strides = [1, 1]} : vector<16x32xf32> to vector<16x8xf32>
    %cst_107 = arith.constant dense<0xFF800000> : vector<16xf32>
    %220 = vector.multi_reduction <maximumf>, %219, %cst_107 [1] : vector<16x8xf32> to vector<16xf32>
    %221 = vector.shape_cast %220 : vector<16xf32> to vector<16x1xf32>
    %222 = vector.broadcast %221 : vector<16x1xf32> to vector<16x8xf32>
    %223 = arith.subf %219, %222 : vector<16x8xf32>
    %224 = math.exp %223 : vector<16x8xf32>
    %cst_108 = arith.constant dense<0.000000e+00> : vector<16xf32>
    %225 = vector.multi_reduction <add>, %224, %cst_108 [1] : vector<16x8xf32> to vector<16xf32>
    %226 = vector.shape_cast %225 : vector<16xf32> to vector<16x1xf32>
    %227 = tpu.reciprocal %226 {approx = true} : vector<16x1xf32> -> vector<16x1xf32>
    %228 = vector.broadcast %227 : vector<16x1xf32> to vector<16x8xf32>
    %229 = arith.mulf %224, %228 : vector<16x8xf32>
    %230 = vector.extract_strided_slice %218 {offsets = [0, 8], sizes = [16, 8], strides = [1, 1]} : vector<16x32xf32> to vector<16x8xf32>
    %cst_109 = arith.constant dense<0xFF800000> : vector<16xf32>
    %231 = vector.multi_reduction <maximumf>, %230, %cst_109 [1] : vector<16x8xf32> to vector<16xf32>
    %232 = vector.shape_cast %231 : vector<16xf32> to vector<16x1xf32>
    %233 = vector.broadcast %232 : vector<16x1xf32> to vector<16x8xf32>
    %234 = arith.subf %230, %233 : vector<16x8xf32>
    %235 = math.exp %234 : vector<16x8xf32>
    %cst_110 = arith.constant dense<0.000000e+00> : vector<16xf32>
    %236 = vector.multi_reduction <add>, %235, %cst_110 [1] : vector<16x8xf32> to vector<16xf32>
    %237 = vector.shape_cast %236 : vector<16xf32> to vector<16x1xf32>
    %238 = tpu.reciprocal %237 {approx = true} : vector<16x1xf32> -> vector<16x1xf32>
    %239 = vector.broadcast %238 : vector<16x1xf32> to vector<16x8xf32>
    %240 = arith.mulf %235, %239 : vector<16x8xf32>
    %241 = vector.extract_strided_slice %218 {offsets = [0, 16], sizes = [16, 8], strides = [1, 1]} : vector<16x32xf32> to vector<16x8xf32>
    %cst_111 = arith.constant dense<0xFF800000> : vector<16xf32>
    %242 = vector.multi_reduction <maximumf>, %241, %cst_111 [1] : vector<16x8xf32> to vector<16xf32>
    %243 = vector.shape_cast %242 : vector<16xf32> to vector<16x1xf32>
    %244 = vector.broadcast %243 : vector<16x1xf32> to vector<16x8xf32>
    %245 = arith.subf %241, %244 : vector<16x8xf32>
    %246 = math.exp %245 : vector<16x8xf32>
    %cst_112 = arith.constant dense<0.000000e+00> : vector<16xf32>
    %247 = vector.multi_reduction <add>, %246, %cst_112 [1] : vector<16x8xf32> to vector<16xf32>
    %248 = vector.shape_cast %247 : vector<16xf32> to vector<16x1xf32>
    %249 = tpu.reciprocal %248 {approx = true} : vector<16x1xf32> -> vector<16x1xf32>
    %250 = vector.broadcast %249 : vector<16x1xf32> to vector<16x8xf32>
    %251 = arith.mulf %246, %250 : vector<16x8xf32>
    %252 = vector.extract_strided_slice %218 {offsets = [0, 24], sizes = [16, 8], strides = [1, 1]} : vector<16x32xf32> to vector<16x8xf32>
    %cst_113 = arith.constant dense<0xFF800000> : vector<16xf32>
    %253 = vector.multi_reduction <maximumf>, %252, %cst_113 [1] : vector<16x8xf32> to vector<16xf32>
    %254 = vector.shape_cast %253 : vector<16xf32> to vector<16x1xf32>
    %255 = vector.broadcast %254 : vector<16x1xf32> to vector<16x8xf32>
    %256 = arith.subf %252, %255 : vector<16x8xf32>
    %257 = math.exp %256 : vector<16x8xf32>
    %cst_114 = arith.constant dense<0.000000e+00> : vector<16xf32>
    %258 = vector.multi_reduction <add>, %257, %cst_114 [1] : vector<16x8xf32> to vector<16xf32>
    %259 = vector.shape_cast %258 : vector<16xf32> to vector<16x1xf32>
    %260 = tpu.reciprocal %259 {approx = true} : vector<16x1xf32> -> vector<16x1xf32>
    %261 = vector.broadcast %260 : vector<16x1xf32> to vector<16x8xf32>
    %262 = arith.mulf %257, %261 : vector<16x8xf32>
    %263 = tpu.concatenate %229, %240, %251, %262 in 1 : vector<16x8xf32>, vector<16x8xf32>, vector<16x8xf32>, vector<16x8xf32> -> vector<16x32xf32>
    %264 = arith.truncf %263 : vector<16x32xf32> to vector<16x32xbf16>
    %cst_115 = arith.constant dense<0.000000e+00> : vector<16x16xf32>
    %265 = tpu.matmul %264, %214, %cst_115 {dimension_numbers = #tpu.dot_dimension_numbers<[1], [0], [0], [1], [0, 0, 1, 1], [], []>} : vector<16x32xbf16>, vector<32x16xbf16>, vector<16x16xf32> -> vector<16x16xf32>
    %266 = arith.truncf %265 : vector<16x16xf32> to vector<16x16xbf16>
    %c0_116 = arith.constant 0 : index
    %c0_117 = arith.constant 0 : index
    %267 = vector.load %arg18[%c0_116, %c0_117] : memref<16x32xbf16, #tpu.memory_space<vmem>>, vector<16x32xbf16>
    %cst_118 = arith.constant dense<0.000000e+00> : vector<16x32xf32>
    %268 = tpu.matmul %266, %267, %cst_118 {dimension_numbers = #tpu.dot_dimension_numbers<[1], [0], [0], [1], [0, 0, 1, 1], [], []>} : vector<16x16xbf16>, vector<16x32xbf16>, vector<16x32xf32> -> vector<16x32xf32>
    %c0_119 = arith.constant 0 : index
    %c0_120 = arith.constant 0 : index
    %269 = vector.load %arg19[%c0_119, %c0_120] : memref<1x32xf32, #tpu.memory_space<vmem>>, vector<1x32xf32>
    %270 = vector.broadcast %269 : vector<1x32xf32> to vector<16x32xf32>
    %271 = arith.addf %268, %270 : vector<16x32xf32>
    %272 = arith.addf %8, %271 : vector<16x32xf32>
    %273 = vector.extract_strided_slice %3 {offsets = [3, 0], sizes = [1, 32], strides = [1, 1]} : vector<4x32xf32> to vector<1x32xf32>
    %274 = vector.extract_strided_slice %4 {offsets = [3, 0], sizes = [1, 32], strides = [1, 1]} : vector<4x32xf32> to vector<1x32xf32>
    %cst_121 = arith.constant dense<0.000000e+00> : vector<16xf32>
    %275 = vector.multi_reduction <add>, %272, %cst_121 [1] : vector<16x32xf32> to vector<16xf32>
    %276 = vector.shape_cast %275 : vector<16xf32> to vector<16x1xf32>
    %cst_122 = arith.constant 3.200000e+01 : f32
    %277 = vector.broadcast %cst_122 : f32 to vector<16x1xf32>
    %278 = arith.divf %276, %277 : vector<16x1xf32>
    %279 = vector.broadcast %278 : vector<16x1xf32> to vector<16x32xf32>
    %280 = arith.subf %272, %279 : vector<16x32xf32>
    %281 = arith.mulf %280, %280 : vector<16x32xf32>
    %cst_123 = arith.constant dense<0.000000e+00> : vector<16xf32>
    %282 = vector.multi_reduction <add>, %281, %cst_123 [1] : vector<16x32xf32> to vector<16xf32>
    %283 = vector.shape_cast %282 : vector<16xf32> to vector<16x1xf32>
    %cst_124 = arith.constant 3.200000e+01 : f32
    %284 = vector.broadcast %cst_124 : f32 to vector<16x1xf32>
    %285 = arith.divf %283, %284 : vector<16x1xf32>
    %cst_125 = arith.constant 9.99999974E-6 : f32
    %286 = vector.broadcast %cst_125 : f32 to vector<16x1xf32>
    %287 = arith.addf %285, %286 : vector<16x1xf32>
    %288 = math.rsqrt %287 : vector<16x1xf32>
    %289 = vector.broadcast %288 : vector<16x1xf32> to vector<16x32xf32>
    %290 = arith.mulf %280, %289 : vector<16x32xf32>
    %291 = vector.broadcast %273 : vector<1x32xf32> to vector<16x32xf32>
    %292 = arith.mulf %290, %291 : vector<16x32xf32>
    %293 = vector.broadcast %274 : vector<1x32xf32> to vector<16x32xf32>
    %294 = arith.addf %292, %293 : vector<16x32xf32>
    %c0_126 = arith.constant 0 : index
    %c0_127 = arith.constant 0 : index
    %c0_128 = arith.constant 0 : index
    %295 = vector.load %arg25[%c0_126, %c0_127, %c0_128] : memref<2x8x32xf32, #tpu.memory_space<vmem>>, vector<1x8x32xf32>
    %296 = vector.shape_cast %295 : vector<1x8x32xf32> to vector<8x32xf32>
    %297 = vector.shape_cast %188 : vector<8x32xf32> to vector<1x8x32xf32>
    tpu.vector_store %arg25[%c0_126, %c0_127, %c0_128], %297 {strides = array<i32>} : memref<2x8x32xf32, #tpu.memory_space<vmem>>, vector<1x8x32xf32>,
    %c0_129 = arith.constant 0 : index
    %c0_130 = arith.constant 0 : index
    %c0_131 = arith.constant 0 : index
    %298 = vector.load %arg26[%c0_129, %c0_130, %c0_131] : memref<2x16x32xf32, #tpu.memory_space<vmem>>, vector<1x16x32xf32>
    %299 = vector.shape_cast %298 : vector<1x16x32xf32> to vector<16x32xf32>
    %300 = vector.shape_cast %294 : vector<16x32xf32> to vector<1x16x32xf32>
    tpu.vector_store %arg26[%c0_129, %c0_130, %c0_131], %300 {strides = array<i32>} : memref<2x16x32xf32, #tpu.memory_space<vmem>>, vector<1x16x32xf32>,
    %c1 = arith.constant 1 : index
    %c0_132 = arith.constant 0 : index
    %c0_133 = arith.constant 0 : index
    %301 = vector.load %arg0[%c1, %c0_132, %c0_133] : memref<2x8x32xf32, #tpu.memory_space<vmem>>, vector<1x8x32xf32>
    %302 = vector.shape_cast %301 : vector<1x8x32xf32> to vector<8x32xf32>
    %c1_134 = arith.constant 1 : index
    %c0_135 = arith.constant 0 : index
    %c0_136 = arith.constant 0 : index
    %303 = vector.load %arg1[%c1_134, %c0_135, %c0_136] : memref<2x16x32xf32, #tpu.memory_space<vmem>>, vector<1x16x32xf32>
    %304 = vector.shape_cast %303 : vector<1x16x32xf32> to vector<16x32xf32>
    %c1_137 = arith.constant 1 : index
    %c0_138 = arith.constant 0 : index
    %c0_139 = arith.constant 0 : index
    %305 = vector.load %arg2[%c1_137, %c0_138, %c0_139] : memref<2x8x32xf32, #tpu.memory_space<vmem>>, vector<1x8x32xf32>
    %306 = vector.shape_cast %305 : vector<1x8x32xf32> to vector<8x32xf32>
    %c1_140 = arith.constant 1 : index
    %c0_141 = arith.constant 0 : index
    %c0_142 = arith.constant 0 : index
    %307 = vector.load %arg3[%c1_140, %c0_141, %c0_142] : memref<2x16x32xf32, #tpu.memory_space<vmem>>, vector<1x16x32xf32>
    %308 = vector.shape_cast %307 : vector<1x16x32xf32> to vector<16x32xf32>
    %309 = arith.addf %302, %306 : vector<8x32xf32>
    %310 = arith.truncf %309 : vector<8x32xf32> to vector<8x32xbf16>
    %c0_143 = arith.constant 0 : index
    %c0_144 = arith.constant 0 : index
    %311 = vector.load %arg4[%c0_143, %c0_144] : memref<32x96xbf16, #tpu.memory_space<vmem>>, vector<32x64xbf16>
    %cst_145 = arith.constant dense<0.000000e+00> : vector<8x64xf32>
    %312 = tpu.matmul %310, %311, %cst_145 {dimension_numbers = #tpu.dot_dimension_numbers<[1], [0], [0], [1], [0, 0, 1, 1], [], []>} : vector<8x32xbf16>, vector<32x64xbf16>, vector<8x64xf32> -> vector<8x64xf32>
    %c0_146 = arith.constant 0 : index
    %c0_147 = arith.constant 0 : index
    %313 = vector.load %arg5[%c0_146, %c0_147] : memref<1x96xf32, #tpu.memory_space<vmem>>, vector<1x64xf32>
    %314 = vector.broadcast %313 : vector<1x64xf32> to vector<8x64xf32>
    %315 = arith.addf %312, %314 : vector<8x64xf32>
    %316 = vector.extract_strided_slice %315 {offsets = [0, 0], sizes = [8, 32], strides = [1, 1]} : vector<8x64xf32> to vector<8x32xf32>
    %317 = vector.extract_strided_slice %315 {offsets = [0, 32], sizes = [8, 32], strides = [1, 1]} : vector<8x64xf32> to vector<8x32xf32>
    %318 = arith.truncf %302 : vector<8x32xf32> to vector<8x32xbf16>
    %c0_148 = arith.constant 0 : index
    %c64_149 = arith.constant 64 : index
    %319 = vector.load %arg4[%c0_148, %c64_149] : memref<32x96xbf16, #tpu.memory_space<vmem>>, vector<32x32xbf16>
    %cst_150 = arith.constant dense<0.000000e+00> : vector<8x32xf32>
    %320 = tpu.matmul %318, %319, %cst_150 {dimension_numbers = #tpu.dot_dimension_numbers<[1], [0], [0], [1], [0, 0, 1, 1], [], []>} : vector<8x32xbf16>, vector<32x32xbf16>, vector<8x32xf32> -> vector<8x32xf32>
    %c0_151 = arith.constant 0 : index
    %c64_152 = arith.constant 64 : index
    %321 = vector.load %arg5[%c0_151, %c64_152] : memref<1x96xf32, #tpu.memory_space<vmem>>, vector<1x32xf32>
    %322 = vector.broadcast %321 : vector<1x32xf32> to vector<8x32xf32>
    %323 = arith.addf %320, %322 : vector<8x32xf32>
    %324 = tpu.concatenate %316, %316, %316, %316 in 0 : vector<8x32xf32>, vector<8x32xf32>, vector<8x32xf32>, vector<8x32xf32> -> vector<32x32xf32>
    %325 = arith.truncf %324 : vector<32x32xf32> to vector<32x32xbf16>
    %326 = arith.mulf %325, %0 : vector<32x32xbf16>
    %327 = arith.truncf %317 : vector<8x32xf32> to vector<8x32xbf16>
    %cst_153 = arith.constant dense<0.000000e+00> : vector<32x8xf32>
    %328 = tpu.matmul %326, %327, %cst_153 {dimension_numbers = #tpu.dot_dimension_numbers<[1], [1], [0], [0], [0, 0, 1, 0], [], []>} : vector<32x32xbf16>, vector<8x32xbf16>, vector<32x8xf32> -> vector<32x8xf32>
    %cst_154 = arith.constant 0.353553385 : f32
    %329 = vector.broadcast %cst_154 : f32 to vector<32x8xf32>
    %330 = arith.mulf %328, %329 : vector<32x8xf32>
    %cst_155 = arith.constant dense<0xFF800000> : vector<32xf32>
    %331 = vector.multi_reduction <maximumf>, %330, %cst_155 [1] : vector<32x8xf32> to vector<32xf32>
    %332 = vector.shape_cast %331 : vector<32xf32> to vector<32x1xf32>
    %333 = vector.broadcast %332 : vector<32x1xf32> to vector<32x8xf32>
    %334 = arith.subf %330, %333 : vector<32x8xf32>
    %335 = math.exp %334 : vector<32x8xf32>
    %cst_156 = arith.constant dense<0.000000e+00> : vector<32xf32>
    %336 = vector.multi_reduction <add>, %335, %cst_156 [1] : vector<32x8xf32> to vector<32xf32>
    %337 = vector.shape_cast %336 : vector<32xf32> to vector<32x1xf32>
    %338 = tpu.reciprocal %337 {approx = true} : vector<32x1xf32> -> vector<32x1xf32>
    %339 = vector.broadcast %338 : vector<32x1xf32> to vector<32x8xf32>
    %340 = arith.mulf %335, %339 : vector<32x8xf32>
    %341 = arith.truncf %340 : vector<32x8xf32> to vector<32x8xbf16>
    %342 = arith.truncf %323 : vector<8x32xf32> to vector<8x32xbf16>
    %cst_157 = arith.constant dense<0.000000e+00> : vector<32x32xf32>
    %343 = tpu.matmul %341, %342, %cst_157 {dimension_numbers = #tpu.dot_dimension_numbers<[1], [0], [0], [1], [0, 0, 1, 1], [], []>} : vector<32x8xbf16>, vector<8x32xbf16>, vector<32x32xf32> -> vector<32x32xf32>
    %344 = arith.extf %0 : vector<32x32xbf16> to vector<32x32xf32>
    %345 = arith.mulf %343, %344 : vector<32x32xf32>
    %cst_158 = arith.constant dense<0.000000e+00> : vector<8x32xf32>
    %346 = tpu.matmul %2, %345, %cst_158 {dimension_numbers = #tpu.dot_dimension_numbers<[1], [0], [0], [1], [0, 0, 1, 1], [], []>} : vector<8x32xf32>, vector<32x32xf32>, vector<8x32xf32> -> vector<8x32xf32>
    %347 = arith.truncf %346 : vector<8x32xf32> to vector<8x32xbf16>
    %c0_159 = arith.constant 0 : index
    %c0_160 = arith.constant 0 : index
    %348 = vector.load %arg6[%c0_159, %c0_160] : memref<32x32xbf16, #tpu.memory_space<vmem>>, vector<32x32xbf16>
    %cst_161 = arith.constant dense<0.000000e+00> : vector<8x32xf32>
    %349 = tpu.matmul %347, %348, %cst_161 {dimension_numbers = #tpu.dot_dimension_numbers<[1], [0], [0], [1], [0, 0, 1, 1], [], []>} : vector<8x32xbf16>, vector<32x32xbf16>, vector<8x32xf32> -> vector<8x32xf32>
    %c0_162 = arith.constant 0 : index
    %c0_163 = arith.constant 0 : index
    %350 = vector.load %arg7[%c0_162, %c0_163] : memref<1x32xf32, #tpu.memory_space<vmem>>, vector<1x32xf32>
    %351 = vector.broadcast %350 : vector<1x32xf32> to vector<8x32xf32>
    %352 = arith.addf %349, %351 : vector<8x32xf32>
    %353 = arith.addf %302, %352 : vector<8x32xf32>
    %354 = vector.extract_strided_slice %3 {offsets = [0, 0], sizes = [1, 32], strides = [1, 1]} : vector<4x32xf32> to vector<1x32xf32>
    %355 = vector.extract_strided_slice %4 {offsets = [0, 0], sizes = [1, 32], strides = [1, 1]} : vector<4x32xf32> to vector<1x32xf32>
    %cst_164 = arith.constant dense<0.000000e+00> : vector<8xf32>
    %356 = vector.multi_reduction <add>, %353, %cst_164 [1] : vector<8x32xf32> to vector<8xf32>
    %357 = vector.shape_cast %356 : vector<8xf32> to vector<8x1xf32>
    %cst_165 = arith.constant 3.200000e+01 : f32
    %358 = vector.broadcast %cst_165 : f32 to vector<8x1xf32>
    %359 = arith.divf %357, %358 : vector<8x1xf32>
    %360 = vector.broadcast %359 : vector<8x1xf32> to vector<8x32xf32>
    %361 = arith.subf %353, %360 : vector<8x32xf32>
    %362 = arith.mulf %361, %361 : vector<8x32xf32>
    %cst_166 = arith.constant dense<0.000000e+00> : vector<8xf32>
    %363 = vector.multi_reduction <add>, %362, %cst_166 [1] : vector<8x32xf32> to vector<8xf32>
    %364 = vector.shape_cast %363 : vector<8xf32> to vector<8x1xf32>
    %cst_167 = arith.constant 3.200000e+01 : f32
    %365 = vector.broadcast %cst_167 : f32 to vector<8x1xf32>
    %366 = arith.divf %364, %365 : vector<8x1xf32>
    %cst_168 = arith.constant 9.99999974E-6 : f32
    %367 = vector.broadcast %cst_168 : f32 to vector<8x1xf32>
    %368 = arith.addf %366, %367 : vector<8x1xf32>
    %369 = math.rsqrt %368 : vector<8x1xf32>
    %370 = vector.broadcast %369 : vector<8x1xf32> to vector<8x32xf32>
    %371 = arith.mulf %361, %370 : vector<8x32xf32>
    %372 = vector.broadcast %354 : vector<1x32xf32> to vector<8x32xf32>
    %373 = arith.mulf %371, %372 : vector<8x32xf32>
    %374 = vector.broadcast %355 : vector<1x32xf32> to vector<8x32xf32>
    %375 = arith.addf %373, %374 : vector<8x32xf32>
    %376 = arith.addf %375, %306 : vector<8x32xf32>
    %377 = arith.truncf %376 : vector<8x32xf32> to vector<8x32xbf16>
    %378 = arith.addf %304, %308 : vector<16x32xf32>
    %379 = arith.truncf %378 : vector<16x32xf32> to vector<16x32xbf16>
    %380 = arith.truncf %304 : vector<16x32xf32> to vector<16x32xbf16>
    %c0_169 = arith.constant 0 : index
    %c0_170 = arith.constant 0 : index
    %381 = vector.load %arg8[%c0_169, %c0_170] : memref<32x48xbf16, #tpu.memory_space<vmem>>, vector<32x16xbf16>
    %cst_171 = arith.constant dense<0.000000e+00> : vector<8x16xf32>
    %382 = tpu.matmul %377, %381, %cst_171 {dimension_numbers = #tpu.dot_dimension_numbers<[1], [0], [0], [1], [0, 0, 1, 1], [], []>} : vector<8x32xbf16>, vector<32x16xbf16>, vector<8x16xf32> -> vector<8x16xf32>
    %c0_172 = arith.constant 0 : index
    %c0_173 = arith.constant 0 : index
    %383 = vector.load %arg9[%c0_172, %c0_173] : memref<1x48xf32, #tpu.memory_space<vmem>>, vector<1x16xf32>
    %384 = vector.broadcast %383 : vector<1x16xf32> to vector<8x16xf32>
    %385 = arith.addf %382, %384 : vector<8x16xf32>
    %c0_174 = arith.constant 0 : index
    %c16_175 = arith.constant 16 : index
    %386 = vector.load %arg8[%c0_174, %c16_175] : memref<32x48xbf16, #tpu.memory_space<vmem>>, vector<32x16xbf16>
    %cst_176 = arith.constant dense<0.000000e+00> : vector<16x16xf32>
    %387 = tpu.matmul %379, %386, %cst_176 {dimension_numbers = #tpu.dot_dimension_numbers<[1], [0], [0], [1], [0, 0, 1, 1], [], []>} : vector<16x32xbf16>, vector<32x16xbf16>, vector<16x16xf32> -> vector<16x16xf32>
    %c0_177 = arith.constant 0 : index
    %c16_178 = arith.constant 16 : index
    %388 = vector.load %arg9[%c0_177, %c16_178] : memref<1x48xf32, #tpu.memory_space<vmem>>, vector<1x16xf32>
    %389 = vector.broadcast %388 : vector<1x16xf32> to vector<16x16xf32>
    %390 = arith.addf %387, %389 : vector<16x16xf32>
    %c0_179 = arith.constant 0 : index
    %c32_180 = arith.constant 32 : index
    %391 = vector.load %arg8[%c0_179, %c32_180] : memref<32x48xbf16, #tpu.memory_space<vmem>>, vector<32x16xbf16>
    %cst_181 = arith.constant dense<0.000000e+00> : vector<16x16xf32>
    %392 = tpu.matmul %380, %391, %cst_181 {dimension_numbers = #tpu.dot_dimension_numbers<[1], [0], [0], [1], [0, 0, 1, 1], [], []>} : vector<16x32xbf16>, vector<32x16xbf16>, vector<16x16xf32> -> vector<16x16xf32>
    %c0_182 = arith.constant 0 : index
    %c32_183 = arith.constant 32 : index
    %393 = vector.load %arg9[%c0_182, %c32_183] : memref<1x48xf32, #tpu.memory_space<vmem>>, vector<1x16xf32>
    %394 = vector.broadcast %393 : vector<1x16xf32> to vector<16x16xf32>
    %395 = arith.addf %392, %394 : vector<16x16xf32>
    %396 = tpu.concatenate %385, %385, %385, %385 in 0 : vector<8x16xf32>, vector<8x16xf32>, vector<8x16xf32>, vector<8x16xf32> -> vector<32x16xf32>
    %397 = arith.truncf %396 : vector<32x16xf32> to vector<32x16xbf16>
    %398 = arith.mulf %397, %1 : vector<32x16xbf16>
    %399 = arith.truncf %390 : vector<16x16xf32> to vector<16x16xbf16>
    %cst_184 = arith.constant dense<0.000000e+00> : vector<32x16xf32>
    %400 = tpu.matmul %398, %399, %cst_184 {dimension_numbers = #tpu.dot_dimension_numbers<[1], [1], [0], [0], [0, 0, 1, 0], [], []>} : vector<32x16xbf16>, vector<16x16xbf16>, vector<32x16xf32> -> vector<32x16xf32>
    %cst_185 = arith.constant 5.000000e-01 : f32
    %401 = vector.broadcast %cst_185 : f32 to vector<32x16xf32>
    %402 = arith.mulf %400, %401 : vector<32x16xf32>
    %cst_186 = arith.constant dense<0xFF800000> : vector<32xf32>
    %403 = vector.multi_reduction <maximumf>, %402, %cst_186 [1] : vector<32x16xf32> to vector<32xf32>
    %404 = vector.shape_cast %403 : vector<32xf32> to vector<32x1xf32>
    %405 = vector.broadcast %404 : vector<32x1xf32> to vector<32x16xf32>
    %406 = arith.subf %402, %405 : vector<32x16xf32>
    %407 = math.exp %406 : vector<32x16xf32>
    %cst_187 = arith.constant dense<0.000000e+00> : vector<32xf32>
    %408 = vector.multi_reduction <add>, %407, %cst_187 [1] : vector<32x16xf32> to vector<32xf32>
    %409 = vector.shape_cast %408 : vector<32xf32> to vector<32x1xf32>
    %410 = tpu.reciprocal %409 {approx = true} : vector<32x1xf32> -> vector<32x1xf32>
    %411 = vector.broadcast %410 : vector<32x1xf32> to vector<32x16xf32>
    %412 = arith.mulf %407, %411 : vector<32x16xf32>
    %413 = arith.truncf %412 : vector<32x16xf32> to vector<32x16xbf16>
    %414 = arith.truncf %395 : vector<16x16xf32> to vector<16x16xbf16>
    %cst_188 = arith.constant dense<0.000000e+00> : vector<32x16xf32>
    %415 = tpu.matmul %413, %414, %cst_188 {dimension_numbers = #tpu.dot_dimension_numbers<[1], [0], [0], [1], [0, 0, 1, 1], [], []>} : vector<32x16xbf16>, vector<16x16xbf16>, vector<32x16xf32> -> vector<32x16xf32>
    %416 = arith.extf %1 : vector<32x16xbf16> to vector<32x16xf32>
    %417 = arith.mulf %415, %416 : vector<32x16xf32>
    %cst_189 = arith.constant dense<0.000000e+00> : vector<8x16xf32>
    %418 = tpu.matmul %2, %417, %cst_189 {dimension_numbers = #tpu.dot_dimension_numbers<[1], [0], [0], [1], [0, 0, 1, 1], [], []>} : vector<8x32xf32>, vector<32x16xf32>, vector<8x16xf32> -> vector<8x16xf32>
    %419 = arith.truncf %418 : vector<8x16xf32> to vector<8x16xbf16>
    %c0_190 = arith.constant 0 : index
    %c0_191 = arith.constant 0 : index
    %420 = vector.load %arg10[%c0_190, %c0_191] : memref<16x32xbf16, #tpu.memory_space<vmem>>, vector<16x32xbf16>
    %cst_192 = arith.constant dense<0.000000e+00> : vector<8x32xf32>
    %421 = tpu.matmul %419, %420, %cst_192 {dimension_numbers = #tpu.dot_dimension_numbers<[1], [0], [0], [1], [0, 0, 1, 1], [], []>} : vector<8x16xbf16>, vector<16x32xbf16>, vector<8x32xf32> -> vector<8x32xf32>
    %c0_193 = arith.constant 0 : index
    %c0_194 = arith.constant 0 : index
    %422 = vector.load %arg11[%c0_193, %c0_194] : memref<1x32xf32, #tpu.memory_space<vmem>>, vector<1x32xf32>
    %423 = vector.broadcast %422 : vector<1x32xf32> to vector<8x32xf32>
    %424 = arith.addf %421, %423 : vector<8x32xf32>
    %425 = arith.addf %375, %424 : vector<8x32xf32>
    %426 = vector.extract_strided_slice %3 {offsets = [1, 0], sizes = [1, 32], strides = [1, 1]} : vector<4x32xf32> to vector<1x32xf32>
    %427 = vector.extract_strided_slice %4 {offsets = [1, 0], sizes = [1, 32], strides = [1, 1]} : vector<4x32xf32> to vector<1x32xf32>
    %cst_195 = arith.constant dense<0.000000e+00> : vector<8xf32>
    %428 = vector.multi_reduction <add>, %425, %cst_195 [1] : vector<8x32xf32> to vector<8xf32>
    %429 = vector.shape_cast %428 : vector<8xf32> to vector<8x1xf32>
    %cst_196 = arith.constant 3.200000e+01 : f32
    %430 = vector.broadcast %cst_196 : f32 to vector<8x1xf32>
    %431 = arith.divf %429, %430 : vector<8x1xf32>
    %432 = vector.broadcast %431 : vector<8x1xf32> to vector<8x32xf32>
    %433 = arith.subf %425, %432 : vector<8x32xf32>
    %434 = arith.mulf %433, %433 : vector<8x32xf32>
    %cst_197 = arith.constant dense<0.000000e+00> : vector<8xf32>
    %435 = vector.multi_reduction <add>, %434, %cst_197 [1] : vector<8x32xf32> to vector<8xf32>
    %436 = vector.shape_cast %435 : vector<8xf32> to vector<8x1xf32>
    %cst_198 = arith.constant 3.200000e+01 : f32
    %437 = vector.broadcast %cst_198 : f32 to vector<8x1xf32>
    %438 = arith.divf %436, %437 : vector<8x1xf32>
    %cst_199 = arith.constant 9.99999974E-6 : f32
    %439 = vector.broadcast %cst_199 : f32 to vector<8x1xf32>
    %440 = arith.addf %438, %439 : vector<8x1xf32>
    %441 = math.rsqrt %440 : vector<8x1xf32>
    %442 = vector.broadcast %441 : vector<8x1xf32> to vector<8x32xf32>
    %443 = arith.mulf %433, %442 : vector<8x32xf32>
    %444 = vector.broadcast %426 : vector<1x32xf32> to vector<8x32xf32>
    %445 = arith.mulf %443, %444 : vector<8x32xf32>
    %446 = vector.broadcast %427 : vector<1x32xf32> to vector<8x32xf32>
    %447 = arith.addf %445, %446 : vector<8x32xf32>
    %448 = arith.truncf %447 : vector<8x32xf32> to vector<8x32xbf16>
    %c0_200 = arith.constant 0 : index
    %c0_201 = arith.constant 0 : index
    %449 = vector.load %arg12[%c0_200, %c0_201] : memref<32x64xbf16, #tpu.memory_space<vmem>>, vector<32x64xbf16>
    %cst_202 = arith.constant dense<0.000000e+00> : vector<8x64xf32>
    %450 = tpu.matmul %448, %449, %cst_202 {dimension_numbers = #tpu.dot_dimension_numbers<[1], [0], [0], [1], [0, 0, 1, 1], [], []>} : vector<8x32xbf16>, vector<32x64xbf16>, vector<8x64xf32> -> vector<8x64xf32>
    %c0_203 = arith.constant 0 : index
    %c0_204 = arith.constant 0 : index
    %451 = vector.load %arg13[%c0_203, %c0_204] : memref<1x64xf32, #tpu.memory_space<vmem>>, vector<1x64xf32>
    %452 = vector.broadcast %451 : vector<1x64xf32> to vector<8x64xf32>
    %453 = arith.addf %450, %452 : vector<8x64xf32>
    %cst_205 = arith.constant 0.000000e+00 : f32
    %454 = vector.broadcast %cst_205 : f32 to vector<8x64xf32>
    %455 = arith.maximumf %453, %454 : vector<8x64xf32>
    %456 = arith.truncf %455 : vector<8x64xf32> to vector<8x64xbf16>
    %c0_206 = arith.constant 0 : index
    %c0_207 = arith.constant 0 : index
    %457 = vector.load %arg14[%c0_206, %c0_207] : memref<64x32xbf16, #tpu.memory_space<vmem>>, vector<64x32xbf16>
    %cst_208 = arith.constant dense<0.000000e+00> : vector<8x32xf32>
    %458 = tpu.matmul %456, %457, %cst_208 {dimension_numbers = #tpu.dot_dimension_numbers<[1], [0], [0], [1], [0, 0, 1, 1], [], []>} : vector<8x64xbf16>, vector<64x32xbf16>, vector<8x32xf32> -> vector<8x32xf32>
    %c0_209 = arith.constant 0 : index
    %c0_210 = arith.constant 0 : index
    %459 = vector.load %arg15[%c0_209, %c0_210] : memref<1x32xf32, #tpu.memory_space<vmem>>, vector<1x32xf32>
    %460 = vector.broadcast %459 : vector<1x32xf32> to vector<8x32xf32>
    %461 = arith.addf %458, %460 : vector<8x32xf32>
    %462 = arith.addf %447, %461 : vector<8x32xf32>
    %463 = vector.extract_strided_slice %3 {offsets = [2, 0], sizes = [1, 32], strides = [1, 1]} : vector<4x32xf32> to vector<1x32xf32>
    %464 = vector.extract_strided_slice %4 {offsets = [2, 0], sizes = [1, 32], strides = [1, 1]} : vector<4x32xf32> to vector<1x32xf32>
    %cst_211 = arith.constant dense<0.000000e+00> : vector<8xf32>
    %465 = vector.multi_reduction <add>, %462, %cst_211 [1] : vector<8x32xf32> to vector<8xf32>
    %466 = vector.shape_cast %465 : vector<8xf32> to vector<8x1xf32>
    %cst_212 = arith.constant 3.200000e+01 : f32
    %467 = vector.broadcast %cst_212 : f32 to vector<8x1xf32>
    %468 = arith.divf %466, %467 : vector<8x1xf32>
    %469 = vector.broadcast %468 : vector<8x1xf32> to vector<8x32xf32>
    %470 = arith.subf %462, %469 : vector<8x32xf32>
    %471 = arith.mulf %470, %470 : vector<8x32xf32>
    %cst_213 = arith.constant dense<0.000000e+00> : vector<8xf32>
    %472 = vector.multi_reduction <add>, %471, %cst_213 [1] : vector<8x32xf32> to vector<8xf32>
    %473 = vector.shape_cast %472 : vector<8xf32> to vector<8x1xf32>
    %cst_214 = arith.constant 3.200000e+01 : f32
    %474 = vector.broadcast %cst_214 : f32 to vector<8x1xf32>
    %475 = arith.divf %473, %474 : vector<8x1xf32>
    %cst_215 = arith.constant 9.99999974E-6 : f32
    %476 = vector.broadcast %cst_215 : f32 to vector<8x1xf32>
    %477 = arith.addf %475, %476 : vector<8x1xf32>
    %478 = math.rsqrt %477 : vector<8x1xf32>
    %479 = vector.broadcast %478 : vector<8x1xf32> to vector<8x32xf32>
    %480 = arith.mulf %470, %479 : vector<8x32xf32>
    %481 = vector.broadcast %463 : vector<1x32xf32> to vector<8x32xf32>
    %482 = arith.mulf %480, %481 : vector<8x32xf32>
    %483 = vector.broadcast %464 : vector<1x32xf32> to vector<8x32xf32>
    %484 = arith.addf %482, %483 : vector<8x32xf32>
    %485 = arith.addf %304, %308 : vector<16x32xf32>
    %486 = arith.truncf %485 : vector<16x32xf32> to vector<16x32xbf16>
    %487 = arith.addf %484, %306 : vector<8x32xf32>
    %488 = arith.truncf %487 : vector<8x32xf32> to vector<8x32xbf16>
    %489 = arith.truncf %484 : vector<8x32xf32> to vector<8x32xbf16>
    %c0_216 = arith.constant 0 : index
    %c0_217 = arith.constant 0 : index
    %490 = vector.load %arg16[%c0_216, %c0_217] : memref<32x48xbf16, #tpu.memory_space<vmem>>, vector<32x16xbf16>
    %cst_218 = arith.constant dense<0.000000e+00> : vector<16x16xf32>
    %491 = tpu.matmul %486, %490, %cst_218 {dimension_numbers = #tpu.dot_dimension_numbers<[1], [0], [0], [1], [0, 0, 1, 1], [], []>} : vector<16x32xbf16>, vector<32x16xbf16>, vector<16x16xf32> -> vector<16x16xf32>
    %c0_219 = arith.constant 0 : index
    %c0_220 = arith.constant 0 : index
    %492 = vector.load %arg17[%c0_219, %c0_220] : memref<1x48xf32, #tpu.memory_space<vmem>>, vector<1x16xf32>
    %493 = vector.broadcast %492 : vector<1x16xf32> to vector<16x16xf32>
    %494 = arith.addf %491, %493 : vector<16x16xf32>
    %c0_221 = arith.constant 0 : index
    %c16_222 = arith.constant 16 : index
    %495 = vector.load %arg16[%c0_221, %c16_222] : memref<32x48xbf16, #tpu.memory_space<vmem>>, vector<32x16xbf16>
    %cst_223 = arith.constant dense<0.000000e+00> : vector<8x16xf32>
    %496 = tpu.matmul %488, %495, %cst_223 {dimension_numbers = #tpu.dot_dimension_numbers<[1], [0], [0], [1], [0, 0, 1, 1], [], []>} : vector<8x32xbf16>, vector<32x16xbf16>, vector<8x16xf32> -> vector<8x16xf32>
    %c0_224 = arith.constant 0 : index
    %c16_225 = arith.constant 16 : index
    %497 = vector.load %arg17[%c0_224, %c16_225] : memref<1x48xf32, #tpu.memory_space<vmem>>, vector<1x16xf32>
    %498 = vector.broadcast %497 : vector<1x16xf32> to vector<8x16xf32>
    %499 = arith.addf %496, %498 : vector<8x16xf32>
    %c0_226 = arith.constant 0 : index
    %c32_227 = arith.constant 32 : index
    %500 = vector.load %arg16[%c0_226, %c32_227] : memref<32x48xbf16, #tpu.memory_space<vmem>>, vector<32x16xbf16>
    %cst_228 = arith.constant dense<0.000000e+00> : vector<8x16xf32>
    %501 = tpu.matmul %489, %500, %cst_228 {dimension_numbers = #tpu.dot_dimension_numbers<[1], [0], [0], [1], [0, 0, 1, 1], [], []>} : vector<8x32xbf16>, vector<32x16xbf16>, vector<8x16xf32> -> vector<8x16xf32>
    %c0_229 = arith.constant 0 : index
    %c32_230 = arith.constant 32 : index
    %502 = vector.load %arg17[%c0_229, %c32_230] : memref<1x48xf32, #tpu.memory_space<vmem>>, vector<1x16xf32>
    %503 = vector.broadcast %502 : vector<1x16xf32> to vector<8x16xf32>
    %504 = arith.addf %501, %503 : vector<8x16xf32>
    %505 = tpu.concatenate %499, %499, %499, %499 in 0 : vector<8x16xf32>, vector<8x16xf32>, vector<8x16xf32>, vector<8x16xf32> -> vector<32x16xf32>
    %506 = arith.truncf %505 : vector<32x16xf32> to vector<32x16xbf16>
    %507 = arith.mulf %506, %1 : vector<32x16xbf16>
    %508 = tpu.concatenate %504, %504, %504, %504 in 0 : vector<8x16xf32>, vector<8x16xf32>, vector<8x16xf32>, vector<8x16xf32> -> vector<32x16xf32>
    %509 = arith.truncf %508 : vector<32x16xf32> to vector<32x16xbf16>
    %510 = arith.mulf %509, %1 : vector<32x16xbf16>
    %511 = arith.truncf %494 : vector<16x16xf32> to vector<16x16xbf16>
    %cst_231 = arith.constant dense<0.000000e+00> : vector<16x32xf32>
    %512 = tpu.matmul %511, %507, %cst_231 {dimension_numbers = #tpu.dot_dimension_numbers<[1], [1], [0], [0], [0, 0, 1, 0], [], []>} : vector<16x16xbf16>, vector<32x16xbf16>, vector<16x32xf32> -> vector<16x32xf32>
    %cst_232 = arith.constant 5.000000e-01 : f32
    %513 = vector.broadcast %cst_232 : f32 to vector<16x32xf32>
    %514 = arith.mulf %512, %513 : vector<16x32xf32>
    %515 = vector.extract_strided_slice %514 {offsets = [0, 0], sizes = [16, 8], strides = [1, 1]} : vector<16x32xf32> to vector<16x8xf32>
    %cst_233 = arith.constant dense<0xFF800000> : vector<16xf32>
    %516 = vector.multi_reduction <maximumf>, %515, %cst_233 [1] : vector<16x8xf32> to vector<16xf32>
    %517 = vector.shape_cast %516 : vector<16xf32> to vector<16x1xf32>
    %518 = vector.broadcast %517 : vector<16x1xf32> to vector<16x8xf32>
    %519 = arith.subf %515, %518 : vector<16x8xf32>
    %520 = math.exp %519 : vector<16x8xf32>
    %cst_234 = arith.constant dense<0.000000e+00> : vector<16xf32>
    %521 = vector.multi_reduction <add>, %520, %cst_234 [1] : vector<16x8xf32> to vector<16xf32>
    %522 = vector.shape_cast %521 : vector<16xf32> to vector<16x1xf32>
    %523 = tpu.reciprocal %522 {approx = true} : vector<16x1xf32> -> vector<16x1xf32>
    %524 = vector.broadcast %523 : vector<16x1xf32> to vector<16x8xf32>
    %525 = arith.mulf %520, %524 : vector<16x8xf32>
    %526 = vector.extract_strided_slice %514 {offsets = [0, 8], sizes = [16, 8], strides = [1, 1]} : vector<16x32xf32> to vector<16x8xf32>
    %cst_235 = arith.constant dense<0xFF800000> : vector<16xf32>
    %527 = vector.multi_reduction <maximumf>, %526, %cst_235 [1] : vector<16x8xf32> to vector<16xf32>
    %528 = vector.shape_cast %527 : vector<16xf32> to vector<16x1xf32>
    %529 = vector.broadcast %528 : vector<16x1xf32> to vector<16x8xf32>
    %530 = arith.subf %526, %529 : vector<16x8xf32>
    %531 = math.exp %530 : vector<16x8xf32>
    %cst_236 = arith.constant dense<0.000000e+00> : vector<16xf32>
    %532 = vector.multi_reduction <add>, %531, %cst_236 [1] : vector<16x8xf32> to vector<16xf32>
    %533 = vector.shape_cast %532 : vector<16xf32> to vector<16x1xf32>
    %534 = tpu.reciprocal %533 {approx = true} : vector<16x1xf32> -> vector<16x1xf32>
    %535 = vector.broadcast %534 : vector<16x1xf32> to vector<16x8xf32>
    %536 = arith.mulf %531, %535 : vector<16x8xf32>
    %537 = vector.extract_strided_slice %514 {offsets = [0, 16], sizes = [16, 8], strides = [1, 1]} : vector<16x32xf32> to vector<16x8xf32>
    %cst_237 = arith.constant dense<0xFF800000> : vector<16xf32>
    %538 = vector.multi_reduction <maximumf>, %537, %cst_237 [1] : vector<16x8xf32> to vector<16xf32>
    %539 = vector.shape_cast %538 : vector<16xf32> to vector<16x1xf32>
    %540 = vector.broadcast %539 : vector<16x1xf32> to vector<16x8xf32>
    %541 = arith.subf %537, %540 : vector<16x8xf32>
    %542 = math.exp %541 : vector<16x8xf32>
    %cst_238 = arith.constant dense<0.000000e+00> : vector<16xf32>
    %543 = vector.multi_reduction <add>, %542, %cst_238 [1] : vector<16x8xf32> to vector<16xf32>
    %544 = vector.shape_cast %543 : vector<16xf32> to vector<16x1xf32>
    %545 = tpu.reciprocal %544 {approx = true} : vector<16x1xf32> -> vector<16x1xf32>
    %546 = vector.broadcast %545 : vector<16x1xf32> to vector<16x8xf32>
    %547 = arith.mulf %542, %546 : vector<16x8xf32>
    %548 = vector.extract_strided_slice %514 {offsets = [0, 24], sizes = [16, 8], strides = [1, 1]} : vector<16x32xf32> to vector<16x8xf32>
    %cst_239 = arith.constant dense<0xFF800000> : vector<16xf32>
    %549 = vector.multi_reduction <maximumf>, %548, %cst_239 [1] : vector<16x8xf32> to vector<16xf32>
    %550 = vector.shape_cast %549 : vector<16xf32> to vector<16x1xf32>
    %551 = vector.broadcast %550 : vector<16x1xf32> to vector<16x8xf32>
    %552 = arith.subf %548, %551 : vector<16x8xf32>
    %553 = math.exp %552 : vector<16x8xf32>
    %cst_240 = arith.constant dense<0.000000e+00> : vector<16xf32>
    %554 = vector.multi_reduction <add>, %553, %cst_240 [1] : vector<16x8xf32> to vector<16xf32>
    %555 = vector.shape_cast %554 : vector<16xf32> to vector<16x1xf32>
    %556 = tpu.reciprocal %555 {approx = true} : vector<16x1xf32> -> vector<16x1xf32>
    %557 = vector.broadcast %556 : vector<16x1xf32> to vector<16x8xf32>
    %558 = arith.mulf %553, %557 : vector<16x8xf32>
    %559 = tpu.concatenate %525, %536, %547, %558 in 1 : vector<16x8xf32>, vector<16x8xf32>, vector<16x8xf32>, vector<16x8xf32> -> vector<16x32xf32>
    %560 = arith.truncf %559 : vector<16x32xf32> to vector<16x32xbf16>
    %cst_241 = arith.constant dense<0.000000e+00> : vector<16x16xf32>
    %561 = tpu.matmul %560, %510, %cst_241 {dimension_numbers = #tpu.dot_dimension_numbers<[1], [0], [0], [1], [0, 0, 1, 1], [], []>} : vector<16x32xbf16>, vector<32x16xbf16>, vector<16x16xf32> -> vector<16x16xf32>
    %562 = arith.truncf %561 : vector<16x16xf32> to vector<16x16xbf16>
    %c0_242 = arith.constant 0 : index
    %c0_243 = arith.constant 0 : index
    %563 = vector.load %arg18[%c0_242, %c0_243] : memref<16x32xbf16, #tpu.memory_space<vmem>>, vector<16x32xbf16>
    %cst_244 = arith.constant dense<0.000000e+00> : vector<16x32xf32>
    %564 = tpu.matmul %562, %563, %cst_244 {dimension_numbers = #tpu.dot_dimension_numbers<[1], [0], [0], [1], [0, 0, 1, 1], [], []>} : vector<16x16xbf16>, vector<16x32xbf16>, vector<16x32xf32> -> vector<16x32xf32>
    %c0_245 = arith.constant 0 : index
    %c0_246 = arith.constant 0 : index
    %565 = vector.load %arg19[%c0_245, %c0_246] : memref<1x32xf32, #tpu.memory_space<vmem>>, vector<1x32xf32>
    %566 = vector.broadcast %565 : vector<1x32xf32> to vector<16x32xf32>
    %567 = arith.addf %564, %566 : vector<16x32xf32>
    %568 = arith.addf %304, %567 : vector<16x32xf32>
    %569 = vector.extract_strided_slice %3 {offsets = [3, 0], sizes = [1, 32], strides = [1, 1]} : vector<4x32xf32> to vector<1x32xf32>
    %570 = vector.extract_strided_slice %4 {offsets = [3, 0], sizes = [1, 32], strides = [1, 1]} : vector<4x32xf32> to vector<1x32xf32>
    %cst_247 = arith.constant dense<0.000000e+00> : vector<16xf32>
    %571 = vector.multi_reduction <add>, %568, %cst_247 [1] : vector<16x32xf32> to vector<16xf32>
    %572 = vector.shape_cast %571 : vector<16xf32> to vector<16x1xf32>
    %cst_248 = arith.constant 3.200000e+01 : f32
    %573 = vector.broadcast %cst_248 : f32 to vector<16x1xf32>
    %574 = arith.divf %572, %573 : vector<16x1xf32>
    %575 = vector.broadcast %574 : vector<16x1xf32> to vector<16x32xf32>
    %576 = arith.subf %568, %575 : vector<16x32xf32>
    %577 = arith.mulf %576, %576 : vector<16x32xf32>
    %cst_249 = arith.constant dense<0.000000e+00> : vector<16xf32>
    %578 = vector.multi_reduction <add>, %577, %cst_249 [1] : vector<16x32xf32> to vector<16xf32>
    %579 = vector.shape_cast %578 : vector<16xf32> to vector<16x1xf32>
    %cst_250 = arith.constant 3.200000e+01 : f32
    %580 = vector.broadcast %cst_250 : f32 to vector<16x1xf32>
    %581 = arith.divf %579, %580 : vector<16x1xf32>
    %cst_251 = arith.constant 9.99999974E-6 : f32
    %582 = vector.broadcast %cst_251 : f32 to vector<16x1xf32>
    %583 = arith.addf %581, %582 : vector<16x1xf32>
    %584 = math.rsqrt %583 : vector<16x1xf32>
    %585 = vector.broadcast %584 : vector<16x1xf32> to vector<16x32xf32>
    %586 = arith.mulf %576, %585 : vector<16x32xf32>
    %587 = vector.broadcast %569 : vector<1x32xf32> to vector<16x32xf32>
    %588 = arith.mulf %586, %587 : vector<16x32xf32>
    %589 = vector.broadcast %570 : vector<1x32xf32> to vector<16x32xf32>
    %590 = arith.addf %588, %589 : vector<16x32xf32>
    %c1_252 = arith.constant 1 : index
    %c0_253 = arith.constant 0 : index
    %c0_254 = arith.constant 0 : index
    %591 = vector.load %arg25[%c1_252, %c0_253, %c0_254] : memref<2x8x32xf32, #tpu.memory_space<vmem>>, vector<1x8x32xf32>
    %592 = vector.shape_cast %591 : vector<1x8x32xf32> to vector<8x32xf32>
    %593 = vector.shape_cast %484 : vector<8x32xf32> to vector<1x8x32xf32>
    tpu.vector_store %arg25[%c1_252, %c0_253, %c0_254], %593 {strides = array<i32>} : memref<2x8x32xf32, #tpu.memory_space<vmem>>, vector<1x8x32xf32>,
    %c1_255 = arith.constant 1 : index
    %c0_256 = arith.constant 0 : index
    %c0_257 = arith.constant 0 : index
    %594 = vector.load %arg26[%c1_255, %c0_256, %c0_257] : memref<2x16x32xf32, #tpu.memory_space<vmem>>, vector<1x16x32xf32>
    %595 = vector.shape_cast %594 : vector<1x16x32xf32> to vector<16x32xf32>
    %596 = vector.shape_cast %590 : vector<16x32xf32> to vector<1x16x32xf32>
    tpu.vector_store %arg26[%c1_255, %c0_256, %c0_257], %596 {strides = array<i32>} : memref<2x16x32xf32, #tpu.memory_space<vmem>>, vector<1x16x32xf32>,
    return
  }
}

</mosaic_0001>

<bundles_post_ra>
// kernel: two_way_attention_block.1
= control target key start
LH: loop header
LB: loop body
LE: loop exit
PB: predicated region body
PF: predicated region fallthrough
CT: control target
= control target key end

     0   :  { %s5350_s0 = inlined_call_operand.vmem [shape: f32[2,8,32], index: 0, kind: input, shape index: {}]   ;;  %s5351_s1 = inlined_call_operand.vmem [shape: f32[2,16,32], index: 1, kind: input, shape index: {}]   ;;  %s5352_s2 = inlined_call_operand.vmem [shape: f32[2,8,32], index: 2, kind: input, shape index: {}]   ;;  %s5353_s3 = inlined_call_operand.vmem [shape: f32[2,16,32], index: 3, kind: input, shape index: {}]   ;;  %s5354_s4 = inlined_call_operand.vmem [shape: bf16[32,96], index: 4, kind: input, shape index: {}]   ;;  %s5355_s5 = inlined_call_operand.vmem [shape: f32[1,96], index: 5, kind: input, shape index: {}]   ;;  %s5356_s6 = inlined_call_operand.vmem [shape: bf16[32,32], index: 6, kind: input, shape index: {}]   ;;  %s5357_s7 = inlined_call_operand.vmem [shape: f32[1,32], index: 7, kind: input, shape index: {}]   ;;  %s5358_s8 = inlined_call_operand.vmem [shape: bf16[32,48], index: 8, kind: input, shape index: {}]   ;;  %s5359_s9 = inlined_call_operand.vmem [shape: f32[1,48], index: 9, kind: input, shape index: {}]   ;;  %s5360_s10 = inlined_call_operand.vmem [shape: bf16[16,32], index: 10, kind: input, shape index: {}]   ;;  %s5361_s11 = inlined_call_operand.vmem [shape: f32[1,32], index: 11, kind: input, shape index: {}]   ;;  %s5362_s12 = inlined_call_operand.vmem [shape: bf16[32,64], index: 12, kind: input, shape index: {}]   ;;  %s5363_s13 = inlined_call_operand.vmem [shape: f32[1,64], index: 13, kind: input, shape index: {}]   ;;  %s5364_s14 = inlined_call_operand.vmem [shape: bf16[64,32], index: 14, kind: input, shape index: {}]   ;;  %s5365_s15 = inlined_call_operand.vmem [shape: f32[1,32], index: 15, kind: input, shape index: {}]   ;;  %s5366_s16 = inlined_call_operand.vmem [shape: bf16[32,48], index: 16, kind: input, shape index: {}]   ;;  %s5367_s17 = inlined_call_operand.vmem [shape: f32[1,48], index: 17, kind: input, shape index: {}]   ;;  %s5368_s18 = inlined_call_operand.vmem [shape: bf16[16,32], index: 18, kind: input, shape index: {}]   ;;  %s5369_s19 = inlined_call_operand.vmem [shape: f32[1,32], index: 19, kind: input, shape index: {}]   ;;  %s5370_s20 = inlined_call_operand.vmem [shape: f32[4,32], index: 20, kind: input, shape index: {}]   ;;  %s5371_s21 = inlined_call_operand.vmem [shape: f32[4,32], index: 21, kind: input, shape index: {}]   ;;  %s5372_s22 = inlined_call_operand.vmem [shape: bf16[32,32], index: 22, kind: input, shape index: {}]   ;;  %s5373_s23 = inlined_call_operand.vmem [shape: bf16[32,16], index: 23, kind: input, shape index: {}]   ;;  %s5374_s24 = inlined_call_operand.vmem [shape: f32[8,32], index: 24, kind: input, shape index: {}]   ;;  %s5375_s25 = inlined_call_operand.hbm [shape: f32[2,8,32], index: 25, kind: output, shape index: {0}]   ;;  %s5376_s26 = inlined_call_operand.hbm [shape: f32[2,16,32], index: 26, kind: output, shape index: {1}]  }
   0x1   :  { %5393 = sst [smem:[#allocation8_spill]] %s5350_s0 }
   0x2   :  { %5394 = sst [smem:[#allocation9_spill]] %s5351_s1 }
   0x3   :  { %5395 = sst [smem:[#allocation10_spill]] %s5352_s2 }
   0x4   :  { %5396 = sst [smem:[#allocation11_spill]] %s5353_s3 }
   0x5   :  { %5397 = sst [smem:[#allocation12_spill]] %s5354_s4 }
   0x6   :  { %5398 = sst [smem:[#allocation13_spill]] %s5355_s5 }
   0x7   :  { %5399 = sst [smem:[#allocation14_spill]] %s5356_s6 }
   0x8   :  { %5400 = sst [smem:[#allocation15_spill]] %s5357_s7 }
   0x9   :  { %5401 = sst [smem:[#allocation16_spill]] %s5358_s8 }
   0xa   :  { %5402 = sst [smem:[#allocation17_spill]] %s5359_s9 }
   0xb   :  { %5403 = sst [smem:[#allocation18_spill]] %s5360_s10 }
   0xc   :  { %5404 = sst [smem:[#allocation19_spill]] %s5369_s19 }
   0xd   :  { %5405 = sst [smem:[#allocation20_spill]] %s5375_s25 }
   0xe   :  { %5406 = sst [smem:[#allocation21_spill]] %s5376_s26 }
   0xf   :  { %32 = vsyncpa [#allocation3], 0  ;;  %s5407_s7 = sld [smem:[#allocation12_spill]]  ;;  %v4284_v1 = vmov 0.0   ;;  %vm4285_vm0 = vmmov 0   ;;  %s5408_s0 = sld [smem:[#allocation8_spill]] }
  0x10   :  { %3667 = vmatprep.subr.bf16.mxu0 %v4284_v1  ;;  %3675 = vmatprep.subr.bf16.mxu1 %v4284_v1  ;;  %s5409_s2 = sld [smem:[#allocation10_spill]]  ;;  %vm127_vm1 = vcmask 261120  }
  0x11   :  { %3671 = vmatprep.mubr.msk.bf16.mxu0 %vm4285_vm0, %v4284_v1  ;;  %3679 = vmatprep.mubr.msk.bf16.mxu1 %vm4285_vm0, %v4284_v1 }
  0x15   :  { %v4041_v0 = vld [vmem:[%s5407_s7] sm:$0xff]   ;;  %v4042_v2 = vld [vmem:[%s5407_s7 + $0x8] sm:$0xff]  }
  0x16   :  { %3668 = vmatpush3.bf16.msra.mxu0 %v4041_v0  ;;  %v4444_v3 = vld [vmem:[%s5408_s0] sm:$0xff] }
  0x17   :  { %v4449_v4 = vld [vmem:[%s5409_s2] sm:$0xff]  ;;  %3669 = vmatprep.subr.bf16.mxu0 %v4284_v1 }
  0x18   :  { %v102_v5 = vadd.f32 %v4449_v4, %v4444_v3 }
  0x1a   :  { %v103_v6 = vpack.c.bf16 %v102_v5, %v102_v5  ;;  %3670 = vmatpush3.bf16.msra.mxu0 %v4042_v2 }
  0x1d   :  { %3672 = vmatmul.mubr.msk.bf16.vlgmr.msra.gmra.mrb[0].mxu0 %vm127_vm1, %v103_v6 }
  0x1e   :  { %33 = vsyncpa [#allocation5], 0  ;;  %v4460_v7 = vld [vmem:[%s5372_s22] sm:$0xff]   ;;  %s5410_s27 = sld [smem:[#allocation13_spill]]  ;;  %s5388_s3 = smov 64   ;;  %v4476_v16 = vld [vmem:[%s5372_s22 + $0x8] sm:$0xff]   ;;  %v171_v22 = vpack.c.bf16 %v4444_v3, %v4444_v3 }
  0x1f   :  { %174 = vrot.lane.b32.xlu1 %v4042_v2, %s5388_s3  ;;  %s4287_s28 = smov 96   ;;  %vm304_vm2 = vcmask 64512   ;;  %vm358_vm3 = vcmask 1043456   ;;  %s5411_s9 = sld [smem:[#allocation14_spill]]  ;;  %vm778_vm4 = vcmask 130048   ;;  %vm1212_vm5 = vcmask 523264  }
  0x20   :  { %s5412_s4 = sld [smem:[#allocation15_spill]]  ;;  %s5413_s30 = sld [smem:[#allocation16_spill]]  ;;  %vm1563_vm6 = vcmask 195712   ;;  %vm1532_vm7 = vcmask 130112   ;;  %vm1594_vm8 = vcmask 261312   ;;  %vm1629_vm9 = vcmask 195584  }
  0x21   :  { %s4289_s6 = smov 112   ;;  %s5414_s22 = sld [smem:[#allocation17_spill]] }
  0x22   :  { %s5415_s10 = sld [smem:[#allocation9_spill]]  ;;  %s5416_s8 = sld [smem:[#allocation11_spill]] }
  0x23   :  { %s5417_s25 = sld [smem:[#allocation18_spill]]  ;;  %s5418_s29 = smov 64  }
  0x24   :  { %v4465_v8 = vld [vmem:[%s5410_s27] ss:$0 sm:$0xff]  ;;  %s5419_s26 = sld [smem:[#allocation17_spill]] }
  0x91   :  { %v175_v21 = vpop.permute.xlu1 %174 }
  0xf0   :  { %v165_v9 = vpop.f32.mrb[0].mxu0 }
  0xf1   :  { %v166_v10 = vadd.f32 %v4465_v8, %v165_v9  ;;  %v3673_v11 = vpop.f32.mrb[1].mxu0 }
  0xf2   :  { %v168_v12 = vpop.f32.mrb[2].mxu0 }
  0xf3   :  { %v224_v13 = vpack.c.bf16 %v166_v10, %v166_v10  ;;  %v3674_v14 = vpop.f32.mrb[3].mxu0 }
  0xf5   :  { %v237_v15 = vmul.bf16 %v224_v13, %v4460_v7  ;;  %240 = vrot.lane.b32.xlu0 %v224_v13, %s4287_s28  ;;  %v238_v19 = vmul.bf16 %v224_v13, %v4476_v16 }
  0xf7   :  { %3685 = vmatprep.mubr.msk.bf16.mxu0 %vm127_vm1, %v237_v15 }
  0xf9   :  { %172 = vrot.lane.b32.xlu0 %v4041_v0, %s5388_s3 }
 0x167   :  { %v241_v17 = vpop.permute.xlu0 %240 }
 0x168   :  { %4023 = vmatprep.subr.msk.bf16.mxu0 %vm127_vm1, %v241_v17  ;;  %v249_v18 = vsel %vm127_vm1, %v241_v17, 0 }
 0x169   :  { %3684 = vmatpush3.bf16.xpose.msra.mxu0 %v249_v18  ;;  %v4288_v18 = vmov 0.0|0.0  }
 0x16a   :  { %3999 = vmatprep.subr.bf16.mxu0 %v4288_v18 }
 0x16b   :  { %v173_v20 = vpop.permute.xlu0 %172 }
 0x16c   :  { %3676 = vmatpush3.bf16.msra.mxu1 %v173_v20  ;;  %v413_v20 = vunpack.c.l.bf16 %v4476_v16 }
 0x16d   :  { %3677 = vmatprep.subr.bf16.mxu1 %v4284_v1 }
 0x170   :  { %3686 = vmatmul.mubr.msk.bf16.vlgmr.msra.gmra.mrb[4].mxu0 %vm127_vm1, %v238_v19  ;;  %3678 = vmatpush3.bf16.msra.mxu1 %v175_v21  ;;  %v4045_v19 = vld [vmem:[%s5411_s9] sm:$0xff]   ;;  %v414_v21 = vunpack.c.h.bf16 %v4476_v16 }
 0x171   :  { %3703 = vmatprep.mubr.msk.f32.mxu0 %vm4285_vm0, %v4284_v1 }
 0x173   :  { %3680 = vmatmul.mubr.msk.bf16.vlgmr.msra.gmra.mrb[0].mxu1 %vm127_vm1, %v171_v22 }
 0x243   :  { %v3687_v23 = vpop.f32.mrb[4].mxu0 }
 0x244   :  { %v285_v24 = vpop.f32.mrb[5].mxu0  ;;  %v302_v31 = vmul.f32 0.35355338, %v3687_v23  ;;  %v411_v23 = vunpack.c.l.bf16 %v4460_v7 }
 0x245   :  { %v300_v25 = vmul.f32 0.35355338, %v285_v24  ;;  %v3688_v26 = vpop.f32.mrb[6].mxu0  ;;  %v412_v24 = vunpack.c.h.bf16 %v4460_v7 }
 0x246   :  { %v288_v27 = vpop.f32.mrb[7].mxu0  ;;  %v303_v28 = vmul.f32 0.35355338, %v3688_v26  ;;  %v311_v34 = vsel %vm304_vm2, %v302_v31, -inf  ;;  %v218_v55 = vpop.f32.mrb[0].mxu1 }
 0x247   :  { %v301_v29 = vmul.f32 0.35355338, %v288_v27  ;;  %v305_v30 = vsel %vm304_vm2, %v300_v25, -inf  ;;  %v3681_v56 = vpop.f32.mrb[1].mxu1 }
 0x248   :  { %306 = vmax.xlane.f32.xlu1 %v305_v30  ;;  %v314_v33 = vsel %vm304_vm2, %v303_v28, -inf  ;;  %v221_v57 = vpop.f32.mrb[2].mxu1 }
 0x249   :  { %v308_v32 = vsel %vm304_vm2, %v301_v29, -inf  ;;  %v3682_v58 = vpop.f32.mrb[3].mxu1  ;;  %v98_v57 = vld [vmem:[%s5415_s10 + $0x8] sm:$0xff] }
 0x24a   :  { %309 = vmax.xlane.f32.xlu0 %v308_v32  ;;  %v100_v58 = vld [vmem:[%s5416_s8] sm:$0xff] }
 0x24c   :  { %315 = vmax.xlane.f32.xlu1 %v314_v33 }
 0x24e   :  { %312 = vmax.xlane.f32.xlu0 %v311_v34  ;;  %v4526_v34 = vld [vmem:[%s5374_s24] sm:$0xff] }
 0x2d5   :  { %v307_v35 = vpop.xlane.xlu1 %306 }
 0x2d6   :  { %v317_v39 = vsub.f32 %v300_v25, %v307_v35  ;;  %v4046_v35 = vld [vmem:[%s5411_s9 + $0x8] sm:$0xff]  }
 0x2d7   :  { %v310_v36 = vpop.xlane.xlu0 %309 }
 0x2d8   :  { %v318_v37 = vsub.f32 %v301_v29, %v310_v36  ;;  %v321_v45 = vmul.f32 1.442695, %v317_v39  ;;  %v3437_v39 = vld [vmem:[%s5412_s4] ss:$0 sm:$0xff] }
 0x2d9   :  { %v316_v38 = vpop.xlane.xlu1 %315 }
 0x2da   :  { %v323_v40 = vmul.f32 1.442695, %v318_v37  ;;  %v320_v41 = vsub.f32 %v303_v28, %v316_v38 }
 0x2db   :  { %v313_v42 = vpop.xlane.xlu0 %312 }
 0x2dc   :  { %4081 = vpow2.f32 %v323_v40  ;;  %v327_v43 = vmul.f32 1.442695, %v320_v41  ;;  %v319_v44 = vsub.f32 %v302_v31, %v313_v42 }
 0x2de   :  { %4083 = vpow2.f32 %v327_v43  ;;  %v325_v46 = vmul.f32 1.442695, %v319_v44 }
 0x2e0   :  { %4085 = vpow2.f32 %v325_v46 }
 0x2e1   :  { %4087 = vpow2.f32 %v321_v45 }
 0x2e6   :  { %v4082_v47 = vpop.eup %4081 }
 0x2e7   :  { %v332_v48 = vsel %vm304_vm2, %v4082_v47, 0.0 }
 0x2e8   :  { %v4084_v49 = vpop.eup %4083  ;;  %333 = vadd.xlane.f32.xlu1 %v332_v48  ;;  %v4048_v48 = vld [vmem:[%s5413_s30 + $0x8] sm:$0xff]  }
 0x2e9   :  { %v338_v51 = vsel %vm304_vm2, %v4084_v49, 0.0 }
 0x2ea   :  { %v4086_v50 = vpop.eup %4085 }
 0x2eb   :  { %v335_v52 = vsel %vm304_vm2, %v4086_v50, 0.0  ;;  %v4088_v53 = vpop.eup %4087 }
 0x2ec   :  { %339 = vadd.xlane.f32.xlu1 %v338_v51  ;;  %336 = vadd.xlane.f32.xlu0 %v335_v52  ;;  %v329_v54 = vsel %vm304_vm2, %v4088_v53, 0.0 }
 0x2f0   :  { %330 = vadd.xlane.f32.xlu0 %v329_v54 }
 0x306   :  { %178 = vrot.lane.b32.xlu0 %v4465_v8, %s5388_s3 }
 0x30a   :  { %658 = vrot.lane.b32.xlu0 %v4048_v48, %s4289_s6 }
 0x375   :  { %v334_v59 = vpop.xlane.xlu1 %333 }
 0x379   :  { %v340_v60 = vpop.xlane.xlu1 %339  ;;  %v337_v61 = vpop.xlane.xlu0 %336 }
 0x37a   :  { %4089 = vrcp.f32 %v340_v60  ;;  %v574_v60 = vlaneseq }
 0x37b   :  { %4091 = vrcp.f32 %v337_v61 }
 0x37c   :  { %4093 = vrcp.f32 %v334_v59  ;;  %v101_v59 = vld [vmem:[%s5416_s8 + $0x8] sm:$0xff] }
 0x37d   :  { %v331_v62 = vpop.xlane.xlu0 %330 }
 0x37e   :  { %4095 = vrcp.f32 %v331_v62 }
 0x381   :  { %v179_v63 = vpop.permute.xlu0 %178 }
 0x382   :  { %v219_v0 = vadd.f32 %v218_v55, %v179_v63  ;;  %v4568_v55 = vld [vmem:[%s5415_s10] sm:$0xff] }
 0x383   :  { %v586_v63 = vadd.f32 %v100_v58, %v4568_v55 }
 0x384   :  { %v4090_v2 = vpop.eup %4089  ;;  %v351_v5 = vpack.c.bf16 %v219_v0, %v219_v0  ;;  %v587_v0 = vadd.f32 %v101_v59, %v98_v57 }
 0x385   :  { %v4092_v6 = vpop.eup %4091  ;;  %v348_v11 = vmul.f32 %v4090_v2, %v4084_v49  ;;  %v4580_v2 = vshrl.u32 %v574_v60, 7 }
 0x386   :  { %v4094_v9 = vpop.eup %4093  ;;  %4024 = vmatprep.subr.msk.bf16.mxu1 %vm358_vm3, %v351_v5  ;;  %v360_v8 = vsel %vm358_vm3, %v351_v5, 0  ;;  %v347_v12 = vmul.f32 %v4092_v6, %v4086_v50  ;;  %v659_v5 = vpop.permute.xlu0 %658  ;;  %v4583_v6 = vpack.c.bf16 %v587_v0, %v586_v63 }
 0x387   :  { %3690 = vmatpush3.bf16.msra.mxu1 %v360_v8  ;;  %v346_v14 = vmul.f32 %v4094_v9, %v4082_v47  ;;  %v4047_v47 = vld [vmem:[%s5413_s30] sm:$0xff]   ;;  %v576_v9 = vsub.s32 0, %v4580_v2 }
 0x388   :  { %v4096_v10 = vpop.eup %4095  ;;  %3706 = vmatprep.subr.bf16.mxu1 %v4284_v1  ;;  %v350_v17 = vpack.c.bf16 %v348_v11, %v347_v12  ;;  %v4589_v8 = vld [vmem:[%s5370_s20] sm:$0xf] }
 0x389   :  { %v345_v13 = vmul.f32 %v4096_v10, %v4088_v53  ;;  %v4560_v53 = vld [vmem:[%s5414_s22] ss:$0 sm:$0xff]  ;;  %v4599_v11 = vrot.slane %v4589_v8, %v576_v9 }
 0x38a   :  { %662 = vrot.lane.b32.xlu0 %v4560_v53, %s4289_s6  ;;  %v4596_v10 = vld [vmem:[%s5371_s21] sm:$0xf] }
 0x38b   :  { %v349_v15 = vpack.c.bf16 %v346_v14, %v345_v13  ;;  %v4602_v14 = vrot.slane %v4596_v10, %v576_v9 }
 0x38d   :  { %3691 = vmatprep.mubr.msk.bf16.mxu1 %vm304_vm2, %v349_v15 }
 0x38e   :  { %3692 = vmatmul.mubr.msk.bf16.vlgmr.msra.gmra.mrb[4].mxu1 %vm304_vm2, %v350_v17  ;;  %711 = vrot.lane.b32.xlu0 %v4048_v48, %s4287_s28 }
 0x38f   :  { %3710 = vmatprep.mubr.msk.bf16.mxu1 %vm4285_vm0, %v4284_v1  ;;  %3707 = vmatpush3.bf16.msra.mxu1 %v4045_v19 }
 0x390   :  { %3708 = vmatprep.subr.bf16.mxu1 %v4284_v1 }
 0x393   :  { %3709 = vmatpush3.bf16.msra.mxu1 %v4046_v35  ;;  %v4624_v35 = vld [vmem:[%s5373_s23 + $0x8] sm:$0xff]  }
 0x394   :  { %3722 = vmatprep.subr.bf16.mxu1 %v4284_v1 }
 0x461   :  { %v3693_v22 = vpop.f32.mrb[4].mxu1 }
 0x462   :  { %v396_v25 = vpop.f32.mrb[5].mxu1  ;;  %v417_v27 = vmul.f32 %v3693_v22, %v413_v20 }
 0x463   :  { %v3694_v26 = vpop.f32.mrb[6].mxu1  ;;  %v415_v30 = vmul.f32 %v411_v23, %v396_v25  ;;  %v663_v25 = vpop.permute.xlu0 %662 }
 0x464   :  { %v418_v28 = vmul.f32 %v3694_v26, %v414_v21  ;;  %v399_v29 = vpop.f32.mrb[7].mxu1 }
 0x465   :  { %v416_v31 = vmul.f32 %v412_v24, %v399_v29 }
 0x466   :  { %v4003_v32 = vpack.c.bf16 %v418_v28, %v417_v27 }
 0x467   :  { %v4000_v33 = vpack.c.bf16 %v416_v31, %v415_v30 }
 0x469   :  { %4001 = vmatpush3.bf16.msra.mxu0 %v4000_v33 }
 0x46a   :  { %4002 = vmatprep.subr.bf16.mxu0 %v4288_v18 }
 0x46d   :  { %4004 = vmatpush3.bf16.msra.mxu0 %v4003_v32 }
 0x46e   :  { %3714 = vmatprep.subr.bf16.mxu0 %v4284_v1 }
 0x470   :  { %3704 = vmatmul.mubr.msk.f32.vlgmr.msra.gmra.mrb[8].mxu0 %vm127_vm1, %v4526_v34 }
 0x471   :  { %3718 = vmatprep.mubr.msk.bf16.mxu0 %vm4285_vm0, %v4284_v1  ;;  %3715 = vmatpush3.bf16.msra.mxu0 %v4047_v47 }
 0x472   :  { %3716 = vmatprep.subr.bf16.mxu0 %v4284_v1 }
 0x475   :  { %3717 = vmatpush3.bf16.msra.mxu0 %v4048_v48 }
 0x476   :  { %3730 = vmatprep.subr.bf16.mxu0 %v4284_v1 }
 0x543   :  { %v488_v36 = vpop.f32.mrb[8].mxu0 }
 0x544   :  { %v492_v37 = vpack.c.bf16 %v488_v36, %v488_v36  ;;  %v3705_v38 = vpop.f32.mrb[9].mxu0 }
 0x546   :  { %3711 = vmatmul.mubr.msk.bf16.vlgmr.msra.gmra.mrb[8].mxu1 %vm127_vm1, %v492_v37 }
 0x547   :  { %3726 = vmatprep.mubr.msk.bf16.mxu1 %vm4285_vm0, %v4284_v1 }
 0x619   :  { %v553_v40 = vpop.f32.mrb[8].mxu1 }
 0x61a   :  { %v554_v41 = vadd.f32 %v3437_v39, %v553_v40  ;;  %v3712_v42 = vpop.f32.mrb[9].mxu1 }
 0x61b   :  { %v556_v43 = vpop.f32.mrb[10].mxu1 }
 0x61c   :  { %v3713_v44 = vpop.f32.mrb[11].mxu1  ;;  %v559_v45 = vadd.f32 %v554_v41, %v4444_v3 }
 0x61e   :  { %v560_v46 = vsel %vm127_vm1, %v559_v45, 0.0 }
 0x61f   :  { %561 = vadd.xlane.f32.xlu1 %v560_v46  ;;  %v589_v46 = vpack.c.bf16 %v98_v57, %v4568_v55 }
 0x6ac   :  { %v562_v3 = vpop.xlane.xlu1 %561 }
 0x6ad   :  { %v564_v49 = vmul.f32 0.03125, %v562_v3 }
 0x6af   :  { %v565_v50 = vsub.f32 %v559_v45, %v564_v49  ;;  %v712_v45 = vpop.permute.xlu0 %711 }
 0x6b1   :  { %v566_v51 = vmul.f32 %v565_v50, %v565_v50 }
 0x6b3   :  { %v567_v52 = vsel %vm127_vm1, %v566_v51, 0.0 }
 0x6b4   :  { %568 = vadd.xlane.f32.xlu1 %v567_v52 }
 0x6c5   :  { %656 = vrot.lane.b32.xlu1 %v4047_v47, %s4289_s6 }
 0x6c9   :  { %709 = vrot.lane.b32.xlu1 %v4047_v47, %s4287_s28 }
 0x741   :  { %v569_v54 = vpop.xlane.xlu1 %568 }
 0x742   :  { %v570_v56 = vmul.f32 0.03125, %v569_v54 }
 0x744   :  { %v571_v61 = vadd.f32 1e-05, %v570_v56 }
 0x745   :  { %v657_v62 = vpop.permute.xlu1 %656 }
 0x746   :  { %4097 = vrsqrt.f32 %v571_v61  ;;  %3723 = vmatpush3.bf16.msra.mxu1 %v657_v62 }
 0x747   :  { %3724 = vmatprep.subr.bf16.mxu1 %v4284_v1 }
 0x749   :  { %v710_v44 = vpop.permute.xlu1 %709 }
 0x74a   :  { %3725 = vmatpush3.bf16.msra.mxu1 %v659_v5 }
 0x74d   :  { %3727 = vmatmul.mubr.msk.bf16.vlgmr.msra.gmra.mrb[12].mxu1 %vm127_vm1, %v4583_v6 }
 0x750   :  { %v4098_v12 = vpop.eup %4097 }
 0x751   :  { %v573_v13 = vmul.f32 %v4098_v12, %v565_v50 }
 0x753   :  { %v578_v15 = vmul.f32 %v4599_v11, %v573_v13 }
 0x755   :  { %v4606_v17 = vadd.f32 %v4602_v14, %v578_v15 }
 0x757   :  { %v584_v19 = vadd.f32 %v4606_v17, %v4449_v4  ;;  %v4619_v4 = vld [vmem:[%s5373_s23] sm:$0xff]  }
 0x759   :  { %v585_v22 = vpack.c.bf16 %v584_v19, %v584_v19 }
 0x75b   :  { %3719 = vmatmul.mubr.msk.bf16.vlgmr.msra.gmra.mrb[12].mxu0 %vm127_vm1, %v585_v22 }
 0x75c   :  { %3734 = vmatprep.mubr.msk.bf16.mxu0 %vm4285_vm0, %v4284_v1  ;;  %3731 = vmatpush3.bf16.msra.mxu0 %v710_v44 }
 0x75d   :  { %3732 = vmatprep.subr.bf16.mxu0 %v4284_v1 }
 0x760   :  { %3733 = vmatpush3.bf16.msra.mxu0 %v712_v45 }
 0x763   :  { %3735 = vmatmul.mubr.msk.bf16.vlgmr.msra.gmra.mrb[16].mxu0 %vm127_vm1, %v589_v46 }
 0x820   :  { %v702_v26 = vpop.f32.mrb[12].mxu1 }
 0x821   :  { %v3728_v27 = vpop.f32.mrb[13].mxu1  ;;  %v703_v28 = vadd.f32 %v702_v26, %v663_v25 }
 0x822   :  { %v705_v29 = vpop.f32.mrb[14].mxu1 }
 0x823   :  { %v3729_v30 = vpop.f32.mrb[15].mxu1  ;;  %v706_v31 = vadd.f32 %v705_v29, %v663_v25 }
 0x825   :  { %v777_v32 = vpack.c.bf16 %v706_v31, %v703_v28 }
 0x827   :  { %4025 = vmatprep.subr.msk.bf16.mxu1 %vm778_vm4, %v777_v32  ;;  %v786_v33 = vsel %vm778_vm4, %v777_v32, 0 }
 0x828   :  { %3739 = vmatpush3.bf16.xpose.msra.mxu1 %v786_v33 }
 0x829   :  { %4005 = vmatprep.subr.bf16.mxu1 %v4288_v18 }
 0x82e   :  { %v650_v36 = vpop.f32.mrb[12].mxu0 }
 0x82f   :  { %v651_v37 = vadd.f32 %v4560_v53, %v650_v36  ;;  %v3720_v38 = vpop.f32.mrb[13].mxu0 }
 0x830   :  { %v653_v39 = vpop.f32.mrb[14].mxu0 }
 0x831   :  { %v762_v40 = vpack.c.bf16 %v651_v37, %v651_v37  ;;  %v3721_v41 = vpop.f32.mrb[15].mxu0 }
 0x833   :  { %v775_v42 = vmul.bf16 %v762_v40, %v4619_v4  ;;  %v776_v43 = vmul.bf16 %v762_v40, %v4624_v35 }
 0x835   :  { %3740 = vmatprep.mubr.msk.bf16.mxu1 %vm778_vm4, %v775_v42 }
 0x836   :  { %3741 = vmatmul.mubr.msk.bf16.vlgmr.msra.gmra.mrb[16].mxu1 %vm778_vm4, %v776_v43  ;;  %v755_v32 = vpop.f32.mrb[16].mxu0 }
 0x837   :  { %3758 = vmatprep.mubr.msk.f32.mxu1 %vm4285_vm0, %v4284_v1  ;;  %v3736_v33 = vpop.f32.mrb[17].mxu0 }
 0x838   :  { %v758_v36 = vpop.f32.mrb[18].mxu0 }
 0x839   :  { %v3737_v37 = vpop.f32.mrb[19].mxu0 }
 0x909   :  { %v3742_v47 = vpop.f32.mrb[16].mxu1 }
 0x90a   :  { %v822_v48 = vpop.f32.mrb[17].mxu1  ;;  %v839_v56 = vmul.f32 0.5, %v3742_v47 }
 0x90b   :  { %v837_v3 = vmul.f32 0.5, %v822_v48  ;;  %v3743_v49 = vpop.f32.mrb[18].mxu1 }
 0x90c   :  { %v825_v50 = vpop.f32.mrb[19].mxu1  ;;  %v840_v51 = vmul.f32 0.5, %v3743_v49  ;;  %v847_v55 = vsel %vm778_vm4, %v839_v56, -inf }
 0x90d   :  { %v838_v52 = vmul.f32 0.5, %v825_v50  ;;  %v841_v54 = vsel %vm778_vm4, %v837_v3, -inf }
 0x90e   :  { %842 = vmax.xlane.f32.xlu1 %v841_v54  ;;  %v850_v59 = vsel %vm778_vm4, %v840_v51, -inf }
 0x90f   :  { %v844_v58 = vsel %vm778_vm4, %v838_v52, -inf }
 0x910   :  { %845 = vmax.xlane.f32.xlu0 %v844_v58  ;;  %v946_v58 = vunpack.c.h.bf16 %v4624_v35 }
 0x912   :  { %851 = vmax.xlane.f32.xlu1 %v850_v59 }
 0x914   :  { %848 = vmax.xlane.f32.xlu0 %v847_v55  ;;  %v943_v55 = vunpack.c.l.bf16 %v4619_v4 }
 0x99b   :  { %v843_v57 = vpop.xlane.xlu1 %842 }
 0x99c   :  { %v853_v63 = vsub.f32 %v837_v3, %v843_v57  ;;  %v944_v57 = vunpack.c.h.bf16 %v4619_v4 }
 0x99d   :  { %v846_v60 = vpop.xlane.xlu0 %845 }
 0x99e   :  { %v854_v61 = vsub.f32 %v838_v52, %v846_v60  ;;  %v857_v15 = vmul.f32 1.442695, %v853_v63 }
 0x99f   :  { %v852_v62 = vpop.xlane.xlu1 %851 }
 0x9a0   :  { %v859_v0 = vmul.f32 1.442695, %v854_v61  ;;  %v856_v5 = vsub.f32 %v840_v51, %v852_v62 }
 0x9a1   :  { %v849_v9 = vpop.xlane.xlu0 %848 }
 0x9a2   :  { %4099 = vpow2.f32 %v859_v0  ;;  %v863_v12 = vmul.f32 1.442695, %v856_v5  ;;  %v855_v13 = vsub.f32 %v839_v56, %v849_v9  ;;  %v945_v56 = vunpack.c.l.bf16 %v4624_v35 }
 0x9a4   :  { %4101 = vpow2.f32 %v863_v12  ;;  %v861_v19 = vmul.f32 1.442695, %v855_v13 }
 0x9a6   :  { %4103 = vpow2.f32 %v861_v19 }
 0x9a7   :  { %4105 = vpow2.f32 %v857_v15  ;;  %v4051_v15 = vld [vmem:[%s5417_s25] sm:$0xff]  }
 0x9ac   :  { %v4100_v22 = vpop.eup %4099 }
 0x9ad   :  { %v868_v25 = vsel %vm778_vm4, %v4100_v22, 0.0 }
 0x9ae   :  { %v4102_v26 = vpop.eup %4101  ;;  %869 = vadd.xlane.f32.xlu1 %v868_v25 }
 0x9af   :  { %v874_v28 = vsel %vm778_vm4, %v4102_v26, 0.0 }
 0x9b0   :  { %v4104_v27 = vpop.eup %4103 }
 0x9b1   :  { %v871_v29 = vsel %vm778_vm4, %v4104_v27, 0.0  ;;  %v4106_v30 = vpop.eup %4105 }
 0x9b2   :  { %875 = vadd.xlane.f32.xlu1 %v874_v28  ;;  %872 = vadd.xlane.f32.xlu0 %v871_v29  ;;  %v865_v31 = vsel %vm778_vm4, %v4106_v30, 0.0 }
 0x9b6   :  { %866 = vadd.xlane.f32.xlu0 %v865_v31 }
 0x9cc   :  { %715 = vrot.lane.b32.xlu0 %v4560_v53, %s4287_s28 }
 0xa3b   :  { %v870_v38 = vpop.xlane.xlu1 %869 }
 0xa3f   :  { %v876_v39 = vpop.xlane.xlu1 %875  ;;  %v873_v40 = vpop.xlane.xlu0 %872 }
 0xa40   :  { %4107 = vrcp.f32 %v876_v39 }
 0xa41   :  { %4109 = vrcp.f32 %v873_v40  ;;  %v4052_v40 = vld [vmem:[%s5362_s12] sm:$0xff]  }
 0xa42   :  { %4111 = vrcp.f32 %v870_v38 }
 0xa43   :  { %v867_v41 = vpop.xlane.xlu0 %866 }
 0xa44   :  { %4113 = vrcp.f32 %v867_v41  ;;  %v4053_v41 = vld [vmem:[%s5362_s12 + $0x8] sm:$0xff]  }
 0xa47   :  { %v716_v42 = vpop.permute.xlu0 %715 }
 0xa48   :  { %v756_v43 = vadd.f32 %v755_v32, %v716_v42  ;;  %v759_v44 = vadd.f32 %v758_v36, %v716_v42  ;;  %v4055_v42 = vld [vmem:[%s5364_s14 + $0x8] sm:$0xff]  }
 0xa4a   :  { %v4108_v45 = vpop.eup %4107  ;;  %v887_v46 = vpack.c.bf16 %v759_v44, %v756_v43 }
 0xa4b   :  { %v4110_v47 = vpop.eup %4109  ;;  %v884_v49 = vmul.f32 %v4108_v45, %v4102_v26 }
 0xa4c   :  { %v4112_v48 = vpop.eup %4111  ;;  %3744 = vmatprep.subr.bf16.mxu0 %v887_v46  ;;  %v883_v53 = vmul.f32 %v4110_v47, %v4104_v27 }
 0xa4d   :  { %3745 = vmatpush3.bf16.msra.mxu0 %v887_v46  ;;  %v882_v51 = vmul.f32 %v4112_v48, %v4100_v22  ;;  %v1096_v46 = vsub.s32 1, %v4580_v2 }
 0xa4e   :  { %v4114_v3 = vpop.eup %4113  ;;  %3767 = vmatprep.subr.bf16.mxu0 %v4284_v1  ;;  %v886_v54 = vpack.c.bf16 %v884_v49, %v883_v53 }
 0xa4f   :  { %v881_v50 = vmul.f32 %v4114_v3, %v4106_v30  ;;  %v4700_v47 = vrot.slane %v4589_v8, %v1096_v46  ;;  %v4703_v49 = vrot.slane %v4596_v10, %v1096_v46 }
 0xa51   :  { %v885_v52 = vpack.c.bf16 %v882_v51, %v881_v50 }
 0xa53   :  { %3746 = vmatprep.mubr.msk.bf16.mxu0 %vm778_vm4, %v885_v52  ;;  %v4056_v52 = vld [vmem:[%s5364_s14 + $0x10] sm:$0xff]  }
 0xa54   :  { %3747 = vmatmul.mubr.msk.bf16.vlgmr.msra.gmra.mrb[20].mxu0 %vm778_vm4, %v886_v54  ;;  %v4057_v54 = vld [vmem:[%s5364_s14 + $0x18] sm:$0xff]  }
 0xa55   :  { %3771 = vmatprep.mubr.msk.bf16.mxu0 %vm4285_vm0, %v4284_v1  ;;  %3768 = vmatpush3.bf16.msra.mxu0 %v4052_v40 }
 0xa56   :  { %3769 = vmatprep.subr.bf16.mxu0 %v4284_v1 }
 0xa59   :  { %3770 = vmatpush3.bf16.msra.mxu0 %v4053_v41 }
 0xa5a   :  { %3787 = vmatprep.subr.bf16.mxu0 %v4284_v1 }
 0xb27   :  { %v3748_v59 = vpop.f32.mrb[20].mxu0 }
 0xb28   :  { %v928_v60 = vpop.f32.mrb[21].mxu0  ;;  %v949_v62 = vmul.f32 %v3748_v59, %v945_v56  ;;  %v3457_v59 = vld [vmem:[%s5363_s13] ss:$0 sm:$0xff] }
 0xb29   :  { %v3749_v61 = vpop.f32.mrb[22].mxu0  ;;  %v947_v5 = vmul.f32 %v943_v55, %v928_v60 }
 0xb2a   :  { %v950_v63 = vmul.f32 %v3749_v61, %v946_v58  ;;  %v931_v0 = vpop.f32.mrb[23].mxu0 }
 0xb2b   :  { %v948_v9 = vmul.f32 %v944_v57, %v931_v0 }
 0xb2c   :  { %v4009_v12 = vpack.c.bf16 %v950_v63, %v949_v62 }
 0xb2d   :  { %v4006_v13 = vpack.c.bf16 %v948_v9, %v947_v5 }
 0xb2f   :  { %4007 = vmatpush3.bf16.msra.mxu1 %v4006_v13 }
 0xb30   :  { %4008 = vmatprep.subr.bf16.mxu1 %v4288_v18 }
 0xb33   :  { %4010 = vmatpush3.bf16.msra.mxu1 %v4009_v12  ;;  %v3461_v12 = vld [vmem:[%s5365_s15] ss:$0 sm:$0xff] }
 0xb34   :  { %3761 = vmatprep.subr.bf16.mxu1 %v4284_v1 }
 0xb36   :  { %3759 = vmatmul.mubr.msk.f32.vlgmr.msra.gmra.mrb[20].mxu1 %vm127_vm1, %v4526_v34  ;;  %v3454_v34 = vld [vmem:[%s5361_s11] ss:$0 sm:$0xff] }
 0xb37   :  { %3763 = vmatprep.mubr.msk.bf16.mxu1 %vm4285_vm0, %v4284_v1  ;;  %3762 = vmatpush3.bf16.msra.mxu1 %v4051_v15 }
 0xb38   :  { %3775 = vmatprep.subr.bf16.mxu1 %v4284_v1 }
 0xc09   :  { %v1017_v19 = vpop.f32.mrb[20].mxu1 }
 0xc0a   :  { %v1021_v22 = vpack.c.bf16 %v1017_v19, %v1017_v19  ;;  %v3760_v25 = vpop.f32.mrb[21].mxu1 }
 0xc0c   :  { %3764 = vmatmul.mubr.msk.bf16.vlgmr.msra.gmra.mrb[24].mxu1 %vm778_vm4, %v1021_v22 }
 0xc0d   :  { %3783 = vmatprep.mubr.msk.bf16.mxu1 %vm4285_vm0, %v4284_v1 }
 0xcdf   :  { %v1074_v26 = vpop.f32.mrb[24].mxu1 }
 0xce0   :  { %v1075_v27 = vadd.f32 %v3454_v34, %v1074_v26  ;;  %v3765_v28 = vpop.f32.mrb[25].mxu1 }
 0xce1   :  { %v1077_v29 = vpop.f32.mrb[26].mxu1  ;;  %v4059_v28 = vld [vmem:[%s5366_s16] sm:$0xff]  }
 0xce2   :  { %v3766_v30 = vpop.f32.mrb[27].mxu1  ;;  %v1080_v31 = vadd.f32 %v1075_v27, %v4606_v17  ;;  %v4054_v17 = vld [vmem:[%s5364_s14] sm:$0xff]   ;;  %v4058_v27 = vld [vmem:[%s5366_s16 + $0x8] sm:$0xff]  }
 0xce3   :  { %3776 = vmatpush3.bf16.msra.mxu1 %v4054_v17  ;;  %1349 = vrot.lane.b32.xlu0 %v4058_v27, %s4289_s6  ;;  %v4738_v29 = vld [vmem:[%s5367_s17] ss:$0 sm:$0xff] }
 0xce4   :  { %v1081_v32 = vsel %vm127_vm1, %v1080_v31, 0.0  ;;  %3777 = vmatprep.subr.bf16.mxu1 %v4284_v1 }
 0xce5   :  { %1082 = vadd.xlane.f32.xlu1 %v1081_v32 }
 0xce7   :  { %3778 = vmatpush3.bf16.msra.mxu1 %v4055_v42  ;;  %1353 = vrot.lane.b32.xlu0 %v4738_v29, %s4289_s6 }
 0xce8   :  { %3779 = vmatprep.subr.bf16.mxu1 %v4284_v1 }
 0xceb   :  { %3780 = vmatpush3.bf16.msra.mxu1 %v4056_v52  ;;  %1399 = vrot.lane.b32.xlu0 %v4059_v28, %s4287_s28 }
 0xcec   :  { %3781 = vmatprep.subr.bf16.mxu1 %v4284_v1 }
 0xcef   :  { %3782 = vmatpush3.bf16.msra.mxu1 %v4057_v54  ;;  %1401 = vrot.lane.b32.xlu0 %v4058_v27, %s4287_s28 }
 0xcf0   :  { %3803 = vmatprep.subr.bf16.mxu1 %v4284_v1 }
 0xd72   :  { %v1083_v33 = vpop.xlane.xlu1 %1082 }
 0xd73   :  { %v1084_v36 = vmul.f32 0.03125, %v1083_v33 }
 0xd75   :  { %v1085_v37 = vsub.f32 %v1080_v31, %v1084_v36 }
 0xd77   :  { %v1086_v38 = vmul.f32 %v1085_v37, %v1085_v37 }
 0xd79   :  { %v1087_v39 = vsel %vm127_vm1, %v1086_v38, 0.0 }
 0xd7a   :  { %1088 = vadd.xlane.f32.xlu1 %v1087_v39 }
 0xe07   :  { %v1089_v43 = vpop.xlane.xlu1 %1088 }
 0xe08   :  { %v1090_v44 = vmul.f32 0.03125, %v1089_v43 }
 0xe0a   :  { %v1091_v45 = vadd.f32 1e-05, %v1090_v44 }
 0xe0c   :  { %4115 = vrsqrt.f32 %v1091_v45 }
 0xe16   :  { %v4116_v48 = vpop.eup %4115 }
 0xe17   :  { %v1093_v3 = vmul.f32 %v4116_v48, %v1085_v37  ;;  %v1350_v37 = vpop.permute.xlu0 %1349 }
 0xe19   :  { %v1098_v53 = vmul.f32 %v4700_v47, %v1093_v3 }
 0xe1b   :  { %v1103_v50 = vadd.f32 %v4703_v49, %v1098_v53  ;;  %v1354_v38 = vpop.permute.xlu0 %1353 }
 0xe1d   :  { %v1104_v51 = vpack.c.bf16 %v1103_v50, %v1103_v50 }
 0xe1f   :  { %3772 = vmatmul.mubr.msk.bf16.vlgmr.msra.gmra.mrb[24].mxu0 %vm127_vm1, %v1104_v51  ;;  %v1400_v39 = vpop.permute.xlu0 %1399 }
 0xe20   :  { %3791 = vmatprep.mubr.msk.bf16.mxu0 %vm4285_vm0, %v4284_v1  ;;  %3788 = vmatpush3.bf16.msra.mxu0 %v4059_v28 }
 0xe21   :  { %3789 = vmatprep.subr.bf16.mxu0 %v4284_v1 }
 0xe24   :  { %3790 = vmatpush3.bf16.msra.mxu0 %v4058_v27 }
 0xe25   :  { %3795 = vmatprep.subr.bf16.mxu0 %v4284_v1 }
 0xe27   :  { %3792 = vmatmul.mubr.msk.bf16.vlgmr.msra.gmra.mrb[28].mxu0 %vm127_vm1, %v4583_v6  ;;  %v1402_v6 = vpop.permute.xlu0 %1401 }
 0xe28   :  { %3799 = vmatprep.mubr.msk.bf16.mxu0 %vm4285_vm0, %v4284_v1 }
 0xef2   :  { %v1165_v60 = vpop.f32.mrb[24].mxu0 }
 0xef3   :  { %v1166_v61 = vadd.f32 %v3457_v59, %v1165_v60  ;;  %v3773_v62 = vpop.f32.mrb[25].mxu0 }
 0xef4   :  { %v1168_v63 = vpop.f32.mrb[26].mxu0 }
 0xef5   :  { %v1171_v0 = vmax.f32 %v1166_v61, 0.0  ;;  %v3774_v5 = vpop.f32.mrb[27].mxu0  ;;  %v4229_v63 = vld [vmem:[%s5409_s2] sm:$0xff] }
 0xef7   :  { %v1172_v9 = vpack.c.bf16 %v1171_v0, %v1171_v0 }
 0xef9   :  { %3784 = vmatmul.mubr.msk.bf16.vlgmr.msra.gmra.mrb[28].mxu1 %vm1212_vm5, %v1172_v9 }
 0xefa   :  { %3807 = vmatprep.mubr.msk.bf16.mxu1 %vm4285_vm0, %v4284_v1  ;;  %3804 = vmatpush3.bf16.msra.mxu1 %v1400_v39  ;;  %v1340_v40 = vpop.f32.mrb[28].mxu0 }
 0xefb   :  { %3805 = vmatprep.subr.bf16.mxu1 %v4284_v1  ;;  %v1341_v41 = vadd.f32 %v4738_v29, %v1340_v40  ;;  %v3793_v17 = vpop.f32.mrb[29].mxu0 }
 0xefc   :  { %v1343_v42 = vpop.f32.mrb[30].mxu0 }
 0xefd   :  { %v1344_v43 = vadd.f32 %v4738_v29, %v1343_v42  ;;  %v3794_v44 = vpop.f32.mrb[31].mxu0 }
 0xefe   :  { %3806 = vmatpush3.bf16.msra.mxu1 %v1402_v6 }
 0xeff   :  { %3819 = vmatprep.subr.bf16.mxu1 %v4284_v1  ;;  %v1457_v45 = vpack.c.bf16 %v1344_v43, %v1341_v41 }
 0xfcc   :  { %v1250_v13 = vpop.f32.mrb[28].mxu1 }
 0xfcd   :  { %v1251_v15 = vadd.f32 %v3461_v12, %v1250_v13  ;;  %v3785_v19 = vpop.f32.mrb[29].mxu1 }
 0xfce   :  { %v1253_v22 = vpop.f32.mrb[30].mxu1 }
 0xfcf   :  { %v3786_v25 = vpop.f32.mrb[31].mxu1  ;;  %v1256_v34 = vadd.f32 %v1251_v15, %v1103_v50  ;;  %v1272_v50 = vsub.s32 2, %v4580_v2 }
 0xfd1   :  { %v1257_v26 = vsel %vm127_vm1, %v1256_v34, 0.0  ;;  %v4760_v51 = vrot.slane %v4589_v8, %v1272_v50  ;;  %v4763_v59 = vrot.slane %v4596_v10, %v1272_v50 }
 0xfd2   :  { %1258 = vadd.xlane.f32.xlu1 %v1257_v26 }
0x105f   :  { %v1259_v30 = vpop.xlane.xlu1 %1258 }
0x1060   :  { %v1260_v31 = vmul.f32 0.03125, %v1259_v30 }
0x1062   :  { %v1261_v32 = vsub.f32 %v1256_v34, %v1260_v31  ;;  %v4791_v31 = vld [vmem:[%s5407_s7] sm:$0xff]  }
0x1064   :  { %v1262_v33 = vmul.f32 %v1261_v32, %v1261_v32 }
0x1066   :  { %v1263_v36 = vsel %vm127_vm1, %v1262_v33, 0.0  ;;  %v4801_v33 = vld [vmem:[%s5409_s2 + $0x8] sm:$0xff] }
0x1067   :  { %1264 = vadd.xlane.f32.xlu1 %v1263_v36  ;;  %v4807_v36 = vld [vmem:[%s5407_s7 + $0x8] sm:$0xff]   ;;  %s4290_s7 = smov 120  }
0x1078   :  { %1347 = vrot.lane.b32.xlu1 %v4059_v28, %s4289_s6 }
0x10f4   :  { %v1265_v46 = vpop.xlane.xlu1 %1264 }
0x10f5   :  { %v1266_v48 = vmul.f32 0.03125, %v1265_v46 }
0x10f7   :  { %v1267_v3 = vadd.f32 1e-05, %v1266_v48 }
0x10f8   :  { %v1348_v53 = vpop.permute.xlu1 %1347 }
0x10f9   :  { %4117 = vrsqrt.f32 %v1267_v3  ;;  %3796 = vmatpush3.bf16.msra.mxu0 %v1348_v53 }
0x10fa   :  { %3797 = vmatprep.subr.bf16.mxu0 %v4284_v1 }
0x10fd   :  { %3798 = vmatpush3.bf16.msra.mxu0 %v1350_v37 }
0x10fe   :  { %3811 = vmatprep.subr.bf16.mxu0 %v4284_v1 }
0x1103   :  { %v4118_v52 = vpop.eup %4117 }
0x1104   :  { %v1269_v54 = vmul.f32 %v4118_v52, %v1261_v32  ;;  %v4796_v32 = vld [vmem:[%s5408_s0 + $0x8] sm:$0xff] }
0x1105   :  { %v1790_v37 = vadd.f32 %v4801_v33, %v4796_v32 }
0x1106   :  { %v1274_v60 = vmul.f32 %v4760_v51, %v1269_v54 }
0x1108   :  { %v1279_v61 = vadd.f32 %v4763_v59, %v1274_v60 }
0x110a   :  { %v1282_v62 = vpack.c.bf16 %v1279_v61, %v1279_v61  ;;  %1777 = vst.msk [vmem:[#allocation2] sm:$0xff] %vm127_vm1, %v1279_v61  ;;  %v1280_v0 = vadd.f32 %v4229_v63, %v1279_v61 }
0x110c   :  { %3808 = vmatmul.mubr.msk.bf16.vlgmr.msra.gmra.mrb[32].mxu1 %vm127_vm1, %v1282_v62  ;;  %v1281_v8 = vpack.c.bf16 %v1280_v0, %v1280_v0 }
0x110d   :  { %3823 = vmatprep.mubr.msk.bf16.mxu1 %vm4285_vm0, %v4284_v1 }
0x110e   :  { %3800 = vmatmul.mubr.msk.bf16.vlgmr.msra.gmra.mrb[32].mxu0 %vm127_vm1, %v1281_v8 }
0x110f   :  { %3815 = vmatprep.mubr.msk.bf16.mxu0 %vm4285_vm0, %v4284_v1 }
0x11df   :  { %v4777_v10 = vpop.f32.mrb[32].mxu1 }
0x11e0   :  { %v3809_v5 = vpop.f32.mrb[33].mxu1 }
0x11e1   :  { %v1393_v9 = vpop.f32.mrb[32].mxu0  ;;  %v1448_v12 = vpop.f32.mrb[34].mxu1 }
0x11e2   :  { %v1394_v13 = vadd.f32 %v1393_v9, %v1354_v38  ;;  %v3801_v15 = vpop.f32.mrb[33].mxu0  ;;  %v3810_v19 = vpop.f32.mrb[35].mxu1  ;;  %v1791_v38 = vpack.c.bf16 %v1790_v37, %v1790_v37 }
0x11e3   :  { %v1396_v22 = vpop.f32.mrb[34].mxu0 }
0x11e4   :  { %v1451_v25 = vpack.c.bf16 %v1394_v13, %v1394_v13  ;;  %v3802_v34 = vpop.f32.mrb[35].mxu0 }
0x11e6   :  { %v1452_v26 = vmul.bf16 %v1451_v25, %v4619_v4  ;;  %v1453_v28 = vmul.bf16 %v1451_v25, %v4624_v35 }
0x11e8   :  { %v1462_v27 = vsel %vm778_vm4, %v1452_v26, 0  ;;  %v1465_v30 = vsel %vm778_vm4, %v1453_v28, 0 }
0x11e9   :  { %3812 = vmatpush3.bf16.xpose.msra.mxu0 %v1462_v27 }
0x11ea   :  { %3813 = vmatprep.subr.bf16.mxu0 %v4284_v1 }
0x11f1   :  { %3814 = vmatpush3.bf16.xpose.msra.mxu0 %v1465_v30  ;;  %v4851_v30 = vld [vmem:[%s5410_s27] ss:$0 sm:$0xff]  ;;  %s4291_s27 = smov 104  }
0x11f2   :  { %3833 = vmatprep.subr.bf16.mxu0 %v4284_v1 }
0x11f8   :  { %3816 = vmatmul.mubr.msk.bf16.vlgmr.msra.gmra.mrb[36].mxu0 %vm778_vm4, %v1457_v45 }
0x11f9   :  { %3837 = vmatprep.mubr.msk.bf16.mxu0 %vm4285_vm0, %v4284_v1  ;;  %3834 = vmatpush3.bf16.msra.mxu0 %v4791_v31 }
0x11fa   :  { %3835 = vmatprep.subr.bf16.mxu0 %v4284_v1 }
0x11fd   :  { %3836 = vmatpush3.bf16.msra.mxu0 %v4807_v36 }
0x1200   :  { %3838 = vmatmul.mubr.msk.bf16.vlgmr.msra.gmra.mrb[40].mxu0 %vm127_vm1, %v1791_v38 }
0x12cb   :  { %v1501_v39 = vpop.f32.mrb[36].mxu0 }
0x12cc   :  { %v4814_v6 = vmul.f32 0.5, %v1501_v39  ;;  %v3817_v40 = vpop.f32.mrb[37].mxu0 }
0x12cd   :  { %v1504_v41 = vpop.f32.mrb[38].mxu0 }
0x12ce   :  { %v4816_v17 = vmul.f32 0.5, %v1504_v41  ;;  %v3818_v42 = vpop.f32.mrb[39].mxu0  ;;  %v1564_v43 = vsel %vm1563_vm6, %v4814_v6, -inf  ;;  %v1533_v44 = vsel %vm1532_vm7, %v4814_v6, -inf  ;;  %v1595_v3 = vsel %vm1594_vm8, %v4814_v6, -inf }
0x12cf   :  { %1565 = vmax.xlane.f32.xlu0 %v1564_v43  ;;  %1534 = vmax.xlane.f32.xlu1 %v1533_v44  ;;  %v1510_v53 = vsel %vm304_vm2, %v4814_v6, -inf }
0x12d0   :  { %v1567_v45 = vsel %vm1563_vm6, %v4816_v17, -inf  ;;  %v1536_v46 = vsel %vm1532_vm7, %v4816_v17, -inf  ;;  %v1598_v48 = vsel %vm1594_vm8, %v4816_v17, -inf  ;;  %v1513_v50 = vsel %vm304_vm2, %v4816_v17, -inf }
0x12d3   :  { %1568 = vmax.xlane.f32.xlu1 %v1567_v45  ;;  %1537 = vmax.xlane.f32.xlu0 %v1536_v46  ;;  %v1852_v37 = vpop.f32.mrb[40].mxu0 }
0x12d4   :  { %v1853_v38 = vadd.f32 %v4851_v30, %v1852_v37  ;;  %v3839_v39 = vpop.f32.mrb[41].mxu0 }
0x12d5   :  { %v1855_v41 = vpop.f32.mrb[42].mxu0 }
0x12d6   :  { %v4860_v43 = vpack.c.bf16 %v1853_v38, %v1853_v38  ;;  %v3840_v44 = vpop.f32.mrb[43].mxu0 }
0x12d7   :  { %1599 = vmax.xlane.f32.xlu1 %v1598_v48  ;;  %1596 = vmax.xlane.f32.xlu0 %v1595_v3 }
0x12d8   :  { %v1912_v45 = vmul.bf16 %v4860_v43, %v4460_v7  ;;  %v4064_v7 = vld [vmem:[%s5411_s9 + $0x8] sm:$0xff]  }
0x12da   :  { %3851 = vmatprep.mubr.msk.bf16.mxu0 %vm127_vm1, %v1912_v45 }
0x12db   :  { %1511 = vmax.xlane.f32.xlu0 %v1510_v53  ;;  %1514 = vmax.xlane.f32.xlu1 %v1513_v50 }
0x135c   :  { %v1535_v52 = vpop.xlane.xlu1 %1534  ;;  %v1566_v54 = vpop.xlane.xlu0 %1565 }
0x135d   :  { %v1539_v60 = vsub.f32 %v4814_v6, %v1535_v52  ;;  %v1570_v61 = vsub.f32 %v4814_v6, %v1566_v54 }
0x135f   :  { %v1541_v62 = vmul.f32 1.442695, %v1539_v60  ;;  %v1572_v63 = vmul.f32 1.442695, %v1570_v61 }
0x1360   :  { %v1569_v0 = vpop.xlane.xlu1 %1568  ;;  %v1538_v8 = vpop.xlane.xlu0 %1537 }
0x1361   :  { %4119 = vpow2.f32 %v1541_v62  ;;  %v1571_v5 = vsub.f32 %v4816_v17, %v1569_v0  ;;  %v1540_v9 = vsub.f32 %v4816_v17, %v1538_v8 }
0x1362   :  { %4121 = vpow2.f32 %v1572_v63 }
0x1363   :  { %v1574_v12 = vmul.f32 1.442695, %v1571_v5  ;;  %v1543_v13 = vmul.f32 1.442695, %v1540_v9 }
0x1364   :  { %v1600_v15 = vpop.xlane.xlu1 %1599  ;;  %v1597_v19 = vpop.xlane.xlu0 %1596 }
0x1365   :  { %4123 = vpow2.f32 %v1574_v12  ;;  %v1602_v22 = vsub.f32 %v4816_v17, %v1600_v15  ;;  %v1601_v25 = vsub.f32 %v4814_v6, %v1597_v19 }
0x1366   :  { %4125 = vpow2.f32 %v1543_v13 }
0x1367   :  { %v1605_v34 = vmul.f32 1.442695, %v1602_v22  ;;  %v1603_v26 = vmul.f32 1.442695, %v1601_v25 }
0x1368   :  { %v1515_v3 = vpop.xlane.xlu1 %1514  ;;  %v1512_v50 = vpop.xlane.xlu0 %1511 }
0x1369   :  { %4127 = vpow2.f32 %v1605_v34  ;;  %v1517_v53 = vsub.f32 %v4816_v17, %v1515_v3  ;;  %v1516_v54 = vsub.f32 %v4814_v6, %v1512_v50 }
0x136a   :  { %4129 = vpow2.f32 %v1603_v26 }
0x136b   :  { %v4840_v27 = vpop.eup %4119  ;;  %v1520_v52 = vmul.f32 1.442695, %v1517_v53  ;;  %v1518_v60 = vmul.f32 1.442695, %v1516_v54 }
0x136c   :  { %v4842_v28 = vpop.eup %4121  ;;  %1547 = vrot.lane.b32.xlu0 %v4840_v27, %s4290_s7 }
0x136d   :  { %1578 = vrot.lane.b32.xlu1 %v4842_v28, %s4289_s6  ;;  %4131 = vpow2.f32 %v1520_v52 }
0x136e   :  { %4133 = vpow2.f32 %v1518_v60 }
0x136f   :  { %v4854_v40 = vpop.eup %4123 }
0x1370   :  { %v4856_v42 = vpop.eup %4125  ;;  %1580 = vrot.lane.b32.xlu0 %v4854_v40, %s4289_s6 }
0x1371   :  { %1549 = vrot.lane.b32.xlu1 %v4856_v42, %s4290_s7 }
0x1373   :  { %v4866_v46 = vpop.eup %4127 }
0x1374   :  { %v4868_v48 = vpop.eup %4129  ;;  %1611 = vrot.lane.b32.xlu0 %v4866_v46, %s4291_s27 }
0x1375   :  { %1609 = vrot.lane.b32.xlu1 %v4868_v48, %s4291_s27 }
0x1377   :  { %v4877_v61 = vpop.eup %4131 }
0x1378   :  { %v1525_v62 = vsel %vm304_vm2, %v4877_v61, 0.0  ;;  %v4881_v63 = vpop.eup %4133 }
0x1379   :  { %v1522_v0 = vsel %vm304_vm2, %v4881_v63, 0.0 }
0x1393   :  { %1526 = vadd.xlane.f32.xlu0 %v1525_v62 }
0x1399   :  { %1523 = vadd.xlane.f32.xlu1 %v1522_v0 }
0x13de   :  { %v1548_v17 = vpop.permute.xlu0 %1547 }
0x13df   :  { %v1579_v8 = vpop.permute.xlu1 %1578  ;;  %v1553_v5 = vsel %vm304_vm2, %v1548_v17, 0.0 }
0x13e0   :  { %1554 = vadd.xlane.f32.xlu0 %v1553_v5  ;;  %v1584_v12 = vsel %vm304_vm2, %v1579_v8, 0.0 }
0x13e2   :  { %v1581_v9 = vpop.permute.xlu0 %1580 }
0x13e3   :  { %v1550_v6 = vpop.permute.xlu1 %1549  ;;  %v1587_v22 = vsel %vm304_vm2, %v1581_v9, 0.0 }
0x13e4   :  { %v1556_v13 = vsel %vm304_vm2, %v1550_v6, 0.0  ;;  %1585 = vadd.xlane.f32.xlu0 %v1584_v12 }
0x13e5   :  { %1557 = vadd.xlane.f32.xlu1 %v1556_v13 }
0x13e6   :  { %v1612_v25 = vpop.permute.xlu0 %1611 }
0x13e7   :  { %v1610_v15 = vpop.permute.xlu1 %1609  ;;  %v1618_v34 = vsel %vm304_vm2, %v1612_v25, 0.0 }
0x13e8   :  { %v1615_v19 = vsel %vm304_vm2, %v1610_v15, 0.0 }
0x13e9   :  { %1616 = vadd.xlane.f32.xlu0 %v1615_v19  ;;  %1588 = vadd.xlane.f32.xlu1 %v1587_v22 }
0x13ed   :  { %1619 = vadd.xlane.f32.xlu1 %v1618_v34 }
0x13fe   :  { %1915 = vrot.lane.b32.xlu1 %v4860_v43, %s4287_s28 }
0x13ff   :  { %1405 = vrot.lane.b32.xlu0 %v4738_v29, %s4287_s28 }
0x1402   :  { %1859 = vrot.lane.b32.xlu1 %v4791_v31, %s5418_s29 }
0x1403   :  { %1861 = vrot.lane.b32.xlu0 %v4807_v36, %s5418_s29 }
0x1420   :  { %v1527_v26 = vpop.xlane.xlu0 %1526 }
0x1421   :  { %4135 = vrcp.f32 %v1527_v26 }
0x1426   :  { %v1524_v38 = vpop.xlane.xlu1 %1523 }
0x1427   :  { %4137 = vrcp.f32 %v1524_v38 }
0x142b   :  { %v4136_v36 = vpop.eup %4135 }
0x142c   :  { %v1531_v15 = vmul.f32 %v4136_v36, %v4877_v61 }
0x1431   :  { %v4138_v53 = vpop.eup %4137 }
0x1432   :  { %v1530_v19 = vmul.f32 %v4138_v53, %v4881_v63 }
0x146d   :  { %v1555_v37 = vpop.xlane.xlu0 %1554 }
0x146e   :  { %4139 = vrcp.f32 %v1555_v37 }
0x1471   :  { %v1586_v39 = vpop.xlane.xlu0 %1585 }
0x1472   :  { %v1558_v41 = vpop.xlane.xlu1 %1557 }
0x1473   :  { %4141 = vrcp.f32 %v1558_v41 }
0x1474   :  { %4143 = vrcp.f32 %v1586_v39 }
0x1476   :  { %v1589_v44 = vpop.xlane.xlu1 %1588  ;;  %v1617_v45 = vpop.xlane.xlu0 %1616 }
0x1477   :  { %4145 = vrcp.f32 %v1589_v44 }
0x1478   :  { %4147 = vrcp.f32 %v1617_v45  ;;  %v4140_v52 = vpop.eup %4139 }
0x147a   :  { %v1620_v29 = vpop.xlane.xlu1 %1619  ;;  %v1406_v3 = vpop.permute.xlu0 %1405 }
0x147b   :  { %4149 = vrcp.f32 %v1620_v29  ;;  %v1446_v31 = vadd.f32 %v4777_v10, %v1406_v3  ;;  %v1561_v10 = vmul.f32 %v4140_v52, %v4840_v27  ;;  %v1913_v27 = vmul.bf16 %v4860_v43, %v4476_v16  ;;  %v4978_v16 = vld [vmem:[%s5374_s24] sm:$0xff] }
0x147d   :  { %v1454_v50 = vpack.c.bf16 %v1446_v31, %v1446_v31  ;;  %v4142_v60 = vpop.eup %4141 }
0x147e   :  { %v1916_v54 = vpop.permute.xlu1 %1915  ;;  %v4144_v17 = vpop.eup %4143  ;;  %v1562_v6 = vmul.f32 %v4142_v60, %v4856_v42  ;;  %v1625_v42 = vsel %vm304_vm2, %v1530_v19, %v1561_v10 }
0x147f   :  { %v1455_v62 = vmul.bf16 %v1454_v50, %v4619_v4  ;;  %v1924_v0 = vsel %vm127_vm1, %v1916_v54, 0  ;;  %4026 = vmatprep.subr.msk.bf16.mxu0 %vm127_vm1, %v1916_v54  ;;  %v1592_v9 = vmul.f32 %v4144_v17, %v4842_v28  ;;  %v1456_v13 = vmul.bf16 %v1454_v50, %v4624_v35  ;;  %v1862_v17 = vpop.permute.xlu0 %1861 }
0x1480   :  { %3850 = vmatpush3.bf16.xpose.msra.mxu0 %v1924_v0  ;;  %v1626_v28 = vsel %vm304_vm2, %v1531_v15, %v1562_v6 }
0x1481   :  { %v4146_v8 = vpop.eup %4145  ;;  %3820 = vmatpush3.bf16.msra.mxu1 %v1455_v62  ;;  %4011 = vmatprep.subr.bf16.mxu0 %v4288_v18  ;;  %v1627_v61 = vsel %vm778_vm4, %v1625_v42, %v1592_v9 }
0x1482   :  { %v4148_v5 = vpop.eup %4147  ;;  %3821 = vmatprep.subr.bf16.mxu1 %v4284_v1  ;;  %v1593_v12 = vmul.f32 %v4146_v8, %v4854_v40  ;;  %v1860_v60 = vpop.permute.xlu1 %1859  ;;  %v1858_v8 = vpack.c.bf16 %v4796_v32, %v4796_v32 }
0x1483   :  { %v1623_v22 = vmul.f32 %v4148_v5, %v4868_v48 }
0x1484   :  { %v1628_v48 = vsel %vm778_vm4, %v1626_v28, %v1593_v12 }
0x1485   :  { %v4150_v25 = vpop.eup %4149  ;;  %3822 = vmatpush3.bf16.msra.mxu1 %v1456_v13  ;;  %v1630_v63 = vsel %vm1629_vm9, %v1627_v61, %v1623_v22 }
0x1486   :  { %v1624_v40 = vmul.f32 %v4150_v25, %v4866_v46  ;;  %3827 = vmatprep.subr.bf16.mxu1 %v4284_v1  ;;  %v4062_v46 = vld [vmem:[%s5368_s18] sm:$0xff]  }
0x1487   :  { %3852 = vmatmul.mubr.msk.bf16.vlgmr.msra.gmra.mrb[44].mxu0 %vm127_vm1, %v1913_v27 }
0x1488   :  { %v1631_v43 = vsel %vm1629_vm9, %v1628_v48, %v1624_v40  ;;  %3869 = vmatprep.mubr.msk.f32.mxu0 %vm4285_vm0, %v4284_v1 }
0x1489   :  { %v1632_v34 = vpack.c.bf16 %v1631_v43, %v1630_v63 }
0x148b   :  { %3824 = vmatmul.mubr.msk.bf16.vlgmr.msra.gmra.mrb[36].mxu1 %vm127_vm1, %v1632_v34 }
0x148c   :  { %3829 = vmatprep.mubr.msk.bf16.mxu1 %vm4285_vm0, %v4284_v1  ;;  %3828 = vmatpush3.bf16.msra.mxu1 %v4062_v46 }
0x148d   :  { %3841 = vmatprep.subr.bf16.mxu1 %v4284_v1 }
0x155a   :  { %v3853_v26 = vpop.f32.mrb[44].mxu0 }
0x155b   :  { %v1960_v37 = vpop.f32.mrb[45].mxu0  ;;  %v1977_v36 = vmul.f32 0.35355338, %v3853_v26 }
0x155c   :  { %v1975_v38 = vmul.f32 0.35355338, %v1960_v37  ;;  %v3854_v39 = vpop.f32.mrb[46].mxu0 }
0x155d   :  { %v1963_v41 = vpop.f32.mrb[47].mxu0  ;;  %v1978_v44 = vmul.f32 0.35355338, %v3854_v39  ;;  %v1985_v0 = vsel %vm304_vm2, %v1977_v36, -inf }
0x155e   :  { %v1976_v45 = vmul.f32 0.35355338, %v1963_v41  ;;  %v1670_v29 = vpop.f32.mrb[36].mxu1  ;;  %v1979_v3 = vsel %vm304_vm2, %v1975_v38, -inf }
0x155f   :  { %1980 = vmax.xlane.f32.xlu1 %v1979_v3  ;;  %v3825_v31 = vpop.f32.mrb[37].mxu1  ;;  %v1988_v62 = vsel %vm304_vm2, %v1978_v44, -inf }
0x1560   :  { %v1673_v53 = vpop.f32.mrb[38].mxu1  ;;  %v1982_v50 = vsel %vm304_vm2, %v1976_v45, -inf }
0x1561   :  { %v1677_v52 = vpack.c.bf16 %v1673_v53, %v1670_v29  ;;  %1983 = vmax.xlane.f32.xlu0 %v1982_v50  ;;  %v3826_v54 = vpop.f32.mrb[39].mxu1 }
0x1563   :  { %1989 = vmax.xlane.f32.xlu1 %v1988_v62  ;;  %3830 = vmatmul.mubr.msk.bf16.vlgmr.msra.gmra.mrb[40].mxu1 %vm778_vm4, %v1677_v52 }
0x1564   :  { %3842 = vmatpush3.bf16.msra.mxu1 %v1860_v60  ;;  %3845 = vmatprep.mubr.msk.bf16.mxu1 %vm4285_vm0, %v4284_v1 }
0x1565   :  { %1986 = vmax.xlane.f32.xlu0 %v1985_v0  ;;  %3843 = vmatprep.subr.bf16.mxu1 %v4284_v1 }
0x1568   :  { %3844 = vmatpush3.bf16.msra.mxu1 %v1862_v17 }
0x156b   :  { %3846 = vmatmul.mubr.msk.bf16.vlgmr.msra.gmra.mrb[44].mxu1 %vm127_vm1, %v1858_v8 }
0x15ec   :  { %v1981_v5 = vpop.xlane.xlu1 %1980 }
0x15ed   :  { %v1991_v12 = vsub.f32 %v1975_v38, %v1981_v5 }
0x15ee   :  { %v1984_v10 = vpop.xlane.xlu0 %1983 }
0x15ef   :  { %v1992_v6 = vsub.f32 %v1976_v45, %v1984_v10  ;;  %v1995_v27 = vmul.f32 1.442695, %v1991_v12 }
0x15f0   :  { %v1990_v9 = vpop.xlane.xlu1 %1989 }
0x15f1   :  { %v1997_v13 = vmul.f32 1.442695, %v1992_v6  ;;  %v1994_v15 = vsub.f32 %v1978_v44, %v1990_v9 }
0x15f2   :  { %v1987_v19 = vpop.xlane.xlu0 %1986 }
0x15f3   :  { %4151 = vpow2.f32 %v1997_v13  ;;  %v2001_v22 = vmul.f32 1.442695, %v1994_v15  ;;  %v1993_v25 = vsub.f32 %v1977_v36, %v1987_v19  ;;  %v4063_v13 = vld [vmem:[%s5411_s9] sm:$0xff]  }
0x15f5   :  { %4153 = vpow2.f32 %v2001_v22  ;;  %v1999_v42 = vmul.f32 1.442695, %v1993_v25 }
0x15f7   :  { %4155 = vpow2.f32 %v1999_v42 }
0x15f8   :  { %4157 = vpow2.f32 %v1995_v27 }
0x15fd   :  { %v4152_v28 = vpop.eup %4151 }
0x15fe   :  { %v2006_v40 = vsel %vm304_vm2, %v4152_v28, 0.0 }
0x15ff   :  { %v4154_v61 = vpop.eup %4153  ;;  %2007 = vadd.xlane.f32.xlu1 %v2006_v40 }
0x1600   :  { %v2012_v63 = vsel %vm304_vm2, %v4154_v61, 0.0 }
0x1601   :  { %v4156_v48 = vpop.eup %4155 }
0x1602   :  { %v2009_v43 = vsel %vm304_vm2, %v4156_v48, 0.0  ;;  %v4158_v34 = vpop.eup %4157 }
0x1603   :  { %2013 = vadd.xlane.f32.xlu1 %v2012_v63  ;;  %2010 = vadd.xlane.f32.xlu0 %v2009_v43  ;;  %v2003_v46 = vsel %vm304_vm2, %v4158_v34, 0.0 }
0x1607   :  { %2004 = vadd.xlane.f32.xlu0 %v2003_v46 }
0x161d   :  { %1865 = vrot.lane.b32.xlu0 %v4851_v30, %s5418_s29  ;;  %s4292_s29 = smov [#allocation2]  }
0x1636   :  { %v4950_v26 = vpop.f32.mrb[40].mxu1 }
0x1637   :  { %v3831_v37 = vpop.f32.mrb[41].mxu1 }
0x1638   :  { %v4952_v38 = vpop.f32.mrb[42].mxu1 }
0x1639   :  { %v3832_v39 = vpop.f32.mrb[43].mxu1 }
0x163e   :  { %v1905_v41 = vpop.f32.mrb[44].mxu1 }
0x163f   :  { %v3847_v44 = vpop.f32.mrb[45].mxu1 }
0x1640   :  { %v1908_v45 = vpop.f32.mrb[46].mxu1  ;;  %v4065_v44 = vld [vmem:[%s5413_s30] sm:$0xff]  }
0x1641   :  { %v3848_v29 = vpop.f32.mrb[47].mxu1  ;;  %v4066_v45 = vld [vmem:[%s5413_s30 + $0x8] sm:$0xff]  }
0x1642   :  { %2315 = vrot.lane.b32.xlu0 %v4066_v45, %s4289_s6 }
0x168c   :  { %v2008_v3 = vpop.xlane.xlu1 %2007 }
0x1690   :  { %v2014_v31 = vpop.xlane.xlu1 %2013  ;;  %v2011_v36 = vpop.xlane.xlu0 %2010 }
0x1691   :  { %4159 = vrcp.f32 %v2014_v31 }
0x1692   :  { %4161 = vrcp.f32 %v2011_v36 }
0x1693   :  { %4163 = vrcp.f32 %v2008_v3 }
0x1694   :  { %v2005_v53 = vpop.xlane.xlu0 %2004 }
0x1695   :  { %4165 = vrcp.f32 %v2005_v53  ;;  %v5011_v53 = vld [vmem:[%s5419_s26] ss:$0 sm:$0xff] }
0x1696   :  { %2319 = vrot.lane.b32.xlu0 %v5011_v53, %s4289_s6 }
0x1698   :  { %v1866_v50 = vpop.permute.xlu0 %1865 }
0x1699   :  { %v1906_v30 = vadd.f32 %v1905_v41, %v1866_v50 }
0x169a   :  { %2368 = vrot.lane.b32.xlu0 %v4066_v45, %s4287_s28 }
0x169b   :  { %v4160_v52 = vpop.eup %4159  ;;  %v2025_v54 = vpack.c.bf16 %v1906_v30, %v1906_v30  ;;  %v5019_v30 = vld [vmem:[%s5415_s10 + $0x10] sm:$0xff] }
0x169c   :  { %v4162_v60 = vpop.eup %4161  ;;  %v2022_v8 = vmul.f32 %v4160_v52, %v4154_v61 }
0x169d   :  { %v4164_v62 = vpop.eup %4163  ;;  %v2033_v0 = vsel %vm358_vm3, %v2025_v54, 0  ;;  %4027 = vmatprep.subr.msk.bf16.mxu1 %vm358_vm3, %v2025_v54  ;;  %v2021_v5 = vmul.f32 %v4162_v60, %v4156_v48  ;;  %v5024_v54 = vld [vmem:[%s5415_s10 + $0x18] sm:$0xff]  ;;  %v3482_v60 = vld [vmem:[%s5416_s8 + $0x10] sm:$0xff] }
0x169e   :  { %3856 = vmatpush3.bf16.msra.mxu1 %v2033_v0  ;;  %v2020_v6 = vmul.f32 %v4164_v62, %v4152_v28  ;;  %v3483_v62 = vld [vmem:[%s5416_s8 + $0x18] sm:$0xff] }
0x169f   :  { %v4166_v17 = vpop.eup %4165  ;;  %3872 = vmatprep.subr.bf16.mxu1 %v4284_v1  ;;  %v2024_v12 = vpack.c.bf16 %v2022_v8, %v2021_v5  ;;  %v2243_v8 = vadd.f32 %v3482_v60, %v5019_v30  ;;  %v2244_v5 = vadd.f32 %v3483_v62, %v5024_v54 }
0x16a0   :  { %v2019_v10 = vmul.f32 %v4166_v17, %v4158_v34 }
0x16a2   :  { %v2023_v9 = vpack.c.bf16 %v2020_v6, %v2019_v10  ;;  %v5035_v6 = vpack.c.bf16 %v2244_v5, %v2243_v8 }
0x16a4   :  { %3857 = vmatprep.mubr.msk.bf16.mxu1 %vm304_vm2, %v2023_v9 }
0x16a5   :  { %3858 = vmatmul.mubr.msk.bf16.vlgmr.msra.gmra.mrb[48].mxu1 %vm304_vm2, %v2024_v12 }
0x16a6   :  { %3876 = vmatprep.mubr.msk.bf16.mxu1 %vm4285_vm0, %v4284_v1  ;;  %3873 = vmatpush3.bf16.msra.mxu1 %v4063_v13 }
0x16a7   :  { %3874 = vmatprep.subr.bf16.mxu1 %v4284_v1 }
0x16aa   :  { %3875 = vmatpush3.bf16.msra.mxu1 %v4064_v7 }
0x16ab   :  { %3888 = vmatprep.subr.bf16.mxu1 %v4284_v1 }
0x16b4   :  { %v2316_v10 = vpop.permute.xlu0 %2315 }
0x1778   :  { %v3859_v15 = vpop.f32.mrb[48].mxu1 }
0x1779   :  { %v2069_v19 = vpop.f32.mrb[49].mxu1  ;;  %v2086_v25 = vmul.f32 %v3859_v15, %v413_v20 }
0x177a   :  { %v3860_v22 = vpop.f32.mrb[50].mxu1  ;;  %v2084_v28 = vmul.f32 %v2069_v19, %v411_v23 }
0x177b   :  { %v2087_v27 = vmul.f32 %v3860_v22, %v414_v21  ;;  %v2072_v42 = vpop.f32.mrb[51].mxu1 }
0x177c   :  { %v2085_v40 = vmul.f32 %v2072_v42, %v412_v24  ;;  %v3494_v24 = vld [vmem:[%s5412_s4] ss:$0 sm:$0xff] }
0x177d   :  { %v4015_v61 = vpack.c.bf16 %v2087_v27, %v2086_v25  ;;  %v2320_v25 = vpop.permute.xlu0 %2319 }
0x177e   :  { %v4012_v48 = vpack.c.bf16 %v2085_v40, %v2084_v28 }
0x1780   :  { %4013 = vmatpush3.bf16.msra.mxu0 %v4012_v48 }
0x1781   :  { %4014 = vmatprep.subr.bf16.mxu0 %v4288_v18 }
0x1784   :  { %4016 = vmatpush3.bf16.msra.mxu0 %v4015_v61 }
0x1785   :  { %3880 = vmatprep.subr.bf16.mxu0 %v4284_v1 }
0x1787   :  { %3870 = vmatmul.mubr.msk.f32.vlgmr.msra.gmra.mrb[10].mxu0 %vm127_vm1, %v4978_v16 }
0x1788   :  { %3884 = vmatprep.mubr.msk.bf16.mxu0 %vm4285_vm0, %v4284_v1  ;;  %3881 = vmatpush3.bf16.msra.mxu0 %v4065_v44 }
0x1789   :  { %3882 = vmatprep.subr.bf16.mxu0 %v4284_v1 }
0x178c   :  { %3883 = vmatpush3.bf16.msra.mxu0 %v4066_v45 }
0x178d   :  { %3896 = vmatprep.subr.bf16.mxu0 %v4284_v1 }
0x185a   :  { %v2154_v20 = vpop.f32.mrb[10].mxu0 }
0x185b   :  { %v2158_v21 = vpack.c.bf16 %v2154_v20, %v2154_v20  ;;  %v3871_v23 = vpop.f32.mrb[11].mxu0 }
0x185d   :  { %3877 = vmatmul.mubr.msk.bf16.vlgmr.msra.gmra.mrb[52].mxu1 %vm127_vm1, %v2158_v21 }
0x185e   :  { %3892 = vmatprep.mubr.msk.bf16.mxu1 %vm4285_vm0, %v4284_v1 }
0x1930   :  { %v2219_v63 = vpop.f32.mrb[52].mxu1 }
0x1931   :  { %v2220_v43 = vadd.f32 %v3494_v24, %v2219_v63  ;;  %v3878_v34 = vpop.f32.mrb[53].mxu1 }
0x1932   :  { %v2222_v46 = vpop.f32.mrb[54].mxu1 }
0x1933   :  { %v3879_v37 = vpop.f32.mrb[55].mxu1  ;;  %v2225_v39 = vadd.f32 %v4796_v32, %v2220_v43  ;;  %v2369_v46 = vpop.permute.xlu0 %2368 }
0x1934   :  { %v2246_v37 = vpack.c.bf16 %v5024_v54, %v5019_v30 }
0x1935   :  { %v2226_v41 = vsel %vm127_vm1, %v2225_v39, 0.0 }
0x1936   :  { %2227 = vadd.xlane.f32.xlu1 %v2226_v41 }
0x19c3   :  { %v2228_v32 = vpop.xlane.xlu1 %2227 }
0x19c4   :  { %v2229_v29 = vmul.f32 0.03125, %v2228_v32 }
0x19c6   :  { %v2230_v3 = vsub.f32 %v2225_v39, %v2229_v29 }
0x19c8   :  { %v2231_v31 = vmul.f32 %v2230_v3, %v2230_v3 }
0x19ca   :  { %v2232_v36 = vsel %vm127_vm1, %v2231_v31, 0.0 }
0x19cb   :  { %2233 = vadd.xlane.f32.xlu1 %v2232_v36 }
0x19dc   :  { %2313 = vrot.lane.b32.xlu1 %v4065_v44, %s4289_s6 }
0x19e0   :  { %2366 = vrot.lane.b32.xlu1 %v4065_v44, %s4287_s28 }
0x1a58   :  { %v2234_v50 = vpop.xlane.xlu1 %2233 }
0x1a59   :  { %v2235_v52 = vmul.f32 0.03125, %v2234_v50 }
0x1a5b   :  { %v2236_v0 = vadd.f32 1e-05, %v2235_v52 }
0x1a5c   :  { %v2314_v17 = vpop.permute.xlu1 %2313 }
0x1a5d   :  { %4167 = vrsqrt.f32 %v2236_v0  ;;  %3889 = vmatpush3.bf16.msra.mxu1 %v2314_v17 }
0x1a5e   :  { %3890 = vmatprep.subr.bf16.mxu1 %v4284_v1 }
0x1a60   :  { %v2367_v34 = vpop.permute.xlu1 %2366 }
0x1a61   :  { %3891 = vmatpush3.bf16.msra.mxu1 %v2316_v10 }
0x1a64   :  { %3893 = vmatmul.mubr.msk.bf16.vlgmr.msra.gmra.mrb[56].mxu1 %vm127_vm1, %v5035_v6 }
0x1a67   :  { %v4168_v9 = vpop.eup %4167 }
0x1a68   :  { %v2238_v12 = vmul.f32 %v4168_v9, %v2230_v3 }
0x1a6a   :  { %v2239_v13 = vmul.f32 %v2238_v12, %v4599_v11 }
0x1a6c   :  { %v5041_v15 = vadd.f32 %v2239_v13, %v4602_v14 }
0x1a6e   :  { %v2241_v19 = vadd.f32 %v4801_v33, %v5041_v15 }
0x1a70   :  { %v2242_v22 = vpack.c.bf16 %v2241_v19, %v2241_v19 }
0x1a72   :  { %3885 = vmatmul.mubr.msk.bf16.vlgmr.msra.gmra.mrb[48].mxu0 %vm127_vm1, %v2242_v22 }
0x1a73   :  { %3900 = vmatprep.mubr.msk.bf16.mxu0 %vm4285_vm0, %v4284_v1  ;;  %3897 = vmatpush3.bf16.msra.mxu0 %v2367_v34 }
0x1a74   :  { %3898 = vmatprep.subr.bf16.mxu0 %v4284_v1 }
0x1a77   :  { %3899 = vmatpush3.bf16.msra.mxu0 %v2369_v46 }
0x1a7a   :  { %3901 = vmatmul.mubr.msk.bf16.vlgmr.msra.gmra.mrb[52].mxu0 %vm127_vm1, %v2246_v37 }
0x1b37   :  { %v2359_v27 = vpop.f32.mrb[56].mxu1 }
0x1b38   :  { %v3894_v42 = vpop.f32.mrb[57].mxu1  ;;  %v2360_v28 = vadd.f32 %v2359_v27, %v2320_v25 }
0x1b39   :  { %v2362_v40 = vpop.f32.mrb[58].mxu1 }
0x1b3a   :  { %v3895_v61 = vpop.f32.mrb[59].mxu1  ;;  %v2363_v48 = vadd.f32 %v2362_v40, %v2320_v25 }
0x1b3c   :  { %v2422_v11 = vpack.c.bf16 %v2363_v48, %v2360_v28 }
0x1b3e   :  { %4028 = vmatprep.subr.msk.bf16.mxu1 %vm778_vm4, %v2422_v11  ;;  %v2430_v14 = vsel %vm778_vm4, %v2422_v11, 0 }
0x1b3f   :  { %3905 = vmatpush3.bf16.xpose.msra.mxu1 %v2430_v14 }
0x1b40   :  { %4017 = vmatprep.subr.bf16.mxu1 %v4288_v18 }
0x1b45   :  { %v2307_v33 = vpop.f32.mrb[48].mxu0 }
0x1b46   :  { %v2308_v7 = vadd.f32 %v5011_v53, %v2307_v33  ;;  %v3886_v20 = vpop.f32.mrb[49].mxu0 }
0x1b47   :  { %v2310_v21 = vpop.f32.mrb[50].mxu0 }
0x1b48   :  { %v2419_v23 = vpack.c.bf16 %v2308_v7, %v2308_v7  ;;  %v3887_v24 = vpop.f32.mrb[51].mxu0 }
0x1b4a   :  { %v2420_v63 = vmul.bf16 %v2419_v23, %v4619_v4  ;;  %v2421_v43 = vmul.bf16 %v2419_v23, %v4624_v35 }
0x1b4c   :  { %3906 = vmatprep.mubr.msk.bf16.mxu1 %vm778_vm4, %v2420_v63 }
0x1b4d   :  { %3907 = vmatmul.mubr.msk.bf16.vlgmr.msra.gmra.mrb[60].mxu1 %vm778_vm4, %v2421_v43  ;;  %v2412_v33 = vpop.f32.mrb[52].mxu0 }
0x1b4e   :  { %3924 = vmatprep.mubr.msk.f32.mxu1 %vm4285_vm0, %v4284_v1  ;;  %v3902_v7 = vpop.f32.mrb[53].mxu0 }
0x1b4f   :  { %v2415_v20 = vpop.f32.mrb[54].mxu0  ;;  %v4071_v7 = vld [vmem:[%s5364_s14 + $0x8] sm:$0xff]  }
0x1b50   :  { %v3903_v21 = vpop.f32.mrb[55].mxu0 }
0x1c20   :  { %v3908_v39 = vpop.f32.mrb[60].mxu1 }
0x1c21   :  { %v2466_v41 = vpop.f32.mrb[61].mxu1  ;;  %v2483_v36 = vmul.f32 0.5, %v3908_v39 }
0x1c22   :  { %v2481_v44 = vmul.f32 0.5, %v2466_v41  ;;  %v3909_v45 = vpop.f32.mrb[62].mxu1 }
0x1c23   :  { %v2469_v32 = vpop.f32.mrb[63].mxu1  ;;  %v2484_v29 = vmul.f32 0.5, %v3909_v45  ;;  %v2491_v60 = vsel %vm778_vm4, %v2483_v36, -inf }
0x1c24   :  { %v2482_v3 = vmul.f32 0.5, %v2469_v32  ;;  %v2485_v31 = vsel %vm778_vm4, %v2481_v44, -inf }
0x1c25   :  { %2486 = vmax.xlane.f32.xlu1 %v2485_v31  ;;  %v2494_v52 = vsel %vm778_vm4, %v2484_v29, -inf }
0x1c26   :  { %v2488_v50 = vsel %vm778_vm4, %v2482_v3, -inf }
0x1c27   :  { %2489 = vmax.xlane.f32.xlu0 %v2488_v50 }
0x1c29   :  { %2495 = vmax.xlane.f32.xlu1 %v2494_v52  ;;  %v4067_v52 = vld [vmem:[%s5417_s25] sm:$0xff]  }
0x1c2b   :  { %2492 = vmax.xlane.f32.xlu0 %v2491_v60 }
0x1cb2   :  { %v2487_v62 = vpop.xlane.xlu1 %2486 }
0x1cb3   :  { %v2497_v5 = vsub.f32 %v2481_v44, %v2487_v62 }
0x1cb4   :  { %v2490_v0 = vpop.xlane.xlu0 %2489 }
0x1cb5   :  { %v2498_v17 = vsub.f32 %v2482_v3, %v2490_v0  ;;  %v2501_v22 = vmul.f32 1.442695, %v2497_v5 }
0x1cb6   :  { %v2496_v8 = vpop.xlane.xlu1 %2495 }
0x1cb7   :  { %v2503_v10 = vmul.f32 1.442695, %v2498_v17  ;;  %v2500_v9 = vsub.f32 %v2484_v29, %v2496_v8 }
0x1cb8   :  { %v2493_v12 = vpop.xlane.xlu0 %2492 }
0x1cb9   :  { %4169 = vpow2.f32 %v2503_v10  ;;  %v2507_v13 = vmul.f32 1.442695, %v2500_v9  ;;  %v2499_v19 = vsub.f32 %v2483_v36, %v2493_v12 }
0x1cbb   :  { %4171 = vpow2.f32 %v2507_v13  ;;  %v2505_v25 = vmul.f32 1.442695, %v2499_v19 }
0x1cbd   :  { %4173 = vpow2.f32 %v2505_v25 }
0x1cbe   :  { %4175 = vpow2.f32 %v2501_v22 }
0x1cc3   :  { %v4170_v27 = vpop.eup %4169 }
0x1cc4   :  { %v2512_v42 = vsel %vm778_vm4, %v4170_v27, 0.0 }
0x1cc5   :  { %v4172_v28 = vpop.eup %4171  ;;  %2513 = vadd.xlane.f32.xlu1 %v2512_v42 }
0x1cc6   :  { %v2518_v61 = vsel %vm778_vm4, %v4172_v28, 0.0 }
0x1cc7   :  { %v4174_v40 = vpop.eup %4173 }
0x1cc8   :  { %v2515_v48 = vsel %vm778_vm4, %v4174_v40, 0.0  ;;  %v4176_v11 = vpop.eup %4175 }
0x1cc9   :  { %2519 = vadd.xlane.f32.xlu1 %v2518_v61  ;;  %2516 = vadd.xlane.f32.xlu0 %v2515_v48  ;;  %v2509_v14 = vsel %vm778_vm4, %v4176_v11, 0.0 }
0x1ccd   :  { %2510 = vadd.xlane.f32.xlu0 %v2509_v14  ;;  %v4068_v14 = vld [vmem:[%s5362_s12] sm:$0xff]  }
0x1ce3   :  { %2372 = vrot.lane.b32.xlu0 %v5011_v53, %s4287_s28 }
0x1d52   :  { %v2514_v23 = vpop.xlane.xlu1 %2513 }
0x1d56   :  { %v2520_v24 = vpop.xlane.xlu1 %2519  ;;  %v2517_v63 = vpop.xlane.xlu0 %2516 }
0x1d57   :  { %4177 = vrcp.f32 %v2520_v24 }
0x1d58   :  { %4179 = vrcp.f32 %v2517_v63 }
0x1d59   :  { %4181 = vrcp.f32 %v2514_v23 }
0x1d5a   :  { %v2511_v43 = vpop.xlane.xlu0 %2510 }
0x1d5b   :  { %4183 = vrcp.f32 %v2511_v43 }
0x1d5e   :  { %v2373_v34 = vpop.permute.xlu0 %2372 }
0x1d5f   :  { %v2413_v46 = vadd.f32 %v2412_v33, %v2373_v34  ;;  %v2416_v37 = vadd.f32 %v2415_v20, %v2373_v34  ;;  %v4069_v33 = vld [vmem:[%s5362_s12 + $0x8] sm:$0xff]  }
0x1d61   :  { %v4178_v39 = vpop.eup %4177  ;;  %v2531_v41 = vpack.c.bf16 %v2416_v37, %v2413_v46  ;;  %v4072_v37 = vld [vmem:[%s5364_s14 + $0x10] sm:$0xff]  }
0x1d62   :  { %v4180_v44 = vpop.eup %4179  ;;  %v2528_v29 = vmul.f32 %v4178_v39, %v4172_v28  ;;  %v4073_v39 = vld [vmem:[%s5364_s14 + $0x18] sm:$0xff]  }
0x1d63   :  { %v4182_v45 = vpop.eup %4181  ;;  %3910 = vmatprep.subr.bf16.mxu0 %v2531_v41  ;;  %v2527_v53 = vmul.f32 %v4180_v44, %v4174_v40 }
0x1d64   :  { %3911 = vmatpush3.bf16.msra.mxu0 %v2531_v41  ;;  %v2526_v31 = vmul.f32 %v4182_v45, %v4170_v27 }
0x1d65   :  { %v4184_v32 = vpop.eup %4183  ;;  %3927 = vmatprep.subr.bf16.mxu0 %v4284_v1  ;;  %v2530_v50 = vpack.c.bf16 %v2528_v29, %v2527_v53 }
0x1d66   :  { %v2525_v3 = vmul.f32 %v4184_v32, %v4176_v11 }
0x1d68   :  { %v2529_v36 = vpack.c.bf16 %v2526_v31, %v2525_v3  ;;  %v3516_v3 = vld [vmem:[%s5365_s15] ss:$0 sm:$0xff] }
0x1d6a   :  { %3912 = vmatprep.mubr.msk.bf16.mxu0 %vm778_vm4, %v2529_v36 }
0x1d6b   :  { %3913 = vmatmul.mubr.msk.bf16.vlgmr.msra.gmra.mrb[56].mxu0 %vm778_vm4, %v2530_v50 }
0x1d6c   :  { %3929 = vmatprep.mubr.msk.bf16.mxu0 %vm4285_vm0, %v4284_v1  ;;  %3928 = vmatpush3.bf16.msra.mxu0 %v4067_v52 }
0x1d6d   :  { %3941 = vmatprep.subr.bf16.mxu0 %v4284_v1 }
0x1e3e   :  { %v3914_v60 = vpop.f32.mrb[56].mxu0 }
0x1e3f   :  { %v2572_v62 = vpop.f32.mrb[57].mxu0  ;;  %v2589_v17 = vmul.f32 %v3914_v60, %v945_v56 }
0x1e40   :  { %v3915_v0 = vpop.f32.mrb[58].mxu0  ;;  %v2587_v10 = vmul.f32 %v2572_v62, %v943_v55 }
0x1e41   :  { %v2590_v8 = vmul.f32 %v3915_v0, %v946_v58  ;;  %v2575_v5 = vpop.f32.mrb[59].mxu0 }
0x1e42   :  { %v2588_v9 = vmul.f32 %v2575_v5, %v944_v57  ;;  %v5153_v5 = vld [vmem:[%s5367_s17] ss:$0 sm:$0xff] }
0x1e43   :  { %v4021_v12 = vpack.c.bf16 %v2590_v8, %v2589_v17  ;;  %v4074_v17 = vld [vmem:[%s5366_s16 + $0x8] sm:$0xff]   ;;  %v4075_v8 = vld [vmem:[%s5366_s16] sm:$0xff]  }
0x1e44   :  { %v4018_v13 = vpack.c.bf16 %v2588_v9, %v2587_v10  ;;  %2972 = vrot.lane.b32.xlu0 %v4074_v17, %s4289_s6 }
0x1e46   :  { %4019 = vmatpush3.bf16.msra.mxu1 %v4018_v13 }
0x1e47   :  { %4020 = vmatprep.subr.bf16.mxu1 %v4288_v18  ;;  %v3509_v18 = vld [vmem:[%s5361_s11] ss:$0 sm:$0xff] }
0x1e48   :  { %2976 = vrot.lane.b32.xlu0 %v5153_v5, %s4289_s6 }
0x1e4a   :  { %4022 = vmatpush3.bf16.msra.mxu1 %v4021_v12 }
0x1e4b   :  { %3933 = vmatprep.subr.bf16.mxu1 %v4284_v1 }
0x1e4c   :  { %3022 = vrot.lane.b32.xlu0 %v4075_v8, %s4287_s28 }
0x1e4d   :  { %3925 = vmatmul.mubr.msk.f32.vlgmr.msra.gmra.mrb[22].mxu1 %vm127_vm1, %v4978_v16 }
0x1e4e   :  { %3937 = vmatprep.mubr.msk.bf16.mxu1 %vm4285_vm0, %v4284_v1  ;;  %3934 = vmatpush3.bf16.msra.mxu1 %v4068_v14 }
0x1e4f   :  { %3935 = vmatprep.subr.bf16.mxu1 %v4284_v1 }
0x1e50   :  { %3024 = vrot.lane.b32.xlu0 %v4074_v17, %s4287_s28 }
0x1e52   :  { %3936 = vmatpush3.bf16.msra.mxu1 %v4069_v33 }
0x1e53   :  { %3953 = vmatprep.subr.bf16.mxu1 %v4284_v1 }
0x1f20   :  { %v2657_v56 = vpop.f32.mrb[22].mxu1 }
0x1f21   :  { %v2661_v58 = vpack.c.bf16 %v2657_v56, %v2657_v56  ;;  %v3926_v55 = vpop.f32.mrb[23].mxu1 }
0x1f23   :  { %3930 = vmatmul.mubr.msk.bf16.vlgmr.msra.gmra.mrb[60].mxu0 %vm778_vm4, %v2661_v58  ;;  %v2973_v58 = vpop.permute.xlu0 %2972 }
0x1f24   :  { %3949 = vmatprep.mubr.msk.bf16.mxu0 %vm4285_vm0, %v4284_v1 }
0x1f27   :  { %v2977_v55 = vpop.permute.xlu0 %2976 }
0x1ff6   :  { %v2714_v57 = vpop.f32.mrb[60].mxu0 }
0x1ff7   :  { %v2715_v19 = vadd.f32 %v3509_v18, %v2714_v57  ;;  %v3931_v22 = vpop.f32.mrb[61].mxu0  ;;  %v3023_v18 = vpop.permute.xlu0 %3022 }
0x1ff8   :  { %v2717_v25 = vpop.f32.mrb[62].mxu0 }
0x1ff9   :  { %v3932_v16 = vpop.f32.mrb[63].mxu0  ;;  %v2720_v27 = vadd.f32 %v2715_v19, %v5041_v15  ;;  %v4070_v15 = vld [vmem:[%s5364_s14] sm:$0xff]  }
0x1ffa   :  { %3942 = vmatpush3.bf16.msra.mxu0 %v4070_v15 }
0x1ffb   :  { %v2721_v42 = vsel %vm127_vm1, %v2720_v27, 0.0  ;;  %3943 = vmatprep.subr.bf16.mxu0 %v4284_v1 }
0x1ffc   :  { %2722 = vadd.xlane.f32.xlu1 %v2721_v42 }
0x1ffe   :  { %3944 = vmatpush3.bf16.msra.mxu0 %v4071_v7 }
0x1fff   :  { %3945 = vmatprep.subr.bf16.mxu0 %v4284_v1 }
0x2002   :  { %3946 = vmatpush3.bf16.msra.mxu0 %v4072_v37 }
0x2003   :  { %3947 = vmatprep.subr.bf16.mxu0 %v4284_v1 }
0x2006   :  { %3948 = vmatpush3.bf16.msra.mxu0 %v4073_v39 }
0x2007   :  { %3969 = vmatprep.subr.bf16.mxu0 %v4284_v1 }
0x2089   :  { %v2723_v28 = vpop.xlane.xlu1 %2722 }
0x208a   :  { %v2724_v40 = vmul.f32 0.03125, %v2723_v28 }
0x208c   :  { %v2725_v61 = vsub.f32 %v2720_v27, %v2724_v40 }
0x208e   :  { %v2726_v48 = vmul.f32 %v2725_v61, %v2725_v61 }
0x2090   :  { %v2727_v11 = vsel %vm127_vm1, %v2726_v48, 0.0 }
0x2091   :  { %2728 = vadd.xlane.f32.xlu1 %v2727_v11 }
0x211e   :  { %v2729_v20 = vpop.xlane.xlu1 %2728 }
0x211f   :  { %v2730_v21 = vmul.f32 0.03125, %v2729_v20  ;;  %v4231_v20 = vld [vmem:[%s5409_s2 + $0x8] sm:$0xff] }
0x2121   :  { %v2731_v23 = vadd.f32 1e-05, %v2730_v21 }
0x2123   :  { %4185 = vrsqrt.f32 %v2731_v23 }
0x212d   :  { %v4186_v24 = vpop.eup %4185 }
0x212e   :  { %v2733_v63 = vmul.f32 %v4186_v24, %v2725_v61 }
0x2130   :  { %v2734_v43 = vmul.f32 %v2733_v63, %v4700_v47  ;;  %v3512_v47 = vld [vmem:[%s5363_s13] ss:$0 sm:$0xff] }
0x2132   :  { %v2735_v34 = vadd.f32 %v2734_v43, %v4703_v49 }
0x2134   :  { %v2736_v46 = vpack.c.bf16 %v2735_v34, %v2735_v34 }
0x2136   :  { %3938 = vmatmul.mubr.msk.bf16.vlgmr.msra.gmra.mrb[64].mxu1 %vm127_vm1, %v2736_v46 }
0x2137   :  { %3957 = vmatprep.mubr.msk.bf16.mxu1 %vm4285_vm0, %v4284_v1  ;;  %3954 = vmatpush3.bf16.msra.mxu1 %v4075_v8 }
0x2138   :  { %3955 = vmatprep.subr.bf16.mxu1 %v4284_v1 }
0x213b   :  { %3956 = vmatpush3.bf16.msra.mxu1 %v4074_v17 }
0x213c   :  { %3961 = vmatprep.subr.bf16.mxu1 %v4284_v1 }
0x213e   :  { %3958 = vmatmul.mubr.msk.bf16.vlgmr.msra.gmra.mrb[68].mxu1 %vm127_vm1, %v5035_v6  ;;  %v3025_v6 = vpop.permute.xlu0 %3024 }
0x213f   :  { %3965 = vmatprep.mubr.msk.bf16.mxu1 %vm4285_vm0, %v4284_v1 }
0x2209   :  { %v2797_v49 = vpop.f32.mrb[64].mxu1 }
0x220a   :  { %v2798_v41 = vadd.f32 %v3512_v47, %v2797_v49  ;;  %v3939_v44 = vpop.f32.mrb[65].mxu1 }
0x220b   :  { %v2800_v45 = vpop.f32.mrb[66].mxu1 }
0x220c   :  { %v2803_v32 = vmax.f32 %v2798_v41, 0.0  ;;  %v3940_v29 = vpop.f32.mrb[67].mxu1 }
0x220e   :  { %v2804_v53 = vpack.c.bf16 %v2803_v32, %v2803_v32 }
0x2210   :  { %3950 = vmatmul.mubr.msk.bf16.vlgmr.msra.gmra.mrb[64].mxu0 %vm1212_vm5, %v2804_v53 }
0x2211   :  { %3973 = vmatprep.mubr.msk.bf16.mxu0 %vm4285_vm0, %v4284_v1  ;;  %3970 = vmatpush3.bf16.msra.mxu0 %v3023_v18  ;;  %v2963_v57 = vpop.f32.mrb[68].mxu1 }
0x2212   :  { %3971 = vmatprep.subr.bf16.mxu0 %v4284_v1  ;;  %v2964_v19 = vadd.f32 %v5153_v5, %v2963_v57  ;;  %v3959_v22 = vpop.f32.mrb[69].mxu1 }
0x2213   :  { %v2966_v25 = vpop.f32.mrb[70].mxu1 }
0x2214   :  { %v2967_v16 = vadd.f32 %v5153_v5, %v2966_v25  ;;  %v3960_v27 = vpop.f32.mrb[71].mxu1 }
0x2215   :  { %3972 = vmatpush3.bf16.msra.mxu0 %v3025_v6 }
0x2216   :  { %3985 = vmatprep.subr.bf16.mxu0 %v4284_v1  ;;  %v3080_v42 = vpack.c.bf16 %v2967_v16, %v2964_v19 }
0x22e3   :  { %v2881_v31 = vpop.f32.mrb[64].mxu0 }
0x22e4   :  { %v2882_v36 = vadd.f32 %v3516_v3, %v2881_v31  ;;  %v3951_v50 = vpop.f32.mrb[65].mxu0 }
0x22e5   :  { %v2884_v52 = vpop.f32.mrb[66].mxu0 }
0x22e6   :  { %v3952_v60 = vpop.f32.mrb[67].mxu0  ;;  %v2887_v62 = vadd.f32 %v2882_v36, %v2735_v34 }
0x22e8   :  { %v2888_v0 = vsel %vm127_vm1, %v2887_v62, 0.0 }
0x22e9   :  { %2889 = vadd.xlane.f32.xlu1 %v2888_v0 }
0x2376   :  { %v2890_v10 = vpop.xlane.xlu1 %2889 }
0x2377   :  { %v2891_v9 = vmul.f32 0.03125, %v2890_v10 }
0x2379   :  { %v2892_v12 = vsub.f32 %v2887_v62, %v2891_v9 }
0x237b   :  { %v2893_v13 = vmul.f32 %v2892_v12, %v2892_v12 }
0x237d   :  { %v2894_v56 = vsel %vm127_vm1, %v2893_v13, 0.0 }
0x237e   :  { %2895 = vadd.xlane.f32.xlu1 %v2894_v56 }
0x238f   :  { %2970 = vrot.lane.b32.xlu1 %v4075_v8, %s4289_s6 }
0x240b   :  { %v2896_v28 = vpop.xlane.xlu1 %2895 }
0x240c   :  { %v2897_v40 = vmul.f32 0.03125, %v2896_v28 }
0x240e   :  { %v2898_v61 = vadd.f32 1e-05, %v2897_v40 }
0x240f   :  { %v2971_v48 = vpop.permute.xlu1 %2970 }
0x2410   :  { %4187 = vrsqrt.f32 %v2898_v61  ;;  %3962 = vmatpush3.bf16.msra.mxu1 %v2971_v48 }
0x2411   :  { %3963 = vmatprep.subr.bf16.mxu1 %v4284_v1 }
0x2414   :  { %3964 = vmatpush3.bf16.msra.mxu1 %v2973_v58 }
0x2415   :  { %3977 = vmatprep.subr.bf16.mxu1 %v4284_v1 }
0x241a   :  { %v4188_v11 = vpop.eup %4187 }
0x241b   :  { %v2900_v14 = vmul.f32 %v4188_v11, %v2892_v12 }
0x241d   :  { %v2901_v33 = vmul.f32 %v2900_v14, %v4760_v51 }
0x241f   :  { %v2902_v15 = vadd.f32 %v2901_v33, %v4763_v59 }
0x2421   :  { %v2905_v7 = vpack.c.bf16 %v2902_v15, %v2902_v15  ;;  %3389 = vst.msk [vmem:[#allocation2 + $0x8] sm:$0xff] %vm127_vm1, %v2902_v15  ;;  %v2903_v21 = vadd.f32 %v4231_v20, %v2902_v15 }
0x2423   :  { %3974 = vmatmul.mubr.msk.bf16.vlgmr.msra.gmra.mrb[68].mxu0 %vm127_vm1, %v2905_v7  ;;  %v2904_v23 = vpack.c.bf16 %v2903_v21, %v2903_v21 }
0x2424   :  { %3989 = vmatprep.mubr.msk.bf16.mxu0 %vm4285_vm0, %v4284_v1 }
0x2425   :  { %3966 = vmatmul.mubr.msk.bf16.vlgmr.msra.gmra.mrb[72].mxu1 %vm127_vm1, %v2904_v23 }
0x2426   :  { %3981 = vmatprep.mubr.msk.bf16.mxu1 %vm4285_vm0, %v4284_v1 }
0x24f6   :  { %v5185_v51 = vpop.f32.mrb[68].mxu0 }
0x24f7   :  { %v3975_v59 = vpop.f32.mrb[69].mxu0 }
0x24f8   :  { %v3016_v24 = vpop.f32.mrb[72].mxu1  ;;  %v3071_v63 = vpop.f32.mrb[70].mxu0 }
0x24f9   :  { %v3017_v43 = vadd.f32 %v3016_v24, %v2977_v55  ;;  %v3967_v34 = vpop.f32.mrb[73].mxu1  ;;  %v3976_v46 = vpop.f32.mrb[71].mxu0 }
0x24fa   :  { %v3019_v37 = vpop.f32.mrb[74].mxu1 }
0x24fb   :  { %v3074_v39 = vpack.c.bf16 %v3017_v43, %v3017_v43  ;;  %v3968_v47 = vpop.f32.mrb[75].mxu1 }
0x24fd   :  { %v3075_v49 = vmul.bf16 %v3074_v39, %v4619_v4  ;;  %v3076_v44 = vmul.bf16 %v3074_v39, %v4624_v35 }
0x24ff   :  { %v3085_v41 = vsel %vm778_vm4, %v3075_v49, 0  ;;  %v3088_v45 = vsel %vm778_vm4, %v3076_v44, 0 }
0x2500   :  { %3978 = vmatpush3.bf16.xpose.msra.mxu1 %v3085_v41 }
0x2501   :  { %3979 = vmatprep.subr.bf16.mxu1 %v4284_v1 }
0x2508   :  { %3980 = vmatpush3.bf16.xpose.msra.mxu1 %v3088_v45 }
0x250f   :  { %3982 = vmatmul.mubr.msk.bf16.vlgmr.msra.gmra.mrb[76].mxu1 %vm778_vm4, %v3080_v42 }
0x25e2   :  { %v3124_v32 = vpop.f32.mrb[76].mxu1 }
0x25e3   :  { %v5193_v29 = vmul.f32 0.5, %v3124_v32  ;;  %v3983_v53 = vpop.f32.mrb[77].mxu1 }
0x25e4   :  { %v3127_v3 = vpop.f32.mrb[78].mxu1 }
0x25e5   :  { %v3132_v31 = vmul.f32 0.5, %v3127_v3  ;;  %v3984_v36 = vpop.f32.mrb[79].mxu1  ;;  %v3185_v50 = vsel %vm1563_vm6, %v5193_v29, -inf  ;;  %v3155_v52 = vsel %vm1532_vm7, %v5193_v29, -inf  ;;  %v3215_v17 = vsel %vm1594_vm8, %v5193_v29, -inf }
0x25e6   :  { %3186 = vmax.xlane.f32.xlu0 %v3185_v50  ;;  %3156 = vmax.xlane.f32.xlu1 %v3155_v52  ;;  %v3133_v8 = vsel %vm304_vm2, %v5193_v29, -inf  ;;  %v4232_v52 = vld [vmem:[%s5415_s10] sm:$0xff] }
0x25e7   :  { %v3188_v60 = vsel %vm1563_vm6, %v3132_v31, -inf  ;;  %v3158_v62 = vsel %vm1532_vm7, %v3132_v31, -inf  ;;  %v3218_v0 = vsel %vm1594_vm8, %v3132_v31, -inf  ;;  %v3136_v10 = vsel %vm304_vm2, %v3132_v31, -inf }
0x25ea   :  { %3189 = vmax.xlane.f32.xlu1 %v3188_v60  ;;  %3159 = vmax.xlane.f32.xlu0 %v3158_v62 }
0x25ee   :  { %3219 = vmax.xlane.f32.xlu1 %v3218_v0  ;;  %3216 = vmax.xlane.f32.xlu0 %v3215_v17 }
0x25f2   :  { %3134 = vmax.xlane.f32.xlu0 %v3133_v8  ;;  %3137 = vmax.xlane.f32.xlu1 %v3136_v10 }
0x2673   :  { %v3157_v9 = vpop.xlane.xlu1 %3156  ;;  %v3187_v12 = vpop.xlane.xlu0 %3186 }
0x2674   :  { %v3161_v13 = vsub.f32 %v5193_v29, %v3157_v9  ;;  %v3191_v56 = vsub.f32 %v5193_v29, %v3187_v12 }
0x2676   :  { %v3163_v58 = vmul.f32 1.442695, %v3161_v13  ;;  %v3193_v55 = vmul.f32 1.442695, %v3191_v56 }
0x2677   :  { %v3190_v18 = vpop.xlane.xlu1 %3189  ;;  %v3160_v6 = vpop.xlane.xlu0 %3159 }
0x2678   :  { %4189 = vpow2.f32 %v3163_v58  ;;  %v3192_v57 = vsub.f32 %v3132_v31, %v3190_v18  ;;  %v3162_v19 = vsub.f32 %v3132_v31, %v3160_v6 }
0x2679   :  { %4191 = vpow2.f32 %v3193_v55 }
0x267a   :  { %v3195_v22 = vmul.f32 1.442695, %v3192_v57  ;;  %v3165_v25 = vmul.f32 1.442695, %v3162_v19 }
0x267b   :  { %v3220_v16 = vpop.xlane.xlu1 %3219  ;;  %v3217_v27 = vpop.xlane.xlu0 %3216 }
0x267c   :  { %4193 = vpow2.f32 %v3195_v22  ;;  %v3222_v42 = vsub.f32 %v3132_v31, %v3220_v16  ;;  %v3221_v28 = vsub.f32 %v5193_v29, %v3217_v27 }
0x267d   :  { %4195 = vpow2.f32 %v3165_v25 }
0x267e   :  { %v3225_v40 = vmul.f32 1.442695, %v3222_v42  ;;  %v3223_v61 = vmul.f32 1.442695, %v3221_v28 }
0x267f   :  { %v3138_v20 = vpop.xlane.xlu1 %3137  ;;  %v3135_v23 = vpop.xlane.xlu0 %3134 }
0x2680   :  { %4197 = vpow2.f32 %v3225_v40  ;;  %v3140_v21 = vsub.f32 %v3132_v31, %v3138_v20  ;;  %v3139_v24 = vsub.f32 %v5193_v29, %v3135_v23 }
0x2681   :  { %4199 = vpow2.f32 %v3223_v61 }
0x2682   :  { %v5210_v48 = vpop.eup %4189  ;;  %v3143_v59 = vmul.f32 1.442695, %v3140_v21  ;;  %v3141_v63 = vmul.f32 1.442695, %v3139_v24 }
0x2683   :  { %v5212_v11 = vpop.eup %4191  ;;  %3169 = vrot.lane.b32.xlu0 %v5210_v48, %s4290_s7 }
0x2684   :  { %3199 = vrot.lane.b32.xlu1 %v5212_v11, %s4289_s6  ;;  %4201 = vpow2.f32 %v3143_v59 }
0x2685   :  { %4203 = vpow2.f32 %v3141_v63 }
0x2686   :  { %v5218_v14 = vpop.eup %4193 }
0x2687   :  { %v5220_v33 = vpop.eup %4195  ;;  %3201 = vrot.lane.b32.xlu0 %v5218_v14, %s4289_s6 }
0x2688   :  { %3171 = vrot.lane.b32.xlu1 %v5220_v33, %s4290_s7  ;;  %s5420_s7 = sld [smem:[#allocation19_spill]] }
0x268a   :  { %v5226_v15 = vpop.eup %4197 }
0x268b   :  { %v5228_v7 = vpop.eup %4199  ;;  %3231 = vrot.lane.b32.xlu0 %v5226_v15, %s4291_s27 }
0x268c   :  { %3229 = vrot.lane.b32.xlu1 %v5228_v7, %s4291_s27 }
0x268e   :  { %v5235_v43 = vpop.eup %4201  ;;  %v3475_v29 = vld [vmem:[%s5420_s7] ss:$0 sm:$0xff] }
0x268f   :  { %v3148_v34 = vsel %vm304_vm2, %v5235_v43, 0.0  ;;  %v5239_v46 = vpop.eup %4203  ;;  %v1731_v3 = vadd.f32 %v3475_v29, %v4950_v26  ;;  %v1734_v62 = vadd.f32 %v3475_v29, %v4952_v38  ;;  %v4233_v26 = vld [vmem:[%s5415_s10 + $0x8] sm:$0xff] }
0x2690   :  { %v3145_v37 = vsel %vm304_vm2, %v5239_v46, 0.0 }
0x2691   :  { %v5255_v60 = vadd.f32 %v4232_v52, %v1731_v3  ;;  %v5262_v17 = vadd.f32 %v4233_v26, %v1734_v62 }
0x2693   :  { %v1739_v8 = vsel %vm127_vm1, %v5255_v60, 0.0  ;;  %v1742_v10 = vsel %vm127_vm1, %v5262_v17, 0.0 }
0x26aa   :  { %3149 = vadd.xlane.f32.xlu0 %v3148_v34 }
0x26b0   :  { %3146 = vadd.xlane.f32.xlu1 %v3145_v37 }
0x26f5   :  { %v3170_v39 = vpop.permute.xlu0 %3169 }
0x26f6   :  { %v3200_v47 = vpop.permute.xlu1 %3199  ;;  %v3175_v49 = vsel %vm304_vm2, %v3170_v39, 0.0 }
0x26f7   :  { %3176 = vadd.xlane.f32.xlu0 %v3175_v49  ;;  %v3205_v41 = vsel %vm304_vm2, %v3200_v47, 0.0 }
0x26f9   :  { %v3202_v45 = vpop.permute.xlu0 %3201 }
0x26fa   :  { %v3172_v44 = vpop.permute.xlu1 %3171  ;;  %v3208_v31 = vsel %vm304_vm2, %v3202_v45, 0.0 }
0x26fb   :  { %v3178_v32 = vsel %vm304_vm2, %v3172_v44, 0.0  ;;  %3206 = vadd.xlane.f32.xlu0 %v3205_v41  ;;  %v3530_v44 = vld [vmem:[%s5420_s7] ss:$0 sm:$0xff] }
0x26fc   :  { %3179 = vadd.xlane.f32.xlu1 %v3178_v32 }
0x26fd   :  { %v3232_v50 = vpop.permute.xlu0 %3231 }
0x26fe   :  { %v3230_v53 = vpop.permute.xlu1 %3229  ;;  %v3238_v0 = vsel %vm304_vm2, %v3232_v50, 0.0 }
0x26ff   :  { %v3235_v36 = vsel %vm304_vm2, %v3230_v53, 0.0 }
0x2700   :  { %3236 = vadd.xlane.f32.xlu0 %v3235_v36  ;;  %3209 = vadd.xlane.f32.xlu1 %v3208_v31 }
0x2704   :  { %3239 = vadd.xlane.f32.xlu1 %v3238_v0 }
0x2708   :  { %1740 = vadd.xlane.f32.xlu1 %v1739_v8 }
0x270c   :  { %1743 = vadd.xlane.f32.xlu1 %v1742_v10 }
0x2716   :  { %3028 = vrot.lane.b32.xlu0 %v5153_v5, %s4287_s28 }
0x2737   :  { %v3150_v38 = vpop.xlane.xlu0 %3149 }
0x2738   :  { %4205 = vrcp.f32 %v3150_v38 }
0x273d   :  { %v3147_v12 = vpop.xlane.xlu1 %3146 }
0x273e   :  { %4207 = vrcp.f32 %v3147_v12 }
0x2742   :  { %v4206_v5 = vpop.eup %4205 }
0x2743   :  { %v3154_v59 = vmul.f32 %v4206_v5, %v5235_v43 }
0x2748   :  { %v4208_v19 = vpop.eup %4207 }
0x2784   :  { %v3177_v9 = vpop.xlane.xlu0 %3176 }
0x2785   :  { %4209 = vrcp.f32 %v3177_v9 }
0x2788   :  { %v3207_v13 = vpop.xlane.xlu0 %3206 }
0x2789   :  { %v3180_v56 = vpop.xlane.xlu1 %3179 }
0x278a   :  { %4211 = vrcp.f32 %v3180_v56 }
0x278b   :  { %4213 = vrcp.f32 %v3207_v13 }
0x278d   :  { %v3210_v58 = vpop.xlane.xlu1 %3209  ;;  %v3237_v55 = vpop.xlane.xlu0 %3236 }
0x278e   :  { %4215 = vrcp.f32 %v3210_v58 }
0x278f   :  { %4217 = vrcp.f32 %v3237_v55  ;;  %v4210_v25 = vpop.eup %4209 }
0x2790   :  { %v3183_v61 = vmul.f32 %v4210_v25, %v5210_v48 }
0x2791   :  { %v3240_v18 = vpop.xlane.xlu1 %3239  ;;  %v3029_v6 = vpop.permute.xlu0 %3028 }
0x2792   :  { %4219 = vrcp.f32 %v3240_v18  ;;  %v3069_v57 = vadd.f32 %v5185_v51, %v3029_v6 }
0x2794   :  { %v3077_v22 = vpack.c.bf16 %v3069_v57, %v3069_v57  ;;  %v4212_v16 = vpop.eup %4211 }
0x2795   :  { %v4214_v42 = vpop.eup %4213  ;;  %v3184_v20 = vmul.f32 %v4212_v16, %v5220_v33  ;;  %v1741_v41 = vpop.xlane.xlu1 %1740 }
0x2796   :  { %v3078_v27 = vmul.bf16 %v3077_v22, %v4619_v4  ;;  %v3213_v21 = vmul.f32 %v4214_v42, %v5212_v11  ;;  %v3079_v23 = vmul.bf16 %v3077_v22, %v4624_v35  ;;  %v3153_v4 = vmul.f32 %v4208_v19, %v5239_v46 }
0x2797   :  { %v3246_v33 = vsel %vm304_vm2, %v3154_v59, %v3184_v20  ;;  %v1745_v32 = vmul.f32 0.03125, %v1741_v41  ;;  %v1767_v42 = vsub.s32 3, %v4580_v2  ;;  %v4235_v20 = vld [vmem:[%s5371_s21] sm:$0xf] }
0x2798   :  { %v4216_v28 = vpop.eup %4215  ;;  %3986 = vmatpush3.bf16.msra.mxu0 %v3078_v27  ;;  %v3245_v48 = vsel %vm304_vm2, %v3153_v4, %v3183_v61 }
0x2799   :  { %v4218_v40 = vpop.eup %4217  ;;  %3987 = vmatprep.subr.bf16.mxu0 %v4284_v1  ;;  %v3214_v51 = vmul.f32 %v4216_v28, %v5218_v14  ;;  %v3247_v11 = vsel %vm778_vm4, %v3245_v48, %v3213_v21  ;;  %v1744_v3 = vpop.xlane.xlu1 %1743  ;;  %v1747_v52 = vsub.f32 %v5255_v60, %v1745_v32  ;;  %v4234_v28 = vld [vmem:[%s5370_s20] sm:$0xf]  ;;  %v1774_v21 = vrot.slane %v4235_v20, %v1767_v42  ;;  %s3398_s20 = sshll.u32 %s4292_s29, 4  ;;  %s3399_s20 = int_to_ptr.vmem [resolvable:$true] %s3398_s20 }
0x279a   :  { %v3243_v24 = vmul.f32 %v4218_v40, %v5228_v7  ;;  %v4076_v7 = vld [vmem:[%s5368_s18] sm:$0xff]   ;;  %v1746_v62 = vmul.f32 0.03125, %v1744_v3  ;;  %v1768_v40 = vrot.slane %v4234_v28, %v1767_v42  ;;  %s4236_s9 = scalar_lea.vmem %s3399_s20, 256  ;;  %p4241_p1 = scmp.lt.s32.totalorder %s3399_s20, %s3399_s20 }
0x279b   :  { %v3248_v35 = vsel %vm778_vm4, %v3246_v33, %v3214_v51  ;;  %v1749_v38 = vmul.f32 %v1747_v52, %v1747_v52  ;;  %p4237_p0 = scmp.ne.s32.totalorder %s3399_s20, %s4236_s9  ;;  %p4242_p2 = scmp.lt.s32.totalorder %s4236_s9, %s4236_s9 }
0x279c   :  { %v4220_v63 = vpop.eup %4219  ;;  %3988 = vmatpush3.bf16.msra.mxu0 %v3079_v23  ;;  %v3249_v14 = vsel %vm1629_vm9, %v3247_v11, %v3243_v24  ;;  %v1748_v8 = vsub.f32 %v5262_v17, %v1746_v62 }
0x279d   :  { %v3244_v34 = vmul.f32 %v4220_v63, %v5226_v15  ;;  %3993 = vmatprep.subr.bf16.mxu0 %v4284_v1  ;;  %v1751_v9 = vsel %vm127_vm1, %v1749_v38, 0.0  ;;  %p4243_p3 = por %p4242_p2, %p4241_p1 }
0x279e   :  { %v1750_v12 = vmul.f32 %v1748_v8, %v1748_v8 }
0x279f   :  { %v3250_v43 = vsel %vm1629_vm9, %v3248_v35, %v3244_v34  ;;  %p4244_p4 = pnand %p4243_p3, %p4237_p0 }
0x27a0   :  { %v3251_v46 = vpack.c.bf16 %v3250_v43, %v3249_v14 }
0x27a2   :  { %3990 = vmatmul.mubr.msk.bf16.vlgmr.msra.gmra.mrb[72].mxu0 %vm127_vm1, %v3251_v46 }
0x27a3   :  { %3994 = vmatpush3.bf16.msra.mxu0 %v4076_v7  ;;  %3995 = vmatprep.mubr.msk.bf16.mxu0 %vm4285_vm0, %v4284_v1 }
0x2875   :  { %v3289_v15 = vpop.f32.mrb[72].mxu0 }
0x2876   :  { %v3991_v37 = vpop.f32.mrb[73].mxu0 }
0x2877   :  { %v3292_v39 = vpop.f32.mrb[74].mxu0 }
0x2878   :  { %v3296_v47 = vpack.c.bf16 %v3292_v39, %v3289_v15  ;;  %v3992_v49 = vpop.f32.mrb[75].mxu0 }
0x287a   :  { %3996 = vmatmul.mubr.msk.bf16.vlgmr.msra.gmra.mrb[76].mxu0 %vm778_vm4, %v3296_v47 }
0x294d   :  { %v3349_v45 = vpop.f32.mrb[76].mxu0 }
0x294e   :  { %v3350_v29 = vadd.f32 %v3530_v44, %v3349_v45  ;;  %v3997_v53 = vpop.f32.mrb[77].mxu0 }
0x294f   :  { %v3352_v31 = vpop.f32.mrb[78].mxu0 }
0x2950   :  { %v3356_v1 = vadd.f32 %v5019_v30, %v3350_v29  ;;  %v3353_v36 = vadd.f32 %v3530_v44, %v3352_v31  ;;  %v3998_v50 = vpop.f32.mrb[79].mxu0  ;;  %v1754_v30 = vsel %vm127_vm1, %v1750_v12, 0.0 }
0x2952   :  { %v3357_v0 = vadd.f32 %v5024_v54, %v3353_v36  ;;  %v3358_v26 = vsel %vm127_vm1, %v3356_v1, 0.0 }
0x2953   :  { %3359 = vadd.xlane.f32.xlu1 %v3358_v26 }
0x2954   :  { %v3361_v10 = vsel %vm127_vm1, %v3357_v0, 0.0 }
0x2957   :  { %3362 = vadd.xlane.f32.xlu1 %v3361_v10 }
0x295b   :  { %1752 = vadd.xlane.f32.xlu1 %v1751_v9 }
0x295f   :  { %1755 = vadd.xlane.f32.xlu1 %v1754_v30 }
0x29e0   :  { %v3360_v60 = vpop.xlane.xlu1 %3359 }
0x29e1   :  { %v3364_v13 = vmul.f32 0.03125, %v3360_v60 }
0x29e3   :  { %v3366_v56 = vsub.f32 %v3356_v1, %v3364_v13 }
0x29e4   :  { %v3363_v54 = vpop.xlane.xlu1 %3362 }
0x29e5   :  { %v3365_v58 = vmul.f32 0.03125, %v3363_v54  ;;  %v3368_v55 = vmul.f32 %v3366_v56, %v3366_v56 }
0x29e7   :  { %v3367_v18 = vsub.f32 %v3357_v0, %v3365_v58  ;;  %v3370_v17 = vsel %vm127_vm1, %v3368_v55, 0.0 }
0x29e8   :  { %3371 = vadd.xlane.f32.xlu0 %v3370_v17  ;;  %v1753_v6 = vpop.xlane.xlu1 %1752 }
0x29e9   :  { %v1757_v57 = vmul.f32 0.03125, %v1753_v6  ;;  %v3369_v5 = vmul.f32 %v3367_v18, %v3367_v18 }
0x29eb   :  { %v1759_v19 = vadd.f32 1e-05, %v1757_v57  ;;  %v3373_v22 = vsel %vm127_vm1, %v3369_v5, 0.0 }
0x29ec   :  { %3374 = vadd.xlane.f32.xlu1 %v3373_v22  ;;  %v1756_v25 = vpop.xlane.xlu1 %1755 }
0x29ed   :  { %4221 = vrsqrt.f32 %v1759_v19  ;;  %v1758_v16 = vmul.f32 0.03125, %v1756_v25 }
0x29ef   :  { %v1760_v27 = vadd.f32 1e-05, %v1758_v16 }
0x29f1   :  { %4223 = vrsqrt.f32 %v1760_v27 }
0x29f7   :  { %v4222_v61 = vpop.eup %4221 }
0x29f8   :  { %v1763_v51 = vmul.f32 %v4222_v61, %v1747_v52 }
0x29fa   :  { %v1769_v23 = vmul.f32 %v1768_v40, %v1763_v51 }
0x29fb   :  { %v4224_v59 = vpop.eup %4223 }
0x29fc   :  { %v1775_v4 = vadd.f32 %v1774_v21, %v1769_v23  ;;  %v1764_v24 = vmul.f32 %v4224_v59, %v1748_v8 }
0x29fe   :  { %1778 = vst.msk [vmem:[#allocation4] sm:$0xff] %vm127_vm1, %v1775_v4  ;;  %v1770_v63 = vmul.f32 %v1768_v40, %v1764_v24 }
0x2a00   :  { %v1776_v2 = vadd.f32 %v1774_v21, %v1770_v63 }
0x2a02   :  { %1779 = vst.msk [vmem:[#allocation4 + $0x8] sm:$0xff] %vm127_vm1, %v1776_v2 }
0x2a03   :  { %4247 = shalt.err (!%p4244_p4)
}
0x2a04   :  { %s5421_s8 = sld [smem:[#allocation20_spill]] }
0x2a0a   :  { %s4248_s14 = scalar_lea.hbm %s5421_s8, 256 }
0x2a0b   :  { %p4249_p5 = scmp.ne.s32.totalorder %s5421_s8, %s4248_s14  ;;  %p4252_p6 = scmp.lt.u32.totalorder %s4248_s14, %s5421_s8 }
0x2a0d   :  { %p4254_p7 = pnand %p4252_p6, %p4249_p5 }
0x2a0f   :  { %4257 = shalt.err (!%p4254_p7)
}
0x2a10   :  { %s4293_s4 = smov 128   ;;  %s4294_s15 = smov 8  }
0x2a11   :  { %3404 = dma.vmem_to_hbm [thread:$0]  %s3399_s20, 256, %s5421_s8, [#allocation3], %s4293_s4, %s4293_s4, %s4294_s15  }
0x2a12   :  { %s4295_s17 = smov [#allocation4]  }
0x2a13   :  { %s3410_s2 = sshll.u32 %s4295_s17, 4  ;;  %s3411_s2 = int_to_ptr.vmem [resolvable:$true] %s3410_s2 }
0x2a14   :  { %s4258_s6 = scalar_lea.vmem %s3411_s2, 512  ;;  %p4263_p9 = scmp.lt.s32.totalorder %s3411_s2, %s3411_s2 }
0x2a15   :  { %p4259_p8 = scmp.ne.s32.totalorder %s3411_s2, %s4258_s6  ;;  %p4264_p10 = scmp.lt.s32.totalorder %s4258_s6, %s4258_s6 }
0x2a17   :  { %p4265_p11 = por %p4264_p10, %p4263_p9 }
0x2a19   :  { %p4266_p12 = pnand %p4265_p11, %p4259_p8 }
0x2a75   :  { %v3372_v48 = vpop.xlane.xlu0 %3371 }
0x2a76   :  { %v3376_v33 = vmul.f32 0.03125, %v3372_v48 }
0x2a78   :  { %v3378_v34 = vadd.f32 1e-05, %v3376_v33 }
0x2a79   :  { %v3375_v11 = vpop.xlane.xlu1 %3374 }
0x2a7a   :  { %4225 = vrsqrt.f32 %v3378_v34  ;;  %v3377_v35 = vmul.f32 0.03125, %v3375_v11 }
0x2a7c   :  { %v3379_v14 = vadd.f32 1e-05, %v3377_v35 }
0x2a7e   :  { %4227 = vrsqrt.f32 %v3379_v14 }
0x2a84   :  { %v4226_v43 = vpop.eup %4225 }
0x2a85   :  { %v3382_v7 = vmul.f32 %v4226_v43, %v3366_v56 }
0x2a87   :  { %v3384_v46 = vmul.f32 %v3382_v7, %v1768_v40 }
0x2a88   :  { %v4228_v15 = vpop.eup %4227 }
0x2a89   :  { %v3386_v37 = vadd.f32 %v3384_v46, %v1774_v21  ;;  %v3383_v39 = vmul.f32 %v4228_v15, %v3367_v18 }
0x2a8b   :  { %3391 = vst.msk [vmem:[#allocation4 + $0x10] sm:$0xff] %vm127_vm1, %v3386_v37  ;;  %v3385_v47 = vmul.f32 %v3383_v39, %v1768_v40 }
0x2a8d   :  { %v3387_v49 = vadd.f32 %v3385_v47, %v1774_v21 }
0x2a8f   :  { %3392 = vst.msk [vmem:[#allocation4 + $0x18] sm:$0xff] %vm127_vm1, %v3387_v49 }
0x2a90   :  { %4269 = shalt.err (!%p4266_p12)
}
0x2a91   :  { %s5422_s11 = sld [smem:[#allocation21_spill]] }
0x2a97   :  { %s4270_s26 = scalar_lea.hbm %s5422_s11, 512 }
0x2a98   :  { %p4271_p13 = scmp.ne.s32.totalorder %s5422_s11, %s4270_s26  ;;  %p4274_p0 = scmp.lt.u32.totalorder %s4270_s26, %s5422_s11 }
0x2a9a   :  { %p4276_p1 = pnand %p4274_p0, %p4271_p13 }
0x2a9c   :  { %4279 = shalt.err (!%p4276_p1)
}
0x2a9d   :  { %3416 = dma.vmem_to_hbm [thread:$0]  %s3411_s2, 512, %s5422_s11, [#allocation5], %s4293_s4, %s4293_s4, %s4294_s15  }
0x2a9e   :  { %4280 = dma.done.wait [#allocation3], 256  }
0x2a9f   :  { %4281 = vsyncadd [#allocation3], 4294967040 }
0x2aa0   :  { %4282 = dma.done.wait [#allocation5], 512  }
0x2aa1   :  { %4283 = vsyncadd [#allocation5], 4294966784 }
0x2aa2   :  { %3423 = vsyncpa [#allocation3], 1 }
0x2aa3   :  { %3424 = vsyncpa [#allocation5], 1 }

</bundles_post_ra>
